<compile_context>
chip_gen: v7x
topology: tpu7x:2x2x1
jax: 0.10.0
libtpu: 0.0.40
codegen_flags: <defaults>
</compile_context>

<pallas_src>
import jax
import jax.numpy as jnp
from jax import lax
from jax.experimental import pallas as pl
from jax.experimental.pallas import tpu as pltpu


def _round_up(x, m):
    return ((x + m - 1) // m) * m


# ------------------------------- Pallas kernel -------------------------------

def _make_encoder_kernel(T, B, nh_p):
    """Build the encoder kernel for static (T, B, padded hidden) sizes."""
    g3 = 3 * nh_p  # width of one direction's gate block [r | z | n]

    def kernel(x_ref,       # (T*B, ni)      time-major rows (t major, b minor)
               w_in_ref,    # (ni, 6*nh_p)   [fwd r z n | bwd r z n]
               b_in_ref,    # (1, 6*nh_p)    folded input biases
               whh_f_ref,   # (nh_p, 3*nh_p)
               bhh_f_ref,   # (1, 3*nh_p)
               whh_b_ref,   # (nh_p, 3*nh_p)
               bhh_b_ref,   # (1, 3*nh_p)
               wlin_ref,    # (2*nh_p, 2*nz)
               blin_ref,    # (1, 2*nz)
               out_ref,     # (B, 2*nh_p + 2*nz)  [h_f | h_b | mean,logvar]
               gx_ref):     # scratch (T*B, 6*nh_p)
        # ---- hoisted input projection: one big MXU matmul, biases added once ----
        gx_ref[...] = (jnp.dot(x_ref[...], w_in_ref[...],
                               preferred_element_type=jnp.float32)
                       + b_in_ref[...])

        whh_f = whh_f_ref[...]
        bhh_f = bhh_f_ref[...]
        whh_b = whh_b_ref[...]
        bhh_b = bhh_b_ref[...]

        def gru_step(gx, h, whh, bhh):
            # PyTorch GRU cell, gate order [r, z, n]; gate slices are whole
            # 128-lane vregs because nh_p % 128 == 0.
            gh = jnp.dot(h, whh, preferred_element_type=jnp.float32) + bhh
            r = jax.nn.sigmoid(gx[:, 0 * nh_p:1 * nh_p] + gh[:, 0 * nh_p:1 * nh_p])
            z = jax.nn.sigmoid(gx[:, 1 * nh_p:2 * nh_p] + gh[:, 1 * nh_p:2 * nh_p])
            n = jnp.tanh(gx[:, 2 * nh_p:3 * nh_p] + r * gh[:, 2 * nh_p:3 * nh_p])
            return (1.0 - z) * n + z * h

        def body(t, carry):
            h_f, h_b = carry
            gx_f = gx_ref[pl.ds(t * B, B), 0:g3]             # fwd gates, time t
            gx_b = gx_ref[pl.ds((T - 1 - t) * B, B), g3:2 * g3]  # bwd gates
            return (gru_step(gx_f, h_f, whh_f, bhh_f),
                    gru_step(gx_b, h_b, whh_b, bhh_b))

        h0 = jnp.zeros((B, nh_p), jnp.float32)
        # Fused fwd/bwd recurrence, fully unrolled for scheduling visibility.
        h_f, h_b = lax.fori_loop(0, T, body, (h0, h0), unroll=True)

        h_cat = jnp.concatenate([h_f, h_b], axis=1)                      # (B, 2*nh_p)
        lin = (jnp.dot(h_cat, wlin_ref[...],
                       preferred_element_type=jnp.float32)
               + blin_ref[...])                                          # (B, 2*nz)

        # Single lane-dense store; h_f/h_b/lin start at 128-aligned lane offsets.
        out_ref[...] = jnp.concatenate([h_f, h_b, lin], axis=1)

    return kernel


# --------------------------------- wrapper -----------------------------------

def msved_encoder_forward(input_ids, params):
    """input_ids: (B, T) int32 token ids.
    Returns (mean (B, nz), logvar (B, nz), last_state (B, 1, 2*nh))."""
    B, T = input_ids.shape
    NI = params["embed"].shape[1]
    NH = params["whh_f"].shape[0]
    NZ = params["blin"].shape[-1] // 2
    nh_p = _round_up(NH, 128)
    f32 = jnp.float32

    def pad_gate_cols(w):
        # (..., 3*NH) -> (..., 3*nh_p), zero-padding each gate block separately.
        lead = w.shape[:-1]
        w3 = w.astype(f32).reshape(lead + (3, NH))
        w3 = jnp.pad(w3, [(0, 0)] * len(lead) + [(0, 0), (0, nh_p - NH)])
        return w3.reshape(lead + (3 * nh_p,))

    def pad_rows(w):
        # (NH, X) -> (nh_p, X), zero rows for the padded hidden lanes.
        return jnp.pad(w, [(0, nh_p - NH), (0, 0)])

    # Combined input projection for both directions, input biases folded in once.
    w_in = jnp.concatenate([pad_gate_cols(params["wih_f"]),
                            pad_gate_cols(params["wih_b"])], axis=1)   # (NI, 6*nh_p)
    b_in = jnp.concatenate([pad_gate_cols(params["bih_f"]),
                            pad_gate_cols(params["bih_b"])], axis=1)   # (1, 6*nh_p)

    whh_f = pad_rows(pad_gate_cols(params["whh_f"]))                    # (nh_p, 3*nh_p)
    whh_b = pad_rows(pad_gate_cols(params["whh_b"]))
    bhh_f = pad_gate_cols(params["bhh_f"])                              # (1, 3*nh_p)
    bhh_b = pad_gate_cols(params["bhh_b"])

    # Final linear: rows laid out as [h_f(nh_p) | h_b(nh_p)], padded rows are zero.
    wlin = params["wlin"].astype(f32).reshape(2, NH, 2 * NZ)
    wlin = jnp.pad(wlin, [(0, 0), (0, nh_p - NH), (0, 0)]).reshape(2 * nh_p, 2 * NZ)
    blin = params["blin"].astype(f32)                                   # (1, 2*NZ)

    # Embedding gather directly in time-major order (no extra HBM transpose pass).
    # Dropout(enc_dropout_in) is identity in eval mode.
    x = jnp.take(params["embed"].astype(f32), input_ids.T, axis=0)      # (T, B, NI)
    x = x.reshape(T * B, NI)

    kernel = _make_encoder_kernel(T, B, nh_p)
    vmem = pl.BlockSpec(memory_space=pltpu.MemorySpace.VMEM)

    slab = pl.pallas_call(
        kernel,
        out_shape=jax.ShapeDtypeStruct((B, 2 * nh_p + 2 * NZ), jnp.float32),
        in_specs=[vmem] * 9,
        out_specs=vmem,
        scratch_shapes=[pltpu.VMEM((T * B, 6 * nh_p), jnp.float32)],
    )(x, w_in, b_in, whh_f, bhh_f, whh_b, bhh_b, wlin, blin)

    h_f = slab[:, :NH]
    h_b = slab[:, nh_p:nh_p + NH]
    lin = slab[:, 2 * nh_p:]
    mean, logvar = lin[:, :NZ], lin[:, NZ:]
    # torch: cat(...).unsqueeze(0).permute(1, 0, 2) -> (B, 1, 2*nh)
    last_state = jnp.concatenate([h_f, h_b], axis=-1)[:, None, :]
    return mean, logvar, last_state


# ------------------------------ pure-JAX reference ---------------------------

def ref_forward(input_ids, params):
    emb = jnp.take(params["embed"], input_ids, axis=0).astype(jnp.float32)
    B, T, _ = emb.shape
    nh = params["whh_f"].shape[0]

    def step(h, x_t, wih, whh, bih, bhh):
        gx = x_t @ wih + bih[0]
        gh = h @ whh + bhh[0]
        r = jax.nn.sigmoid(gx[:, :nh] + gh[:, :nh])
        z = jax.nn.sigmoid(gx[:, nh:2 * nh] + gh[:, nh:2 * nh])
        n = jnp.tanh(gx[:, 2 * nh:] + r * gh[:, 2 * nh:])
        return (1.0 - z) * n + z * h

    h_f = jnp.zeros((B, nh), jnp.float32)
    for t in range(T):
        h_f = step(h_f, emb[:, t], params["wih_f"], params["whh_f"],
                   params["bih_f"], params["bhh_f"])
    h_b = jnp.zeros((B, nh), jnp.float32)
    for t in range(T - 1, -1, -1):
        h_b = step(h_b, emb[:, t], params["wih_b"], params["whh_b"],
                   params["bih_b"], params["bhh_b"])
    hcat = jnp.concatenate([h_f, h_b], axis=1)
    out = hcat @ params["wlin"] + params["blin"][0]
    nz = out.shape[1] // 2
    return out[:, :nz], out[:, nz:], hcat[:, None, :]


# ----------------------------------- main -------------------------------------

if __name__ == "__main__":
    # Small, deterministic config (mirrors args.ni / args.enc_nh / args.nz).
    VOCAB, B, T = 20, 2, 8
    NI, NH, NZ = 32, 32, 16

    key = jax.random.PRNGKey(0)
    keys = jax.random.split(key, 12)

    def u(k, shape, s=0.1):
        return jax.random.uniform(k, shape, jnp.float32, -s, s)

    # model_init / emb_init ~ uniform(-0.1, 0.1), deterministic.
    params = {
        "embed": u(keys[0], (VOCAB, NI)),
        # forward-direction GRU (weights stored (in, out); gate order r,z,n)
        "wih_f": u(keys[1], (NI, 3 * NH)),
        "whh_f": u(keys[2], (NH, 3 * NH)),
        "bih_f": u(keys[3], (1, 3 * NH)),
        "bhh_f": u(keys[4], (1, 3 * NH)),
        # backward-direction GRU
        "wih_b": u(keys[5], (NI, 3 * NH)),
        "whh_b": u(keys[6], (NH, 3 * NH)),
        "bih_b": u(keys[7], (1, 3 * NH)),
        "bhh_b": u(keys[8], (1, 3 * NH)),
        # final linear: (2*NH) -> (2*NZ)
        "wlin": u(keys[9], (2 * NH, 2 * NZ)),
        "blin": u(keys[10], (1, 2 * NZ)),
    }

    input_ids = jax.random.randint(keys[11], (B, T), 0, VOCAB, dtype=jnp.int32)

    mean, logvar, last_state = msved_encoder_forward(input_ids, params)
    jax.block_until_ready((mean, logvar, last_state))

    # sanity check against pure-JAX reference
    r_mean, r_logvar, r_last = ref_forward(input_ids, params)
    assert mean.shape == (B, NZ) and logvar.shape == (B, NZ)
    assert last_state.shape == (B, 1, 2 * NH)
    assert jnp.allclose(mean, r_mean, atol=2e-5)
    assert jnp.allclose(logvar, r_logvar, atol=2e-5)
    assert jnp.allclose(last_state, r_last, atol=2e-5)

    print("KERNEL_OK")
</pallas_src>

<mosaic_0001>
module attributes {stable_mosaic.version = 11 : i64} {
  func.func @kernel(%arg0: memref<16x32xf32, #tpu.memory_space<vmem>>, %arg1: memref<32x768xf32, #tpu.memory_space<vmem>>, %arg2: memref<1x768xf32, #tpu.memory_space<vmem>>, %arg3: memref<128x384xf32, #tpu.memory_space<vmem>>, %arg4: memref<1x384xf32, #tpu.memory_space<vmem>>, %arg5: memref<128x384xf32, #tpu.memory_space<vmem>>, %arg6: memref<1x384xf32, #tpu.memory_space<vmem>>, %arg7: memref<256x32xf32, #tpu.memory_space<vmem>>, %arg8: memref<1x32xf32, #tpu.memory_space<vmem>>, %arg9: memref<2x288xf32, #tpu.memory_space<vmem>>, %arg10: memref<16x768xf32, #tpu.memory_space<vmem>>) attributes {dimension_semantics = [], scalar_prefetch = 0 : i64, scratch_operands = 1 : i64, tpu.core_type = #tpu.core_type<tc>} {
    %c0 = arith.constant 0 : index
    %c0_0 = arith.constant 0 : index
    %0 = vector.load %arg0[%c0, %c0_0] : memref<16x32xf32, #tpu.memory_space<vmem>>, vector<16x32xf32>
    %c0_1 = arith.constant 0 : index
    %c0_2 = arith.constant 0 : index
    %1 = vector.load %arg1[%c0_1, %c0_2] : memref<32x768xf32, #tpu.memory_space<vmem>>, vector<32x768xf32>
    %cst = arith.constant dense<0.000000e+00> : vector<16x768xf32>
    %2 = tpu.matmul %0, %1, %cst {dimension_numbers = #tpu.dot_dimension_numbers<[1], [0], [0], [1], [0, 0, 1, 1], [], []>} : vector<16x32xf32>, vector<32x768xf32>, vector<16x768xf32> -> vector<16x768xf32>
    %c0_3 = arith.constant 0 : index
    %c0_4 = arith.constant 0 : index
    %3 = vector.load %arg2[%c0_3, %c0_4] : memref<1x768xf32, #tpu.memory_space<vmem>>, vector<1x768xf32>
    %4 = vector.broadcast %3 : vector<1x768xf32> to vector<16x768xf32>
    %5 = arith.addf %2, %4 : vector<16x768xf32>
    %c0_5 = arith.constant 0 : index
    %c0_6 = arith.constant 0 : index
    %6 = vector.load %arg10[%c0_5, %c0_6] : memref<16x768xf32, #tpu.memory_space<vmem>>, vector<16x768xf32>
    tpu.vector_store %arg10[%c0_5, %c0_6], %5 {strides = array<i32>} : memref<16x768xf32, #tpu.memory_space<vmem>>, vector<16x768xf32>,
    %c0_7 = arith.constant 0 : index
    %c0_8 = arith.constant 0 : index
    %7 = vector.load %arg3[%c0_7, %c0_8] : memref<128x384xf32, #tpu.memory_space<vmem>>, vector<128x384xf32>
    %c0_9 = arith.constant 0 : index
    %c0_10 = arith.constant 0 : index
    %8 = vector.load %arg4[%c0_9, %c0_10] : memref<1x384xf32, #tpu.memory_space<vmem>>, vector<1x384xf32>
    %c0_11 = arith.constant 0 : index
    %c0_12 = arith.constant 0 : index
    %9 = vector.load %arg5[%c0_11, %c0_12] : memref<128x384xf32, #tpu.memory_space<vmem>>, vector<128x384xf32>
    %c0_13 = arith.constant 0 : index
    %c0_14 = arith.constant 0 : index
    %10 = vector.load %arg6[%c0_13, %c0_14] : memref<1x384xf32, #tpu.memory_space<vmem>>, vector<1x384xf32>
    %cst_15 = arith.constant 0.000000e+00 : f32
    %11 = vector.broadcast %cst_15 : f32 to vector<2x128xf32>
    %c0_i32 = arith.constant 0 : i32
    %c2_i32 = arith.constant 2 : i32
    %12 = arith.muli %c0_i32, %c2_i32 : i32
    %13 = arith.index_cast %12 : i32 to index
    %c0_16 = arith.constant 0 : index
    %14 = vector.load %arg10[%13, %c0_16] : memref<16x768xf32, #tpu.memory_space<vmem>>, vector<2x384xf32>
    %c7_i32 = arith.constant 7 : i32
    %15 = arith.subi %c7_i32, %c0_i32 : i32
    %c2_i32_17 = arith.constant 2 : i32
    %16 = arith.muli %15, %c2_i32_17 : i32
    %17 = arith.index_cast %16 : i32 to index
    %c384 = arith.constant 384 : index
    %18 = vector.load %arg10[%17, %c384] : memref<16x768xf32, #tpu.memory_space<vmem>>, vector<2x384xf32>
    %cst_18 = arith.constant dense<0.000000e+00> : vector<2x384xf32>
    %19 = tpu.matmul %11, %7, %cst_18 {dimension_numbers = #tpu.dot_dimension_numbers<[1], [0], [0], [1], [0, 0, 1, 1], [], []>} : vector<2x128xf32>, vector<128x384xf32>, vector<2x384xf32> -> vector<2x384xf32>
    %20 = vector.broadcast %8 : vector<1x384xf32> to vector<2x384xf32>
    %21 = arith.addf %19, %20 : vector<2x384xf32>
    %22 = vector.extract_strided_slice %14 {offsets = [0, 0], sizes = [2, 128], strides = [1, 1]} : vector<2x384xf32> to vector<2x128xf32>
    %23 = vector.extract_strided_slice %21 {offsets = [0, 0], sizes = [2, 128], strides = [1, 1]} : vector<2x384xf32> to vector<2x128xf32>
    %24 = arith.addf %22, %23 : vector<2x128xf32>
    %25 = arith.negf %24 : vector<2x128xf32>
    %26 = math.exp %25 : vector<2x128xf32>
    %cst_19 = arith.constant 1.000000e+00 : f32
    %27 = vector.broadcast %cst_19 : f32 to vector<2x128xf32>
    %28 = arith.addf %27, %26 : vector<2x128xf32>
    %29 = arith.divf %27, %28 : vector<2x128xf32>
    %30 = vector.extract_strided_slice %14 {offsets = [0, 128], sizes = [2, 128], strides = [1, 1]} : vector<2x384xf32> to vector<2x128xf32>
    %31 = vector.extract_strided_slice %21 {offsets = [0, 128], sizes = [2, 128], strides = [1, 1]} : vector<2x384xf32> to vector<2x128xf32>
    %32 = arith.addf %30, %31 : vector<2x128xf32>
    %33 = arith.negf %32 : vector<2x128xf32>
    %34 = math.exp %33 : vector<2x128xf32>
    %cst_20 = arith.constant 1.000000e+00 : f32
    %35 = vector.broadcast %cst_20 : f32 to vector<2x128xf32>
    %36 = arith.addf %35, %34 : vector<2x128xf32>
    %37 = arith.divf %35, %36 : vector<2x128xf32>
    %38 = vector.extract_strided_slice %14 {offsets = [0, 256], sizes = [2, 128], strides = [1, 1]} : vector<2x384xf32> to vector<2x128xf32>
    %39 = vector.extract_strided_slice %21 {offsets = [0, 256], sizes = [2, 128], strides = [1, 1]} : vector<2x384xf32> to vector<2x128xf32>
    %40 = arith.mulf %29, %39 : vector<2x128xf32>
    %41 = arith.addf %38, %40 : vector<2x128xf32>
    %42 = math.tanh %41 : vector<2x128xf32>
    %cst_21 = arith.constant 1.000000e+00 : f32
    %43 = vector.broadcast %cst_21 : f32 to vector<2x128xf32>
    %44 = arith.subf %43, %37 : vector<2x128xf32>
    %45 = arith.mulf %44, %42 : vector<2x128xf32>
    %46 = arith.mulf %37, %11 : vector<2x128xf32>
    %47 = arith.addf %45, %46 : vector<2x128xf32>
    %cst_22 = arith.constant dense<0.000000e+00> : vector<2x384xf32>
    %48 = tpu.matmul %11, %9, %cst_22 {dimension_numbers = #tpu.dot_dimension_numbers<[1], [0], [0], [1], [0, 0, 1, 1], [], []>} : vector<2x128xf32>, vector<128x384xf32>, vector<2x384xf32> -> vector<2x384xf32>
    %49 = vector.broadcast %10 : vector<1x384xf32> to vector<2x384xf32>
    %50 = arith.addf %48, %49 : vector<2x384xf32>
    %51 = vector.extract_strided_slice %18 {offsets = [0, 0], sizes = [2, 128], strides = [1, 1]} : vector<2x384xf32> to vector<2x128xf32>
    %52 = vector.extract_strided_slice %50 {offsets = [0, 0], sizes = [2, 128], strides = [1, 1]} : vector<2x384xf32> to vector<2x128xf32>
    %53 = arith.addf %51, %52 : vector<2x128xf32>
    %54 = arith.negf %53 : vector<2x128xf32>
    %55 = math.exp %54 : vector<2x128xf32>
    %cst_23 = arith.constant 1.000000e+00 : f32
    %56 = vector.broadcast %cst_23 : f32 to vector<2x128xf32>
    %57 = arith.addf %56, %55 : vector<2x128xf32>
    %58 = arith.divf %56, %57 : vector<2x128xf32>
    %59 = vector.extract_strided_slice %18 {offsets = [0, 128], sizes = [2, 128], strides = [1, 1]} : vector<2x384xf32> to vector<2x128xf32>
    %60 = vector.extract_strided_slice %50 {offsets = [0, 128], sizes = [2, 128], strides = [1, 1]} : vector<2x384xf32> to vector<2x128xf32>
    %61 = arith.addf %59, %60 : vector<2x128xf32>
    %62 = arith.negf %61 : vector<2x128xf32>
    %63 = math.exp %62 : vector<2x128xf32>
    %cst_24 = arith.constant 1.000000e+00 : f32
    %64 = vector.broadcast %cst_24 : f32 to vector<2x128xf32>
    %65 = arith.addf %64, %63 : vector<2x128xf32>
    %66 = arith.divf %64, %65 : vector<2x128xf32>
    %67 = vector.extract_strided_slice %18 {offsets = [0, 256], sizes = [2, 128], strides = [1, 1]} : vector<2x384xf32> to vector<2x128xf32>
    %68 = vector.extract_strided_slice %50 {offsets = [0, 256], sizes = [2, 128], strides = [1, 1]} : vector<2x384xf32> to vector<2x128xf32>
    %69 = arith.mulf %58, %68 : vector<2x128xf32>
    %70 = arith.addf %67, %69 : vector<2x128xf32>
    %71 = math.tanh %70 : vector<2x128xf32>
    %cst_25 = arith.constant 1.000000e+00 : f32
    %72 = vector.broadcast %cst_25 : f32 to vector<2x128xf32>
    %73 = arith.subf %72, %66 : vector<2x128xf32>
    %74 = arith.mulf %73, %71 : vector<2x128xf32>
    %75 = arith.mulf %66, %11 : vector<2x128xf32>
    %76 = arith.addf %74, %75 : vector<2x128xf32>
    %c1_i32 = arith.constant 1 : i32
    %c2_i32_26 = arith.constant 2 : i32
    %77 = arith.muli %c1_i32, %c2_i32_26 : i32
    %78 = arith.index_cast %77 : i32 to index
    %c0_27 = arith.constant 0 : index
    %79 = vector.load %arg10[%78, %c0_27] : memref<16x768xf32, #tpu.memory_space<vmem>>, vector<2x384xf32>
    %c7_i32_28 = arith.constant 7 : i32
    %80 = arith.subi %c7_i32_28, %c1_i32 : i32
    %c2_i32_29 = arith.constant 2 : i32
    %81 = arith.muli %80, %c2_i32_29 : i32
    %82 = arith.index_cast %81 : i32 to index
    %c384_30 = arith.constant 384 : index
    %83 = vector.load %arg10[%82, %c384_30] : memref<16x768xf32, #tpu.memory_space<vmem>>, vector<2x384xf32>
    %cst_31 = arith.constant dense<0.000000e+00> : vector<2x384xf32>
    %84 = tpu.matmul %47, %7, %cst_31 {dimension_numbers = #tpu.dot_dimension_numbers<[1], [0], [0], [1], [0, 0, 1, 1], [], []>} : vector<2x128xf32>, vector<128x384xf32>, vector<2x384xf32> -> vector<2x384xf32>
    %85 = vector.broadcast %8 : vector<1x384xf32> to vector<2x384xf32>
    %86 = arith.addf %84, %85 : vector<2x384xf32>
    %87 = vector.extract_strided_slice %79 {offsets = [0, 0], sizes = [2, 128], strides = [1, 1]} : vector<2x384xf32> to vector<2x128xf32>
    %88 = vector.extract_strided_slice %86 {offsets = [0, 0], sizes = [2, 128], strides = [1, 1]} : vector<2x384xf32> to vector<2x128xf32>
    %89 = arith.addf %87, %88 : vector<2x128xf32>
    %90 = arith.negf %89 : vector<2x128xf32>
    %91 = math.exp %90 : vector<2x128xf32>
    %cst_32 = arith.constant 1.000000e+00 : f32
    %92 = vector.broadcast %cst_32 : f32 to vector<2x128xf32>
    %93 = arith.addf %92, %91 : vector<2x128xf32>
    %94 = arith.divf %92, %93 : vector<2x128xf32>
    %95 = vector.extract_strided_slice %79 {offsets = [0, 128], sizes = [2, 128], strides = [1, 1]} : vector<2x384xf32> to vector<2x128xf32>
    %96 = vector.extract_strided_slice %86 {offsets = [0, 128], sizes = [2, 128], strides = [1, 1]} : vector<2x384xf32> to vector<2x128xf32>
    %97 = arith.addf %95, %96 : vector<2x128xf32>
    %98 = arith.negf %97 : vector<2x128xf32>
    %99 = math.exp %98 : vector<2x128xf32>
    %cst_33 = arith.constant 1.000000e+00 : f32
    %100 = vector.broadcast %cst_33 : f32 to vector<2x128xf32>
    %101 = arith.addf %100, %99 : vector<2x128xf32>
    %102 = arith.divf %100, %101 : vector<2x128xf32>
    %103 = vector.extract_strided_slice %79 {offsets = [0, 256], sizes = [2, 128], strides = [1, 1]} : vector<2x384xf32> to vector<2x128xf32>
    %104 = vector.extract_strided_slice %86 {offsets = [0, 256], sizes = [2, 128], strides = [1, 1]} : vector<2x384xf32> to vector<2x128xf32>
    %105 = arith.mulf %94, %104 : vector<2x128xf32>
    %106 = arith.addf %103, %105 : vector<2x128xf32>
    %107 = math.tanh %106 : vector<2x128xf32>
    %cst_34 = arith.constant 1.000000e+00 : f32
    %108 = vector.broadcast %cst_34 : f32 to vector<2x128xf32>
    %109 = arith.subf %108, %102 : vector<2x128xf32>
    %110 = arith.mulf %109, %107 : vector<2x128xf32>
    %111 = arith.mulf %102, %47 : vector<2x128xf32>
    %112 = arith.addf %110, %111 : vector<2x128xf32>
    %cst_35 = arith.constant dense<0.000000e+00> : vector<2x384xf32>
    %113 = tpu.matmul %76, %9, %cst_35 {dimension_numbers = #tpu.dot_dimension_numbers<[1], [0], [0], [1], [0, 0, 1, 1], [], []>} : vector<2x128xf32>, vector<128x384xf32>, vector<2x384xf32> -> vector<2x384xf32>
    %114 = vector.broadcast %10 : vector<1x384xf32> to vector<2x384xf32>
    %115 = arith.addf %113, %114 : vector<2x384xf32>
    %116 = vector.extract_strided_slice %83 {offsets = [0, 0], sizes = [2, 128], strides = [1, 1]} : vector<2x384xf32> to vector<2x128xf32>
    %117 = vector.extract_strided_slice %115 {offsets = [0, 0], sizes = [2, 128], strides = [1, 1]} : vector<2x384xf32> to vector<2x128xf32>
    %118 = arith.addf %116, %117 : vector<2x128xf32>
    %119 = arith.negf %118 : vector<2x128xf32>
    %120 = math.exp %119 : vector<2x128xf32>
    %cst_36 = arith.constant 1.000000e+00 : f32
    %121 = vector.broadcast %cst_36 : f32 to vector<2x128xf32>
    %122 = arith.addf %121, %120 : vector<2x128xf32>
    %123 = arith.divf %121, %122 : vector<2x128xf32>
    %124 = vector.extract_strided_slice %83 {offsets = [0, 128], sizes = [2, 128], strides = [1, 1]} : vector<2x384xf32> to vector<2x128xf32>
    %125 = vector.extract_strided_slice %115 {offsets = [0, 128], sizes = [2, 128], strides = [1, 1]} : vector<2x384xf32> to vector<2x128xf32>
    %126 = arith.addf %124, %125 : vector<2x128xf32>
    %127 = arith.negf %126 : vector<2x128xf32>
    %128 = math.exp %127 : vector<2x128xf32>
    %cst_37 = arith.constant 1.000000e+00 : f32
    %129 = vector.broadcast %cst_37 : f32 to vector<2x128xf32>
    %130 = arith.addf %129, %128 : vector<2x128xf32>
    %131 = arith.divf %129, %130 : vector<2x128xf32>
    %132 = vector.extract_strided_slice %83 {offsets = [0, 256], sizes = [2, 128], strides = [1, 1]} : vector<2x384xf32> to vector<2x128xf32>
    %133 = vector.extract_strided_slice %115 {offsets = [0, 256], sizes = [2, 128], strides = [1, 1]} : vector<2x384xf32> to vector<2x128xf32>
    %134 = arith.mulf %123, %133 : vector<2x128xf32>
    %135 = arith.addf %132, %134 : vector<2x128xf32>
    %136 = math.tanh %135 : vector<2x128xf32>
    %cst_38 = arith.constant 1.000000e+00 : f32
    %137 = vector.broadcast %cst_38 : f32 to vector<2x128xf32>
    %138 = arith.subf %137, %131 : vector<2x128xf32>
    %139 = arith.mulf %138, %136 : vector<2x128xf32>
    %140 = arith.mulf %131, %76 : vector<2x128xf32>
    %141 = arith.addf %139, %140 : vector<2x128xf32>
    %c2_i32_39 = arith.constant 2 : i32
    %c2_i32_40 = arith.constant 2 : i32
    %142 = arith.muli %c2_i32_39, %c2_i32_40 : i32
    %143 = arith.index_cast %142 : i32 to index
    %c0_41 = arith.constant 0 : index
    %144 = vector.load %arg10[%143, %c0_41] : memref<16x768xf32, #tpu.memory_space<vmem>>, vector<2x384xf32>
    %c7_i32_42 = arith.constant 7 : i32
    %145 = arith.subi %c7_i32_42, %c2_i32_39 : i32
    %c2_i32_43 = arith.constant 2 : i32
    %146 = arith.muli %145, %c2_i32_43 : i32
    %147 = arith.index_cast %146 : i32 to index
    %c384_44 = arith.constant 384 : index
    %148 = vector.load %arg10[%147, %c384_44] : memref<16x768xf32, #tpu.memory_space<vmem>>, vector<2x384xf32>
    %cst_45 = arith.constant dense<0.000000e+00> : vector<2x384xf32>
    %149 = tpu.matmul %112, %7, %cst_45 {dimension_numbers = #tpu.dot_dimension_numbers<[1], [0], [0], [1], [0, 0, 1, 1], [], []>} : vector<2x128xf32>, vector<128x384xf32>, vector<2x384xf32> -> vector<2x384xf32>
    %150 = vector.broadcast %8 : vector<1x384xf32> to vector<2x384xf32>
    %151 = arith.addf %149, %150 : vector<2x384xf32>
    %152 = vector.extract_strided_slice %144 {offsets = [0, 0], sizes = [2, 128], strides = [1, 1]} : vector<2x384xf32> to vector<2x128xf32>
    %153 = vector.extract_strided_slice %151 {offsets = [0, 0], sizes = [2, 128], strides = [1, 1]} : vector<2x384xf32> to vector<2x128xf32>
    %154 = arith.addf %152, %153 : vector<2x128xf32>
    %155 = arith.negf %154 : vector<2x128xf32>
    %156 = math.exp %155 : vector<2x128xf32>
    %cst_46 = arith.constant 1.000000e+00 : f32
    %157 = vector.broadcast %cst_46 : f32 to vector<2x128xf32>
    %158 = arith.addf %157, %156 : vector<2x128xf32>
    %159 = arith.divf %157, %158 : vector<2x128xf32>
    %160 = vector.extract_strided_slice %144 {offsets = [0, 128], sizes = [2, 128], strides = [1, 1]} : vector<2x384xf32> to vector<2x128xf32>
    %161 = vector.extract_strided_slice %151 {offsets = [0, 128], sizes = [2, 128], strides = [1, 1]} : vector<2x384xf32> to vector<2x128xf32>
    %162 = arith.addf %160, %161 : vector<2x128xf32>
    %163 = arith.negf %162 : vector<2x128xf32>
    %164 = math.exp %163 : vector<2x128xf32>
    %cst_47 = arith.constant 1.000000e+00 : f32
    %165 = vector.broadcast %cst_47 : f32 to vector<2x128xf32>
    %166 = arith.addf %165, %164 : vector<2x128xf32>
    %167 = arith.divf %165, %166 : vector<2x128xf32>
    %168 = vector.extract_strided_slice %144 {offsets = [0, 256], sizes = [2, 128], strides = [1, 1]} : vector<2x384xf32> to vector<2x128xf32>
    %169 = vector.extract_strided_slice %151 {offsets = [0, 256], sizes = [2, 128], strides = [1, 1]} : vector<2x384xf32> to vector<2x128xf32>
    %170 = arith.mulf %159, %169 : vector<2x128xf32>
    %171 = arith.addf %168, %170 : vector<2x128xf32>
    %172 = math.tanh %171 : vector<2x128xf32>
    %cst_48 = arith.constant 1.000000e+00 : f32
    %173 = vector.broadcast %cst_48 : f32 to vector<2x128xf32>
    %174 = arith.subf %173, %167 : vector<2x128xf32>
    %175 = arith.mulf %174, %172 : vector<2x128xf32>
    %176 = arith.mulf %167, %112 : vector<2x128xf32>
    %177 = arith.addf %175, %176 : vector<2x128xf32>
    %cst_49 = arith.constant dense<0.000000e+00> : vector<2x384xf32>
    %178 = tpu.matmul %141, %9, %cst_49 {dimension_numbers = #tpu.dot_dimension_numbers<[1], [0], [0], [1], [0, 0, 1, 1], [], []>} : vector<2x128xf32>, vector<128x384xf32>, vector<2x384xf32> -> vector<2x384xf32>
    %179 = vector.broadcast %10 : vector<1x384xf32> to vector<2x384xf32>
    %180 = arith.addf %178, %179 : vector<2x384xf32>
    %181 = vector.extract_strided_slice %148 {offsets = [0, 0], sizes = [2, 128], strides = [1, 1]} : vector<2x384xf32> to vector<2x128xf32>
    %182 = vector.extract_strided_slice %180 {offsets = [0, 0], sizes = [2, 128], strides = [1, 1]} : vector<2x384xf32> to vector<2x128xf32>
    %183 = arith.addf %181, %182 : vector<2x128xf32>
    %184 = arith.negf %183 : vector<2x128xf32>
    %185 = math.exp %184 : vector<2x128xf32>
    %cst_50 = arith.constant 1.000000e+00 : f32
    %186 = vector.broadcast %cst_50 : f32 to vector<2x128xf32>
    %187 = arith.addf %186, %185 : vector<2x128xf32>
    %188 = arith.divf %186, %187 : vector<2x128xf32>
    %189 = vector.extract_strided_slice %148 {offsets = [0, 128], sizes = [2, 128], strides = [1, 1]} : vector<2x384xf32> to vector<2x128xf32>
    %190 = vector.extract_strided_slice %180 {offsets = [0, 128], sizes = [2, 128], strides = [1, 1]} : vector<2x384xf32> to vector<2x128xf32>
    %191 = arith.addf %189, %190 : vector<2x128xf32>
    %192 = arith.negf %191 : vector<2x128xf32>
    %193 = math.exp %192 : vector<2x128xf32>
    %cst_51 = arith.constant 1.000000e+00 : f32
    %194 = vector.broadcast %cst_51 : f32 to vector<2x128xf32>
    %195 = arith.addf %194, %193 : vector<2x128xf32>
    %196 = arith.divf %194, %195 : vector<2x128xf32>
    %197 = vector.extract_strided_slice %148 {offsets = [0, 256], sizes = [2, 128], strides = [1, 1]} : vector<2x384xf32> to vector<2x128xf32>
    %198 = vector.extract_strided_slice %180 {offsets = [0, 256], sizes = [2, 128], strides = [1, 1]} : vector<2x384xf32> to vector<2x128xf32>
    %199 = arith.mulf %188, %198 : vector<2x128xf32>
    %200 = arith.addf %197, %199 : vector<2x128xf32>
    %201 = math.tanh %200 : vector<2x128xf32>
    %cst_52 = arith.constant 1.000000e+00 : f32
    %202 = vector.broadcast %cst_52 : f32 to vector<2x128xf32>
    %203 = arith.subf %202, %196 : vector<2x128xf32>
    %204 = arith.mulf %203, %201 : vector<2x128xf32>
    %205 = arith.mulf %196, %141 : vector<2x128xf32>
    %206 = arith.addf %204, %205 : vector<2x128xf32>
    %c3_i32 = arith.constant 3 : i32
    %c2_i32_53 = arith.constant 2 : i32
    %207 = arith.muli %c3_i32, %c2_i32_53 : i32
    %208 = arith.index_cast %207 : i32 to index
    %c0_54 = arith.constant 0 : index
    %209 = vector.load %arg10[%208, %c0_54] : memref<16x768xf32, #tpu.memory_space<vmem>>, vector<2x384xf32>
    %c7_i32_55 = arith.constant 7 : i32
    %210 = arith.subi %c7_i32_55, %c3_i32 : i32
    %c2_i32_56 = arith.constant 2 : i32
    %211 = arith.muli %210, %c2_i32_56 : i32
    %212 = arith.index_cast %211 : i32 to index
    %c384_57 = arith.constant 384 : index
    %213 = vector.load %arg10[%212, %c384_57] : memref<16x768xf32, #tpu.memory_space<vmem>>, vector<2x384xf32>
    %cst_58 = arith.constant dense<0.000000e+00> : vector<2x384xf32>
    %214 = tpu.matmul %177, %7, %cst_58 {dimension_numbers = #tpu.dot_dimension_numbers<[1], [0], [0], [1], [0, 0, 1, 1], [], []>} : vector<2x128xf32>, vector<128x384xf32>, vector<2x384xf32> -> vector<2x384xf32>
    %215 = vector.broadcast %8 : vector<1x384xf32> to vector<2x384xf32>
    %216 = arith.addf %214, %215 : vector<2x384xf32>
    %217 = vector.extract_strided_slice %209 {offsets = [0, 0], sizes = [2, 128], strides = [1, 1]} : vector<2x384xf32> to vector<2x128xf32>
    %218 = vector.extract_strided_slice %216 {offsets = [0, 0], sizes = [2, 128], strides = [1, 1]} : vector<2x384xf32> to vector<2x128xf32>
    %219 = arith.addf %217, %218 : vector<2x128xf32>
    %220 = arith.negf %219 : vector<2x128xf32>
    %221 = math.exp %220 : vector<2x128xf32>
    %cst_59 = arith.constant 1.000000e+00 : f32
    %222 = vector.broadcast %cst_59 : f32 to vector<2x128xf32>
    %223 = arith.addf %222, %221 : vector<2x128xf32>
    %224 = arith.divf %222, %223 : vector<2x128xf32>
    %225 = vector.extract_strided_slice %209 {offsets = [0, 128], sizes = [2, 128], strides = [1, 1]} : vector<2x384xf32> to vector<2x128xf32>
    %226 = vector.extract_strided_slice %216 {offsets = [0, 128], sizes = [2, 128], strides = [1, 1]} : vector<2x384xf32> to vector<2x128xf32>
    %227 = arith.addf %225, %226 : vector<2x128xf32>
    %228 = arith.negf %227 : vector<2x128xf32>
    %229 = math.exp %228 : vector<2x128xf32>
    %cst_60 = arith.constant 1.000000e+00 : f32
    %230 = vector.broadcast %cst_60 : f32 to vector<2x128xf32>
    %231 = arith.addf %230, %229 : vector<2x128xf32>
    %232 = arith.divf %230, %231 : vector<2x128xf32>
    %233 = vector.extract_strided_slice %209 {offsets = [0, 256], sizes = [2, 128], strides = [1, 1]} : vector<2x384xf32> to vector<2x128xf32>
    %234 = vector.extract_strided_slice %216 {offsets = [0, 256], sizes = [2, 128], strides = [1, 1]} : vector<2x384xf32> to vector<2x128xf32>
    %235 = arith.mulf %224, %234 : vector<2x128xf32>
    %236 = arith.addf %233, %235 : vector<2x128xf32>
    %237 = math.tanh %236 : vector<2x128xf32>
    %cst_61 = arith.constant 1.000000e+00 : f32
    %238 = vector.broadcast %cst_61 : f32 to vector<2x128xf32>
    %239 = arith.subf %238, %232 : vector<2x128xf32>
    %240 = arith.mulf %239, %237 : vector<2x128xf32>
    %241 = arith.mulf %232, %177 : vector<2x128xf32>
    %242 = arith.addf %240, %241 : vector<2x128xf32>
    %cst_62 = arith.constant dense<0.000000e+00> : vector<2x384xf32>
    %243 = tpu.matmul %206, %9, %cst_62 {dimension_numbers = #tpu.dot_dimension_numbers<[1], [0], [0], [1], [0, 0, 1, 1], [], []>} : vector<2x128xf32>, vector<128x384xf32>, vector<2x384xf32> -> vector<2x384xf32>
    %244 = vector.broadcast %10 : vector<1x384xf32> to vector<2x384xf32>
    %245 = arith.addf %243, %244 : vector<2x384xf32>
    %246 = vector.extract_strided_slice %213 {offsets = [0, 0], sizes = [2, 128], strides = [1, 1]} : vector<2x384xf32> to vector<2x128xf32>
    %247 = vector.extract_strided_slice %245 {offsets = [0, 0], sizes = [2, 128], strides = [1, 1]} : vector<2x384xf32> to vector<2x128xf32>
    %248 = arith.addf %246, %247 : vector<2x128xf32>
    %249 = arith.negf %248 : vector<2x128xf32>
    %250 = math.exp %249 : vector<2x128xf32>
    %cst_63 = arith.constant 1.000000e+00 : f32
    %251 = vector.broadcast %cst_63 : f32 to vector<2x128xf32>
    %252 = arith.addf %251, %250 : vector<2x128xf32>
    %253 = arith.divf %251, %252 : vector<2x128xf32>
    %254 = vector.extract_strided_slice %213 {offsets = [0, 128], sizes = [2, 128], strides = [1, 1]} : vector<2x384xf32> to vector<2x128xf32>
    %255 = vector.extract_strided_slice %245 {offsets = [0, 128], sizes = [2, 128], strides = [1, 1]} : vector<2x384xf32> to vector<2x128xf32>
    %256 = arith.addf %254, %255 : vector<2x128xf32>
    %257 = arith.negf %256 : vector<2x128xf32>
    %258 = math.exp %257 : vector<2x128xf32>
    %cst_64 = arith.constant 1.000000e+00 : f32
    %259 = vector.broadcast %cst_64 : f32 to vector<2x128xf32>
    %260 = arith.addf %259, %258 : vector<2x128xf32>
    %261 = arith.divf %259, %260 : vector<2x128xf32>
    %262 = vector.extract_strided_slice %213 {offsets = [0, 256], sizes = [2, 128], strides = [1, 1]} : vector<2x384xf32> to vector<2x128xf32>
    %263 = vector.extract_strided_slice %245 {offsets = [0, 256], sizes = [2, 128], strides = [1, 1]} : vector<2x384xf32> to vector<2x128xf32>
    %264 = arith.mulf %253, %263 : vector<2x128xf32>
    %265 = arith.addf %262, %264 : vector<2x128xf32>
    %266 = math.tanh %265 : vector<2x128xf32>
    %cst_65 = arith.constant 1.000000e+00 : f32
    %267 = vector.broadcast %cst_65 : f32 to vector<2x128xf32>
    %268 = arith.subf %267, %261 : vector<2x128xf32>
    %269 = arith.mulf %268, %266 : vector<2x128xf32>
    %270 = arith.mulf %261, %206 : vector<2x128xf32>
    %271 = arith.addf %269, %270 : vector<2x128xf32>
    %c4_i32 = arith.constant 4 : i32
    %c2_i32_66 = arith.constant 2 : i32
    %272 = arith.muli %c4_i32, %c2_i32_66 : i32
    %273 = arith.index_cast %272 : i32 to index
    %c0_67 = arith.constant 0 : index
    %274 = vector.load %arg10[%273, %c0_67] : memref<16x768xf32, #tpu.memory_space<vmem>>, vector<2x384xf32>
    %c7_i32_68 = arith.constant 7 : i32
    %275 = arith.subi %c7_i32_68, %c4_i32 : i32
    %c2_i32_69 = arith.constant 2 : i32
    %276 = arith.muli %275, %c2_i32_69 : i32
    %277 = arith.index_cast %276 : i32 to index
    %c384_70 = arith.constant 384 : index
    %278 = vector.load %arg10[%277, %c384_70] : memref<16x768xf32, #tpu.memory_space<vmem>>, vector<2x384xf32>
    %cst_71 = arith.constant dense<0.000000e+00> : vector<2x384xf32>
    %279 = tpu.matmul %242, %7, %cst_71 {dimension_numbers = #tpu.dot_dimension_numbers<[1], [0], [0], [1], [0, 0, 1, 1], [], []>} : vector<2x128xf32>, vector<128x384xf32>, vector<2x384xf32> -> vector<2x384xf32>
    %280 = vector.broadcast %8 : vector<1x384xf32> to vector<2x384xf32>
    %281 = arith.addf %279, %280 : vector<2x384xf32>
    %282 = vector.extract_strided_slice %274 {offsets = [0, 0], sizes = [2, 128], strides = [1, 1]} : vector<2x384xf32> to vector<2x128xf32>
    %283 = vector.extract_strided_slice %281 {offsets = [0, 0], sizes = [2, 128], strides = [1, 1]} : vector<2x384xf32> to vector<2x128xf32>
    %284 = arith.addf %282, %283 : vector<2x128xf32>
    %285 = arith.negf %284 : vector<2x128xf32>
    %286 = math.exp %285 : vector<2x128xf32>
    %cst_72 = arith.constant 1.000000e+00 : f32
    %287 = vector.broadcast %cst_72 : f32 to vector<2x128xf32>
    %288 = arith.addf %287, %286 : vector<2x128xf32>
    %289 = arith.divf %287, %288 : vector<2x128xf32>
    %290 = vector.extract_strided_slice %274 {offsets = [0, 128], sizes = [2, 128], strides = [1, 1]} : vector<2x384xf32> to vector<2x128xf32>
    %291 = vector.extract_strided_slice %281 {offsets = [0, 128], sizes = [2, 128], strides = [1, 1]} : vector<2x384xf32> to vector<2x128xf32>
    %292 = arith.addf %290, %291 : vector<2x128xf32>
    %293 = arith.negf %292 : vector<2x128xf32>
    %294 = math.exp %293 : vector<2x128xf32>
    %cst_73 = arith.constant 1.000000e+00 : f32
    %295 = vector.broadcast %cst_73 : f32 to vector<2x128xf32>
    %296 = arith.addf %295, %294 : vector<2x128xf32>
    %297 = arith.divf %295, %296 : vector<2x128xf32>
    %298 = vector.extract_strided_slice %274 {offsets = [0, 256], sizes = [2, 128], strides = [1, 1]} : vector<2x384xf32> to vector<2x128xf32>
    %299 = vector.extract_strided_slice %281 {offsets = [0, 256], sizes = [2, 128], strides = [1, 1]} : vector<2x384xf32> to vector<2x128xf32>
    %300 = arith.mulf %289, %299 : vector<2x128xf32>
    %301 = arith.addf %298, %300 : vector<2x128xf32>
    %302 = math.tanh %301 : vector<2x128xf32>
    %cst_74 = arith.constant 1.000000e+00 : f32
    %303 = vector.broadcast %cst_74 : f32 to vector<2x128xf32>
    %304 = arith.subf %303, %297 : vector<2x128xf32>
    %305 = arith.mulf %304, %302 : vector<2x128xf32>
    %306 = arith.mulf %297, %242 : vector<2x128xf32>
    %307 = arith.addf %305, %306 : vector<2x128xf32>
    %cst_75 = arith.constant dense<0.000000e+00> : vector<2x384xf32>
    %308 = tpu.matmul %271, %9, %cst_75 {dimension_numbers = #tpu.dot_dimension_numbers<[1], [0], [0], [1], [0, 0, 1, 1], [], []>} : vector<2x128xf32>, vector<128x384xf32>, vector<2x384xf32> -> vector<2x384xf32>
    %309 = vector.broadcast %10 : vector<1x384xf32> to vector<2x384xf32>
    %310 = arith.addf %308, %309 : vector<2x384xf32>
    %311 = vector.extract_strided_slice %278 {offsets = [0, 0], sizes = [2, 128], strides = [1, 1]} : vector<2x384xf32> to vector<2x128xf32>
    %312 = vector.extract_strided_slice %310 {offsets = [0, 0], sizes = [2, 128], strides = [1, 1]} : vector<2x384xf32> to vector<2x128xf32>
    %313 = arith.addf %311, %312 : vector<2x128xf32>
    %314 = arith.negf %313 : vector<2x128xf32>
    %315 = math.exp %314 : vector<2x128xf32>
    %cst_76 = arith.constant 1.000000e+00 : f32
    %316 = vector.broadcast %cst_76 : f32 to vector<2x128xf32>
    %317 = arith.addf %316, %315 : vector<2x128xf32>
    %318 = arith.divf %316, %317 : vector<2x128xf32>
    %319 = vector.extract_strided_slice %278 {offsets = [0, 128], sizes = [2, 128], strides = [1, 1]} : vector<2x384xf32> to vector<2x128xf32>
    %320 = vector.extract_strided_slice %310 {offsets = [0, 128], sizes = [2, 128], strides = [1, 1]} : vector<2x384xf32> to vector<2x128xf32>
    %321 = arith.addf %319, %320 : vector<2x128xf32>
    %322 = arith.negf %321 : vector<2x128xf32>
    %323 = math.exp %322 : vector<2x128xf32>
    %cst_77 = arith.constant 1.000000e+00 : f32
    %324 = vector.broadcast %cst_77 : f32 to vector<2x128xf32>
    %325 = arith.addf %324, %323 : vector<2x128xf32>
    %326 = arith.divf %324, %325 : vector<2x128xf32>
    %327 = vector.extract_strided_slice %278 {offsets = [0, 256], sizes = [2, 128], strides = [1, 1]} : vector<2x384xf32> to vector<2x128xf32>
    %328 = vector.extract_strided_slice %310 {offsets = [0, 256], sizes = [2, 128], strides = [1, 1]} : vector<2x384xf32> to vector<2x128xf32>
    %329 = arith.mulf %318, %328 : vector<2x128xf32>
    %330 = arith.addf %327, %329 : vector<2x128xf32>
    %331 = math.tanh %330 : vector<2x128xf32>
    %cst_78 = arith.constant 1.000000e+00 : f32
    %332 = vector.broadcast %cst_78 : f32 to vector<2x128xf32>
    %333 = arith.subf %332, %326 : vector<2x128xf32>
    %334 = arith.mulf %333, %331 : vector<2x128xf32>
    %335 = arith.mulf %326, %271 : vector<2x128xf32>
    %336 = arith.addf %334, %335 : vector<2x128xf32>
    %c5_i32 = arith.constant 5 : i32
    %c2_i32_79 = arith.constant 2 : i32
    %337 = arith.muli %c5_i32, %c2_i32_79 : i32
    %338 = arith.index_cast %337 : i32 to index
    %c0_80 = arith.constant 0 : index
    %339 = vector.load %arg10[%338, %c0_80] : memref<16x768xf32, #tpu.memory_space<vmem>>, vector<2x384xf32>
    %c7_i32_81 = arith.constant 7 : i32
    %340 = arith.subi %c7_i32_81, %c5_i32 : i32
    %c2_i32_82 = arith.constant 2 : i32
    %341 = arith.muli %340, %c2_i32_82 : i32
    %342 = arith.index_cast %341 : i32 to index
    %c384_83 = arith.constant 384 : index
    %343 = vector.load %arg10[%342, %c384_83] : memref<16x768xf32, #tpu.memory_space<vmem>>, vector<2x384xf32>
    %cst_84 = arith.constant dense<0.000000e+00> : vector<2x384xf32>
    %344 = tpu.matmul %307, %7, %cst_84 {dimension_numbers = #tpu.dot_dimension_numbers<[1], [0], [0], [1], [0, 0, 1, 1], [], []>} : vector<2x128xf32>, vector<128x384xf32>, vector<2x384xf32> -> vector<2x384xf32>
    %345 = vector.broadcast %8 : vector<1x384xf32> to vector<2x384xf32>
    %346 = arith.addf %344, %345 : vector<2x384xf32>
    %347 = vector.extract_strided_slice %339 {offsets = [0, 0], sizes = [2, 128], strides = [1, 1]} : vector<2x384xf32> to vector<2x128xf32>
    %348 = vector.extract_strided_slice %346 {offsets = [0, 0], sizes = [2, 128], strides = [1, 1]} : vector<2x384xf32> to vector<2x128xf32>
    %349 = arith.addf %347, %348 : vector<2x128xf32>
    %350 = arith.negf %349 : vector<2x128xf32>
    %351 = math.exp %350 : vector<2x128xf32>
    %cst_85 = arith.constant 1.000000e+00 : f32
    %352 = vector.broadcast %cst_85 : f32 to vector<2x128xf32>
    %353 = arith.addf %352, %351 : vector<2x128xf32>
    %354 = arith.divf %352, %353 : vector<2x128xf32>
    %355 = vector.extract_strided_slice %339 {offsets = [0, 128], sizes = [2, 128], strides = [1, 1]} : vector<2x384xf32> to vector<2x128xf32>
    %356 = vector.extract_strided_slice %346 {offsets = [0, 128], sizes = [2, 128], strides = [1, 1]} : vector<2x384xf32> to vector<2x128xf32>
    %357 = arith.addf %355, %356 : vector<2x128xf32>
    %358 = arith.negf %357 : vector<2x128xf32>
    %359 = math.exp %358 : vector<2x128xf32>
    %cst_86 = arith.constant 1.000000e+00 : f32
    %360 = vector.broadcast %cst_86 : f32 to vector<2x128xf32>
    %361 = arith.addf %360, %359 : vector<2x128xf32>
    %362 = arith.divf %360, %361 : vector<2x128xf32>
    %363 = vector.extract_strided_slice %339 {offsets = [0, 256], sizes = [2, 128], strides = [1, 1]} : vector<2x384xf32> to vector<2x128xf32>
    %364 = vector.extract_strided_slice %346 {offsets = [0, 256], sizes = [2, 128], strides = [1, 1]} : vector<2x384xf32> to vector<2x128xf32>
    %365 = arith.mulf %354, %364 : vector<2x128xf32>
    %366 = arith.addf %363, %365 : vector<2x128xf32>
    %367 = math.tanh %366 : vector<2x128xf32>
    %cst_87 = arith.constant 1.000000e+00 : f32
    %368 = vector.broadcast %cst_87 : f32 to vector<2x128xf32>
    %369 = arith.subf %368, %362 : vector<2x128xf32>
    %370 = arith.mulf %369, %367 : vector<2x128xf32>
    %371 = arith.mulf %362, %307 : vector<2x128xf32>
    %372 = arith.addf %370, %371 : vector<2x128xf32>
    %cst_88 = arith.constant dense<0.000000e+00> : vector<2x384xf32>
    %373 = tpu.matmul %336, %9, %cst_88 {dimension_numbers = #tpu.dot_dimension_numbers<[1], [0], [0], [1], [0, 0, 1, 1], [], []>} : vector<2x128xf32>, vector<128x384xf32>, vector<2x384xf32> -> vector<2x384xf32>
    %374 = vector.broadcast %10 : vector<1x384xf32> to vector<2x384xf32>
    %375 = arith.addf %373, %374 : vector<2x384xf32>
    %376 = vector.extract_strided_slice %343 {offsets = [0, 0], sizes = [2, 128], strides = [1, 1]} : vector<2x384xf32> to vector<2x128xf32>
    %377 = vector.extract_strided_slice %375 {offsets = [0, 0], sizes = [2, 128], strides = [1, 1]} : vector<2x384xf32> to vector<2x128xf32>
    %378 = arith.addf %376, %377 : vector<2x128xf32>
    %379 = arith.negf %378 : vector<2x128xf32>
    %380 = math.exp %379 : vector<2x128xf32>
    %cst_89 = arith.constant 1.000000e+00 : f32
    %381 = vector.broadcast %cst_89 : f32 to vector<2x128xf32>
    %382 = arith.addf %381, %380 : vector<2x128xf32>
    %383 = arith.divf %381, %382 : vector<2x128xf32>
    %384 = vector.extract_strided_slice %343 {offsets = [0, 128], sizes = [2, 128], strides = [1, 1]} : vector<2x384xf32> to vector<2x128xf32>
    %385 = vector.extract_strided_slice %375 {offsets = [0, 128], sizes = [2, 128], strides = [1, 1]} : vector<2x384xf32> to vector<2x128xf32>
    %386 = arith.addf %384, %385 : vector<2x128xf32>
    %387 = arith.negf %386 : vector<2x128xf32>
    %388 = math.exp %387 : vector<2x128xf32>
    %cst_90 = arith.constant 1.000000e+00 : f32
    %389 = vector.broadcast %cst_90 : f32 to vector<2x128xf32>
    %390 = arith.addf %389, %388 : vector<2x128xf32>
    %391 = arith.divf %389, %390 : vector<2x128xf32>
    %392 = vector.extract_strided_slice %343 {offsets = [0, 256], sizes = [2, 128], strides = [1, 1]} : vector<2x384xf32> to vector<2x128xf32>
    %393 = vector.extract_strided_slice %375 {offsets = [0, 256], sizes = [2, 128], strides = [1, 1]} : vector<2x384xf32> to vector<2x128xf32>
    %394 = arith.mulf %383, %393 : vector<2x128xf32>
    %395 = arith.addf %392, %394 : vector<2x128xf32>
    %396 = math.tanh %395 : vector<2x128xf32>
    %cst_91 = arith.constant 1.000000e+00 : f32
    %397 = vector.broadcast %cst_91 : f32 to vector<2x128xf32>
    %398 = arith.subf %397, %391 : vector<2x128xf32>
    %399 = arith.mulf %398, %396 : vector<2x128xf32>
    %400 = arith.mulf %391, %336 : vector<2x128xf32>
    %401 = arith.addf %399, %400 : vector<2x128xf32>
    %c6_i32 = arith.constant 6 : i32
    %c2_i32_92 = arith.constant 2 : i32
    %402 = arith.muli %c6_i32, %c2_i32_92 : i32
    %403 = arith.index_cast %402 : i32 to index
    %c0_93 = arith.constant 0 : index
    %404 = vector.load %arg10[%403, %c0_93] : memref<16x768xf32, #tpu.memory_space<vmem>>, vector<2x384xf32>
    %c7_i32_94 = arith.constant 7 : i32
    %405 = arith.subi %c7_i32_94, %c6_i32 : i32
    %c2_i32_95 = arith.constant 2 : i32
    %406 = arith.muli %405, %c2_i32_95 : i32
    %407 = arith.index_cast %406 : i32 to index
    %c384_96 = arith.constant 384 : index
    %408 = vector.load %arg10[%407, %c384_96] : memref<16x768xf32, #tpu.memory_space<vmem>>, vector<2x384xf32>
    %cst_97 = arith.constant dense<0.000000e+00> : vector<2x384xf32>
    %409 = tpu.matmul %372, %7, %cst_97 {dimension_numbers = #tpu.dot_dimension_numbers<[1], [0], [0], [1], [0, 0, 1, 1], [], []>} : vector<2x128xf32>, vector<128x384xf32>, vector<2x384xf32> -> vector<2x384xf32>
    %410 = vector.broadcast %8 : vector<1x384xf32> to vector<2x384xf32>
    %411 = arith.addf %409, %410 : vector<2x384xf32>
    %412 = vector.extract_strided_slice %404 {offsets = [0, 0], sizes = [2, 128], strides = [1, 1]} : vector<2x384xf32> to vector<2x128xf32>
    %413 = vector.extract_strided_slice %411 {offsets = [0, 0], sizes = [2, 128], strides = [1, 1]} : vector<2x384xf32> to vector<2x128xf32>
    %414 = arith.addf %412, %413 : vector<2x128xf32>
    %415 = arith.negf %414 : vector<2x128xf32>
    %416 = math.exp %415 : vector<2x128xf32>
    %cst_98 = arith.constant 1.000000e+00 : f32
    %417 = vector.broadcast %cst_98 : f32 to vector<2x128xf32>
    %418 = arith.addf %417, %416 : vector<2x128xf32>
    %419 = arith.divf %417, %418 : vector<2x128xf32>
    %420 = vector.extract_strided_slice %404 {offsets = [0, 128], sizes = [2, 128], strides = [1, 1]} : vector<2x384xf32> to vector<2x128xf32>
    %421 = vector.extract_strided_slice %411 {offsets = [0, 128], sizes = [2, 128], strides = [1, 1]} : vector<2x384xf32> to vector<2x128xf32>
    %422 = arith.addf %420, %421 : vector<2x128xf32>
    %423 = arith.negf %422 : vector<2x128xf32>
    %424 = math.exp %423 : vector<2x128xf32>
    %cst_99 = arith.constant 1.000000e+00 : f32
    %425 = vector.broadcast %cst_99 : f32 to vector<2x128xf32>
    %426 = arith.addf %425, %424 : vector<2x128xf32>
    %427 = arith.divf %425, %426 : vector<2x128xf32>
    %428 = vector.extract_strided_slice %404 {offsets = [0, 256], sizes = [2, 128], strides = [1, 1]} : vector<2x384xf32> to vector<2x128xf32>
    %429 = vector.extract_strided_slice %411 {offsets = [0, 256], sizes = [2, 128], strides = [1, 1]} : vector<2x384xf32> to vector<2x128xf32>
    %430 = arith.mulf %419, %429 : vector<2x128xf32>
    %431 = arith.addf %428, %430 : vector<2x128xf32>
    %432 = math.tanh %431 : vector<2x128xf32>
    %cst_100 = arith.constant 1.000000e+00 : f32
    %433 = vector.broadcast %cst_100 : f32 to vector<2x128xf32>
    %434 = arith.subf %433, %427 : vector<2x128xf32>
    %435 = arith.mulf %434, %432 : vector<2x128xf32>
    %436 = arith.mulf %427, %372 : vector<2x128xf32>
    %437 = arith.addf %435, %436 : vector<2x128xf32>
    %cst_101 = arith.constant dense<0.000000e+00> : vector<2x384xf32>
    %438 = tpu.matmul %401, %9, %cst_101 {dimension_numbers = #tpu.dot_dimension_numbers<[1], [0], [0], [1], [0, 0, 1, 1], [], []>} : vector<2x128xf32>, vector<128x384xf32>, vector<2x384xf32> -> vector<2x384xf32>
    %439 = vector.broadcast %10 : vector<1x384xf32> to vector<2x384xf32>
    %440 = arith.addf %438, %439 : vector<2x384xf32>
    %441 = vector.extract_strided_slice %408 {offsets = [0, 0], sizes = [2, 128], strides = [1, 1]} : vector<2x384xf32> to vector<2x128xf32>
    %442 = vector.extract_strided_slice %440 {offsets = [0, 0], sizes = [2, 128], strides = [1, 1]} : vector<2x384xf32> to vector<2x128xf32>
    %443 = arith.addf %441, %442 : vector<2x128xf32>
    %444 = arith.negf %443 : vector<2x128xf32>
    %445 = math.exp %444 : vector<2x128xf32>
    %cst_102 = arith.constant 1.000000e+00 : f32
    %446 = vector.broadcast %cst_102 : f32 to vector<2x128xf32>
    %447 = arith.addf %446, %445 : vector<2x128xf32>
    %448 = arith.divf %446, %447 : vector<2x128xf32>
    %449 = vector.extract_strided_slice %408 {offsets = [0, 128], sizes = [2, 128], strides = [1, 1]} : vector<2x384xf32> to vector<2x128xf32>
    %450 = vector.extract_strided_slice %440 {offsets = [0, 128], sizes = [2, 128], strides = [1, 1]} : vector<2x384xf32> to vector<2x128xf32>
    %451 = arith.addf %449, %450 : vector<2x128xf32>
    %452 = arith.negf %451 : vector<2x128xf32>
    %453 = math.exp %452 : vector<2x128xf32>
    %cst_103 = arith.constant 1.000000e+00 : f32
    %454 = vector.broadcast %cst_103 : f32 to vector<2x128xf32>
    %455 = arith.addf %454, %453 : vector<2x128xf32>
    %456 = arith.divf %454, %455 : vector<2x128xf32>
    %457 = vector.extract_strided_slice %408 {offsets = [0, 256], sizes = [2, 128], strides = [1, 1]} : vector<2x384xf32> to vector<2x128xf32>
    %458 = vector.extract_strided_slice %440 {offsets = [0, 256], sizes = [2, 128], strides = [1, 1]} : vector<2x384xf32> to vector<2x128xf32>
    %459 = arith.mulf %448, %458 : vector<2x128xf32>
    %460 = arith.addf %457, %459 : vector<2x128xf32>
    %461 = math.tanh %460 : vector<2x128xf32>
    %cst_104 = arith.constant 1.000000e+00 : f32
    %462 = vector.broadcast %cst_104 : f32 to vector<2x128xf32>
    %463 = arith.subf %462, %456 : vector<2x128xf32>
    %464 = arith.mulf %463, %461 : vector<2x128xf32>
    %465 = arith.mulf %456, %401 : vector<2x128xf32>
    %466 = arith.addf %464, %465 : vector<2x128xf32>
    %c7_i32_105 = arith.constant 7 : i32
    %c2_i32_106 = arith.constant 2 : i32
    %467 = arith.muli %c7_i32_105, %c2_i32_106 : i32
    %468 = arith.index_cast %467 : i32 to index
    %c0_107 = arith.constant 0 : index
    %469 = vector.load %arg10[%468, %c0_107] : memref<16x768xf32, #tpu.memory_space<vmem>>, vector<2x384xf32>
    %c7_i32_108 = arith.constant 7 : i32
    %470 = arith.subi %c7_i32_108, %c7_i32_105 : i32
    %c2_i32_109 = arith.constant 2 : i32
    %471 = arith.muli %470, %c2_i32_109 : i32
    %472 = arith.index_cast %471 : i32 to index
    %c384_110 = arith.constant 384 : index
    %473 = vector.load %arg10[%472, %c384_110] : memref<16x768xf32, #tpu.memory_space<vmem>>, vector<2x384xf32>
    %cst_111 = arith.constant dense<0.000000e+00> : vector<2x384xf32>
    %474 = tpu.matmul %437, %7, %cst_111 {dimension_numbers = #tpu.dot_dimension_numbers<[1], [0], [0], [1], [0, 0, 1, 1], [], []>} : vector<2x128xf32>, vector<128x384xf32>, vector<2x384xf32> -> vector<2x384xf32>
    %475 = vector.broadcast %8 : vector<1x384xf32> to vector<2x384xf32>
    %476 = arith.addf %474, %475 : vector<2x384xf32>
    %477 = vector.extract_strided_slice %469 {offsets = [0, 0], sizes = [2, 128], strides = [1, 1]} : vector<2x384xf32> to vector<2x128xf32>
    %478 = vector.extract_strided_slice %476 {offsets = [0, 0], sizes = [2, 128], strides = [1, 1]} : vector<2x384xf32> to vector<2x128xf32>
    %479 = arith.addf %477, %478 : vector<2x128xf32>
    %480 = arith.negf %479 : vector<2x128xf32>
    %481 = math.exp %480 : vector<2x128xf32>
    %cst_112 = arith.constant 1.000000e+00 : f32
    %482 = vector.broadcast %cst_112 : f32 to vector<2x128xf32>
    %483 = arith.addf %482, %481 : vector<2x128xf32>
    %484 = arith.divf %482, %483 : vector<2x128xf32>
    %485 = vector.extract_strided_slice %469 {offsets = [0, 128], sizes = [2, 128], strides = [1, 1]} : vector<2x384xf32> to vector<2x128xf32>
    %486 = vector.extract_strided_slice %476 {offsets = [0, 128], sizes = [2, 128], strides = [1, 1]} : vector<2x384xf32> to vector<2x128xf32>
    %487 = arith.addf %485, %486 : vector<2x128xf32>
    %488 = arith.negf %487 : vector<2x128xf32>
    %489 = math.exp %488 : vector<2x128xf32>
    %cst_113 = arith.constant 1.000000e+00 : f32
    %490 = vector.broadcast %cst_113 : f32 to vector<2x128xf32>
    %491 = arith.addf %490, %489 : vector<2x128xf32>
    %492 = arith.divf %490, %491 : vector<2x128xf32>
    %493 = vector.extract_strided_slice %469 {offsets = [0, 256], sizes = [2, 128], strides = [1, 1]} : vector<2x384xf32> to vector<2x128xf32>
    %494 = vector.extract_strided_slice %476 {offsets = [0, 256], sizes = [2, 128], strides = [1, 1]} : vector<2x384xf32> to vector<2x128xf32>
    %495 = arith.mulf %484, %494 : vector<2x128xf32>
    %496 = arith.addf %493, %495 : vector<2x128xf32>
    %497 = math.tanh %496 : vector<2x128xf32>
    %cst_114 = arith.constant 1.000000e+00 : f32
    %498 = vector.broadcast %cst_114 : f32 to vector<2x128xf32>
    %499 = arith.subf %498, %492 : vector<2x128xf32>
    %500 = arith.mulf %499, %497 : vector<2x128xf32>
    %501 = arith.mulf %492, %437 : vector<2x128xf32>
    %502 = arith.addf %500, %501 : vector<2x128xf32>
    %cst_115 = arith.constant dense<0.000000e+00> : vector<2x384xf32>
    %503 = tpu.matmul %466, %9, %cst_115 {dimension_numbers = #tpu.dot_dimension_numbers<[1], [0], [0], [1], [0, 0, 1, 1], [], []>} : vector<2x128xf32>, vector<128x384xf32>, vector<2x384xf32> -> vector<2x384xf32>
    %504 = vector.broadcast %10 : vector<1x384xf32> to vector<2x384xf32>
    %505 = arith.addf %503, %504 : vector<2x384xf32>
    %506 = vector.extract_strided_slice %473 {offsets = [0, 0], sizes = [2, 128], strides = [1, 1]} : vector<2x384xf32> to vector<2x128xf32>
    %507 = vector.extract_strided_slice %505 {offsets = [0, 0], sizes = [2, 128], strides = [1, 1]} : vector<2x384xf32> to vector<2x128xf32>
    %508 = arith.addf %506, %507 : vector<2x128xf32>
    %509 = arith.negf %508 : vector<2x128xf32>
    %510 = math.exp %509 : vector<2x128xf32>
    %cst_116 = arith.constant 1.000000e+00 : f32
    %511 = vector.broadcast %cst_116 : f32 to vector<2x128xf32>
    %512 = arith.addf %511, %510 : vector<2x128xf32>
    %513 = arith.divf %511, %512 : vector<2x128xf32>
    %514 = vector.extract_strided_slice %473 {offsets = [0, 128], sizes = [2, 128], strides = [1, 1]} : vector<2x384xf32> to vector<2x128xf32>
    %515 = vector.extract_strided_slice %505 {offsets = [0, 128], sizes = [2, 128], strides = [1, 1]} : vector<2x384xf32> to vector<2x128xf32>
    %516 = arith.addf %514, %515 : vector<2x128xf32>
    %517 = arith.negf %516 : vector<2x128xf32>
    %518 = math.exp %517 : vector<2x128xf32>
    %cst_117 = arith.constant 1.000000e+00 : f32
    %519 = vector.broadcast %cst_117 : f32 to vector<2x128xf32>
    %520 = arith.addf %519, %518 : vector<2x128xf32>
    %521 = arith.divf %519, %520 : vector<2x128xf32>
    %522 = vector.extract_strided_slice %473 {offsets = [0, 256], sizes = [2, 128], strides = [1, 1]} : vector<2x384xf32> to vector<2x128xf32>
    %523 = vector.extract_strided_slice %505 {offsets = [0, 256], sizes = [2, 128], strides = [1, 1]} : vector<2x384xf32> to vector<2x128xf32>
    %524 = arith.mulf %513, %523 : vector<2x128xf32>
    %525 = arith.addf %522, %524 : vector<2x128xf32>
    %526 = math.tanh %525 : vector<2x128xf32>
    %cst_118 = arith.constant 1.000000e+00 : f32
    %527 = vector.broadcast %cst_118 : f32 to vector<2x128xf32>
    %528 = arith.subf %527, %521 : vector<2x128xf32>
    %529 = arith.mulf %528, %526 : vector<2x128xf32>
    %530 = arith.mulf %521, %466 : vector<2x128xf32>
    %531 = arith.addf %529, %530 : vector<2x128xf32>
    %c8_i32 = arith.constant 8 : i32
    %532 = tpu.concatenate %502, %531 in 1 : vector<2x128xf32>, vector<2x128xf32> -> vector<2x256xf32>
    %c0_119 = arith.constant 0 : index
    %c0_120 = arith.constant 0 : index
    %533 = vector.load %arg7[%c0_119, %c0_120] : memref<256x32xf32, #tpu.memory_space<vmem>>, vector<256x32xf32>
    %cst_121 = arith.constant dense<0.000000e+00> : vector<2x32xf32>
    %534 = tpu.matmul %532, %533, %cst_121 {dimension_numbers = #tpu.dot_dimension_numbers<[1], [0], [0], [1], [0, 0, 1, 1], [], []>} : vector<2x256xf32>, vector<256x32xf32>, vector<2x32xf32> -> vector<2x32xf32>
    %c0_122 = arith.constant 0 : index
    %c0_123 = arith.constant 0 : index
    %535 = vector.load %arg8[%c0_122, %c0_123] : memref<1x32xf32, #tpu.memory_space<vmem>>, vector<1x32xf32>
    %536 = vector.broadcast %535 : vector<1x32xf32> to vector<2x32xf32>
    %537 = arith.addf %534, %536 : vector<2x32xf32>
    %538 = tpu.concatenate %502, %531, %537 in 1 : vector<2x128xf32>, vector<2x128xf32>, vector<2x32xf32> -> vector<2x288xf32>
    %c0_124 = arith.constant 0 : index
    %c0_125 = arith.constant 0 : index
    %539 = vector.load %arg9[%c0_124, %c0_125] : memref<2x288xf32, #tpu.memory_space<vmem>>, vector<2x288xf32>
    tpu.vector_store %arg9[%c0_124, %c0_125], %538 {strides = array<i32>} : memref<2x288xf32, #tpu.memory_space<vmem>>, vector<2x288xf32>,
    return
  }
}

</mosaic_0001>

<bundles_post_ra>
// kernel: tpu_custom_call.1
= control target key start
LH: loop header
LB: loop body
LE: loop exit
PB: predicated region body
PF: predicated region fallthrough
CT: control target
= control target key end

     0   :  { %14 = vsyncpa [#allocation4], 0  ;;  %s6671_s0 = inlined_call_operand.vmem [shape: f32[16,32], index: 0, kind: input, shape index: {}]   ;;  %s6672_s1 = inlined_call_operand.vmem [shape: f32[32,768], index: 1, kind: input, shape index: {}]   ;;  %s6673_s2 = inlined_call_operand.vmem [shape: f32[1,768], index: 2, kind: input, shape index: {}]   ;;  %s6674_s3 = inlined_call_operand.hbm [shape: f32[128,384], index: 3, kind: input, shape index: {}]   ;;  %s6675_s4 = inlined_call_operand.vmem [shape: f32[1,384], index: 4, kind: input, shape index: {}]   ;;  %s6676_s5 = inlined_call_operand.hbm [shape: f32[128,384], index: 5, kind: input, shape index: {}]   ;;  %s6677_s6 = inlined_call_operand.vmem [shape: f32[1,384], index: 6, kind: input, shape index: {}]   ;;  %s6678_s7 = inlined_call_operand.vmem [shape: f32[256,32], index: 7, kind: input, shape index: {}]   ;;  %s6679_s8 = inlined_call_operand.vmem [shape: f32[1,32], index: 8, kind: input, shape index: {}]   ;;  %s6680_s9 = inlined_call_operand.hbm [shape: f32[2,288], index: 9, kind: output, shape index: {}]  }
   0x1   :  { %15 = vsyncpa [#allocation7], 0 }
   0x2   :  { %16 = vsyncpa [#allocation5], 0  ;;  %s5562_s30 = smov [#allocation3]   ;;  %s5490_s13 = scalar_lea.hbm %s6674_s3, 6144 }
   0x3   :  { %s28_s10 = sshll.u32 %s5562_s30, 4  ;;  %p5491_p0 = scmp.ne.s32.totalorder %s6674_s3, %s5490_s13  ;;  %s29_s10 = int_to_ptr.vmem [resolvable:$true] %s28_s10 }
   0x4   :  { %p5494_p1 = scmp.lt.u32.totalorder %s5490_s13, %s6674_s3 }
   0x6   :  { %p5496_p2 = pnand %p5494_p1, %p5491_p0 }
   0x8   :  { %5499 = shalt.err (!%p5496_p2)
}
   0x9   :  { %s5500_s18 = scalar_lea.vmem %s29_s10, 6144  ;;  %p5505_p4 = scmp.lt.s32.totalorder %s29_s10, %s29_s10 }
   0xa   :  { %p5501_p3 = scmp.ne.s32.totalorder %s29_s10, %s5500_s18  ;;  %p5506_p5 = scmp.lt.s32.totalorder %s5500_s18, %s5500_s18 }
   0xc   :  { %p5507_p6 = por %p5506_p5, %p5505_p4 }
   0xe   :  { %p5508_p7 = pnand %p5507_p6, %p5501_p3 }
  0x10   :  { %5511 = shalt.err (!%p5508_p7)
}
  0x11   :  { %s5563_s19 = smov 384   ;;  %s5564_s20 = smov 24  }
  0x12   :  { %34 = dma.hbm_to_vmem [thread:$0]  %s6674_s3, 6144, %s29_s10, [#allocation4], %s5563_s19, %s5563_s19, %s5564_s20  }
  0x13   :  { %s5565_s23 = smov [#allocation6]   ;;  %s5512_s27 = scalar_lea.hbm %s6676_s5, 6144 }
  0x14   :  { %s42_s24 = sshll.u32 %s5565_s23, 4  ;;  %p5513_p8 = scmp.ne.s32.totalorder %s6676_s5, %s5512_s27  ;;  %s43_s24 = int_to_ptr.vmem [resolvable:$true] %s42_s24 }
  0x15   :  { %p5516_p9 = scmp.lt.u32.totalorder %s5512_s27, %s6676_s5 }
  0x17   :  { %p5518_p10 = pnand %p5516_p9, %p5513_p8 }
  0x19   :  { %5521 = shalt.err (!%p5518_p10)
}
  0x1a   :  { %s5522_s12 = scalar_lea.vmem %s43_s24, 6144  ;;  %p5527_p12 = scmp.lt.s32.totalorder %s43_s24, %s43_s24 }
  0x1b   :  { %p5523_p11 = scmp.ne.s32.totalorder %s43_s24, %s5522_s12  ;;  %p5528_p13 = scmp.lt.s32.totalorder %s5522_s12, %s5522_s12 }
  0x1d   :  { %p5529_p0 = por %p5528_p13, %p5527_p12 }
  0x1f   :  { %p5530_p1 = pnand %p5529_p0, %p5523_p11 }
  0x21   :  { %5533 = shalt.err (!%p5530_p1)
}
  0x22   :  { %48 = dma.hbm_to_vmem [thread:$0]  %s6676_s5, 6144, %s43_s24, [#allocation7], %s5563_s19, %s5563_s19, %s5564_s20  }
  0x23   :  { %5556 = dma.done.wait [#allocation4], 6144  }
  0x24   :  { %5557 = vsyncadd [#allocation4], 4294961152 }
  0x25   :  { %5558 = dma.done.wait [#allocation7], 6144  }
  0x26   :  { %5559 = vsyncadd [#allocation7], 4294961152  ;;  %v6681_v0 = vmov 0.0   ;;  %v370_v1 = vld [vmem:[#allocation3 + $0x8] sm:$0xff]  ;;  %v373_v2 = vld [vmem:[#allocation3 + $0x20] sm:$0xff]  ;;  %vm119_vm0 = vcmask 261120  }
  0x27   :  { %190 = vmatprep.mubr.f32.mxu0 %v6681_v0  ;;  %553 = vmatprep.mubr.f32.mxu1 %v6681_v0  ;;  %v369_v3 = vld [vmem:[#allocation3] sm:$0xff]  ;;  %v5647_v4 = vpack.c.bf16 %v373_v2, %v370_v1  ;;  %v372_v5 = vld [vmem:[#allocation3 + $0x18] sm:$0xff]  ;;  %v64_v6 = vld [vmem:[%s6672_s1 + $0x8] sm:$0xff]  ;;  %vm5568_vm1 = vmmov 0   ;;  %vm3441_vm2 = vcmask 1041408   ;;  %vm3442_vm3 = vcmask 1043458  }
  0x28   :  { %v70_v7 = vld [vmem:[%s6672_s1 + $0x38] sm:$0xff]  ;;  %v5655_v8 = vpack.c.bf16 %v372_v5, %v369_v3  ;;  %v63_v10 = vld [vmem:[%s6672_s1] sm:$0xff]  ;;  %v69_v11 = vld [vmem:[%s6672_s1 + $0x30] sm:$0xff]  ;;  %vm3444_vm5 = vcmask 259076   ;;  %s5570_s28 = smov [#allocation8]  }
  0x29   :  { %v4369_v9 = vpack.c.bf16 %v70_v7, %v64_v6  ;;  %v376_v12 = vld [vmem:[#allocation3 + $0x38] sm:$0xff]  ;;  %4394 = vmatprep.subr.bf16.mxu1 %v5647_v4  ;;  %v4371_v13 = vpack.c.bf16 %v69_v11, %v63_v10  ;;  %v379_v14 = vld [vmem:[#allocation3 + $0x50] sm:$0xff]  ;;  %v378_v16 = vld [vmem:[#allocation3 + $0x48] sm:$0xff]  ;;  %s3453_s29 = sshll.u32 %s5570_s28, 4  ;;  %s3454_s29 = int_to_ptr.vmem [resolvable:$true] %s3453_s29 }
  0x2a   :  { %v375_v15 = vld [vmem:[#allocation3 + $0x30] sm:$0xff]  ;;  %4396 = vmatpush1.bf16.msra.mxu1 %v5655_v8  ;;  %v5665_v17 = vpack.c.bf16 %v379_v14, %v376_v12  ;;  %v76_v19 = vld [vmem:[%s6672_s1 + $0x68] sm:$0xff]  ;;  %v82_v20 = vld [vmem:[%s6672_s1 + $0x98] sm:$0xff]  ;;  %p5539_p3 = scmp.lt.s32.totalorder %s3454_s29, %s3454_s29 }
  0x2b   :  { %4370 = vmatprep.subr.bf16.mxu0 %v4369_v9  ;;  %v5667_v18 = vpack.c.bf16 %v378_v16, %v375_v15  ;;  %v75_v21 = vld [vmem:[%s6672_s1 + $0x60] sm:$0xff]  ;;  %v4373_v22 = vpack.c.bf16 %v82_v20, %v76_v19  ;;  %v81_v23 = vld [vmem:[%s6672_s1 + $0x90] sm:$0xff]  ;;  %v382_v24 = vld [vmem:[#allocation3 + $0x68] sm:$0xff] }
  0x2c   :  { %4372 = vmatpush1.bf16.msra.mxu0 %v4371_v13  ;;  %v385_v25 = vld [vmem:[#allocation3 + $0x80] sm:$0xff]  ;;  %4398 = vmatprep.subr.bf16.mxu1 %v5665_v17  ;;  %v4375_v26 = vpack.c.bf16 %v81_v23, %v75_v21  ;;  %v384_v29 = vld [vmem:[#allocation3 + $0x78] sm:$0xff]  ;;  %v72_v31 = vld [vmem:[%s6672_s1 + $0x48] sm:$0xff] }
  0x2d   :  { %v5682_v27 = vpack.c.bf16 %v385_v25, %v382_v24  ;;  %v381_v28 = vld [vmem:[#allocation3 + $0x60] sm:$0xff]  ;;  %v66_v30 = vld [vmem:[%s6672_s1 + $0x18] sm:$0xff]  ;;  %4374 = vmatprep.subr.bf16.mxu0 %v4373_v22  ;;  %v65_v33 = vld [vmem:[%s6672_s1 + $0x10] sm:$0xff] }
  0x2e   :  { %v5693_v32 = vld [vmem:[%s6671_s0] sm:$0xff]  ;;  %4400 = vmatpush1.bf16.msra.mxu1 %v5667_v18  ;;  %v5699_v34 = vpack.c.bf16 %v384_v29, %v381_v28  ;;  %v4377_v35 = vpack.c.bf16 %v72_v31, %v66_v30  ;;  %v388_v37 = vld [vmem:[#allocation3 + $0x98] sm:$0xff]  ;;  %v391_v38 = vld [vmem:[#allocation3 + $0xb0] sm:$0xff] }
  0x2f   :  { %v71_v36 = vld [vmem:[%s6672_s1 + $0x40] sm:$0xff]  ;;  %4402 = vmatprep.subr.bf16.mxu1 %v5682_v27  ;;  %v5705_v40 = vpack.c.bf16 %v391_v38, %v388_v37  ;;  %v387_v41 = vld [vmem:[#allocation3 + $0x90] sm:$0xff]  ;;  %v390_v42 = vld [vmem:[#allocation3 + $0xa8] sm:$0xff] }
  0x30   :  { %4376 = vmatpush1.bf16.msra.mxu0 %v4375_v26  ;;  %v4379_v39 = vpack.c.bf16 %v71_v36, %v65_v33  ;;  %v78_v43 = vld [vmem:[%s6672_s1 + $0x78] sm:$0xff]  ;;  %v84_v44 = vld [vmem:[%s6672_s1 + $0xa8] sm:$0xff]  ;;  %v77_v45 = vld [vmem:[%s6672_s1 + $0x70] sm:$0xff]  ;;  %v5722_v50 = vpack.c.bf16 %v390_v42, %v387_v41  ;;  %v6683_v33 = vmov 0.0|0.0  }
  0x31   :  { %4378 = vmatprep.subr.bf16.mxu0 %v4377_v35  ;;  %v4381_v46 = vpack.c.bf16 %v84_v44, %v78_v43  ;;  %v83_v47 = vld [vmem:[%s6672_s1 + $0xa0] sm:$0xff]  ;;  %v394_v48 = vld [vmem:[#allocation3 + $0xc8] sm:$0xff]  ;;  %v396_v56 = vld [vmem:[#allocation3 + $0xd8] sm:$0xff] }
  0x32   :  { %v397_v49 = vld [vmem:[#allocation3 + $0xe0] sm:$0xff]  ;;  %4404 = vmatpush1.bf16.msra.mxu1 %v5699_v34  ;;  %v5727_v51 = vld [vmem:[%s6671_s0 + $0x8] sm:$0xff]  ;;  %v4383_v54 = vpack.c.bf16 %v83_v47, %v77_v45  ;;  %v74_v57 = vld [vmem:[%s6672_s1 + $0x58] sm:$0xff] }
  0x33   :  { %3463 = vmatmul.mubr.msk.f32.vlgmr.msra.gmra.mrb[0].mxu0 %vm119_vm0, %v5693_v32  ;;  %v393_v52 = vld [vmem:[#allocation3 + $0xc0] sm:$0xff]  ;;  %v68_v53 = vld [vmem:[%s6672_s1 + $0x28] sm:$0xff]  ;;  %4406 = vmatprep.subr.bf16.mxu1 %v5705_v40  ;;  %v5733_v55 = vpack.c.bf16 %v397_v49, %v394_v48  ;;  %v73_v60 = vld [vmem:[%s6672_s1 + $0x50] sm:$0xff] }
  0x34   :  { %4380 = vmatpush1.bf16.msra.mxu0 %v4379_v39  ;;  %v67_v58 = vld [vmem:[%s6672_s1 + $0x20] sm:$0xff]  ;;  %196 = vmatprep.mubr.f32.mxu0 %v6681_v0  ;;  %v4385_v59 = vpack.c.bf16 %v74_v57, %v68_v53  ;;  %v400_v61 = vld [vmem:[#allocation3 + $0xf8] sm:$0xff]  ;;  %v403_v62 = vld [vmem:[#allocation3 + $0x110] sm:$0xff]  ;;  %v5754_v2 = vpack.c.bf16 %v396_v56, %v393_v52 }
  0x35   :  { %4382 = vmatprep.subr.bf16.mxu0 %v4381_v46  ;;  %v80_v63 = vld [vmem:[%s6672_s1 + $0x88] sm:$0xff]  ;;  %v86_v1 = vld [vmem:[%s6672_s1 + $0xb8] sm:$0xff]  ;;  %v4387_v3 = vpack.c.bf16 %v73_v60, %v67_v58  ;;  %v5757_v5 = vpack.c.bf16 %v403_v62, %v400_v61  ;;  %v399_v6 = vld [vmem:[#allocation3 + $0xf0] sm:$0xff] }
  0x36   :  { %4408 = vmatpush1.bf16.msra.mxu1 %v5722_v50  ;;  %6718 = vst [vmem:[#allocation12_spill] sm:$0xff] %v5754_v2  ;;  %v402_v7 = vld [vmem:[#allocation3 + $0x108] sm:$0xff]  ;;  %v79_v9 = vld [vmem:[%s6672_s1 + $0x80] sm:$0xff]  ;;  %v4389_v10 = vpack.c.bf16 %v86_v1, %v80_v63  ;;  %v85_v11 = vld [vmem:[%s6672_s1 + $0xb0] sm:$0xff] }
  0x37   :  { %3464 = vmatmul.mubr.msk.f32.gmra.mrb[2].mxu0 %vm119_vm0, %v5727_v51  ;;  %4410 = vmatprep.subr.bf16.mxu1 %v5733_v55  ;;  %6719 = vst [vmem:[#allocation13_spill] sm:$0xff] %v5757_v5  ;;  %v406_v12 = vld [vmem:[#allocation3 + $0x128] sm:$0xff]  ;;  %v409_v13 = vld [vmem:[#allocation3 + $0x140] sm:$0xff]  ;;  %v5769_v14 = vpack.c.bf16 %v402_v7, %v399_v6  ;;  %v4391_v15 = vpack.c.bf16 %v85_v11, %v79_v9  ;;  %v408_v20 = vld [vmem:[#allocation3 + $0x138] sm:$0xff] }
  0x38   :  { %4384 = vmatpush1.bf16.msra.mxu0 %v4383_v54  ;;  %267 = vmatprep.mubr.f32.mxu0 %v6681_v0  ;;  %v5772_v16 = vpack.c.bf16 %v409_v13, %v406_v12  ;;  %v405_v19 = vld [vmem:[#allocation3 + $0x120] sm:$0xff]  ;;  %v412_v21 = vld [vmem:[#allocation3 + $0x158] sm:$0xff]  ;;  %v415_v22 = vld [vmem:[#allocation3 + $0x170] sm:$0xff] }
  0x39   :  { %4386 = vmatprep.subr.bf16.mxu0 %v4385_v59  ;;  %6720 = vst [vmem:[#allocation14_spill] sm:$0xff] %v5769_v14  ;;  %v371_v23 = vld [vmem:[#allocation3 + $0x10] sm:$0xff]  ;;  %v374_v24 = vld [vmem:[#allocation3 + $0x28] sm:$0xff]  ;;  %v5778_v25 = vpack.c.bf16 %v408_v20, %v405_v19  ;;  %v5781_v26 = vpack.c.bf16 %v415_v22, %v412_v21  ;;  %v377_v31 = vld [vmem:[#allocation3 + $0x40] sm:$0xff] }
  0x3a   :  { %4412 = vmatpush1.bf16.msra.mxu1 %v5754_v2  ;;  %6721 = vst [vmem:[#allocation15_spill] sm:$0xff] %v5772_v16  ;;  %v5783_v28 = vpack.c.bf16 %v374_v24, %v371_v23  ;;  %v411_v29 = vld [vmem:[#allocation3 + $0x150] sm:$0xff]  ;;  %v414_v30 = vld [vmem:[#allocation3 + $0x168] sm:$0xff]  ;;  %v380_v35 = vld [vmem:[#allocation3 + $0x58] sm:$0xff] }
  0x3b   :  { %3465 = vmatmul.mubr.msk.f32.vlgmr.msra.gmra.mrb[4].mxu0 %vm119_vm0, %v5693_v32  ;;  %4414 = vmatprep.subr.bf16.mxu1 %v5757_v5  ;;  %6722 = vst [vmem:[#allocation16_spill] sm:$0xff] %v5778_v25  ;;  %6723 = vst [vmem:[#allocation17_spill] sm:$0xff] %v5781_v26  ;;  %v419_v36 = vld [vmem:[#allocation6 + $0x8] sm:$0xff]  ;;  %v422_v37 = vld [vmem:[#allocation6 + $0x20] sm:$0xff]  ;;  %v5790_v38 = vpack.c.bf16 %v414_v30, %v411_v29  ;;  %v5794_v39 = vpack.c.bf16 %v380_v35, %v377_v31 }
  0x3c   :  { %4388 = vmatpush1.bf16.msra.mxu0 %v4387_v3  ;;  %273 = vmatprep.mubr.f32.mxu0 %v6681_v0  ;;  %v5796_v41 = vpack.c.bf16 %v422_v37, %v419_v36  ;;  %v418_v42 = vld [vmem:[#allocation6] sm:$0xff]  ;;  %v421_v43 = vld [vmem:[#allocation6 + $0x18] sm:$0xff]  ;;  %v383_v44 = vld [vmem:[#allocation3 + $0x70] sm:$0xff] }
  0x3d   :  { %4390 = vmatprep.subr.bf16.mxu0 %v4389_v10  ;;  %6724 = vst [vmem:[#allocation18_spill] sm:$0xff] %v5790_v38  ;;  %v386_v45 = vld [vmem:[#allocation3 + $0x88] sm:$0xff]  ;;  %v425_v46 = vld [vmem:[#allocation6 + $0x38] sm:$0xff]  ;;  %v428_v47 = vld [vmem:[#allocation6 + $0x50] sm:$0xff] }
  0x3e   :  { %4416 = vmatpush1.bf16.msra.mxu1 %v5769_v14  ;;  %6725 = vst [vmem:[#allocation19_spill] sm:$0xff] %v5796_v41  ;;  %v5807_v48 = vpack.c.bf16 %v386_v45, %v383_v44  ;;  %v5809_v49 = vpack.c.bf16 %v428_v47, %v425_v46  ;;  %v424_v52 = vld [vmem:[#allocation6 + $0x30] sm:$0xff]  ;;  %v427_v53 = vld [vmem:[#allocation6 + $0x48] sm:$0xff]  ;;  %v389_v54 = vld [vmem:[#allocation3 + $0xa0] sm:$0xff] }
  0x3f   :  { %3466 = vmatmul.mubr.msk.f32.gmra.mrb[6].mxu0 %vm119_vm0, %v5727_v51  ;;  %4418 = vmatprep.subr.bf16.mxu1 %v5772_v16  ;;  %v392_v56 = vld [vmem:[#allocation3 + $0xb8] sm:$0xff]  ;;  %v431_v57 = vld [vmem:[#allocation6 + $0x68] sm:$0xff]  ;;  %v434_v58 = vld [vmem:[#allocation6 + $0x80] sm:$0xff] }
  0x40   :  { %4392 = vmatpush1.bf16.msra.mxu0 %v4391_v15  ;;  %344 = vmatprep.mubr.f32.mxu0 %v6681_v0  ;;  %v5821_v59 = vpack.c.bf16 %v392_v56, %v389_v54  ;;  %v5823_v60 = vpack.c.bf16 %v434_v58, %v431_v57  ;;  %v430_v61 = vld [vmem:[#allocation6 + $0x60] sm:$0xff]  ;;  %v433_v62 = vld [vmem:[#allocation6 + $0x78] sm:$0xff]  ;;  %v395_v63 = vld [vmem:[#allocation3 + $0xd0] sm:$0xff] }
  0x41   :  { %4425 = vmatprep.subr.bf16.mxu0 %v6683_v33  ;;  %v398_v1 = vld [vmem:[#allocation3 + $0xe8] sm:$0xff]  ;;  %v437_v3 = vld [vmem:[#allocation6 + $0x98] sm:$0xff]  ;;  %v440_v6 = vld [vmem:[#allocation6 + $0xb0] sm:$0xff]  ;;  %v5827_v7 = vpack.c.bf16 %v433_v62, %v430_v61 }
  0x42   :  { %4420 = vmatpush1.bf16.msra.mxu1 %v5778_v25  ;;  %v5831_v9 = vpack.c.bf16 %v398_v1, %v395_v63  ;;  %v5833_v10 = vpack.c.bf16 %v440_v6, %v437_v3  ;;  %v436_v11 = vld [vmem:[#allocation6 + $0x90] sm:$0xff]  ;;  %v439_v12 = vld [vmem:[#allocation6 + $0xa8] sm:$0xff]  ;;  %v401_v13 = vld [vmem:[#allocation3 + $0x100] sm:$0xff] }
  0x43   :  { %3467 = vmatmul.mubr.msk.f32.vlgmr.msra.gmra.mrb[8].mxu0 %vm119_vm0, %v5693_v32  ;;  %4422 = vmatprep.subr.bf16.mxu1 %v5781_v26  ;;  %v5801_v32 = vpack.c.bf16 %v421_v43, %v418_v42  ;;  %v404_v15 = vld [vmem:[#allocation3 + $0x118] sm:$0xff]  ;;  %v443_v19 = vld [vmem:[#allocation6 + $0xc8] sm:$0xff]  ;;  %v446_v20 = vld [vmem:[#allocation6 + $0xe0] sm:$0xff]  ;;  %v5837_v21 = vpack.c.bf16 %v439_v12, %v436_v11 }
  0x44   :  { %4427 = vmatpush3.bf16.msra.mxu0 %v5783_v28  ;;  %350 = vmatprep.mubr.f32.mxu0 %v6681_v0  ;;  %6726 = vst [vmem:[#allocation20_spill] sm:$0xff] %v5831_v9  ;;  %v5841_v22 = vpack.c.bf16 %v404_v15, %v401_v13  ;;  %v5843_v23 = vpack.c.bf16 %v446_v20, %v443_v19  ;;  %v442_v24 = vld [vmem:[#allocation6 + $0xc0] sm:$0xff]  ;;  %v445_v29 = vld [vmem:[#allocation6 + $0xd8] sm:$0xff]  ;;  %v407_v30 = vld [vmem:[#allocation3 + $0x130] sm:$0xff] }
  0x45   :  { %4428 = vmatprep.subr.bf16.mxu0 %v6683_v33  ;;  %v410_v31 = vld [vmem:[#allocation3 + $0x148] sm:$0xff]  ;;  %v449_v35 = vld [vmem:[#allocation6 + $0xf8] sm:$0xff]  ;;  %v452_v36 = vld [vmem:[#allocation6 + $0x110] sm:$0xff]  ;;  %v5847_v37 = vpack.c.bf16 %v445_v29, %v442_v24 }
  0x46   :  { %4424 = vmatpush1.bf16.msra.mxu1 %v5790_v38  ;;  %6727 = vst [vmem:[#allocation21_spill] sm:$0xff] %v5841_v22  ;;  %v5851_v42 = vpack.c.bf16 %v410_v31, %v407_v30  ;;  %v5853_v43 = vpack.c.bf16 %v452_v36, %v449_v35  ;;  %v448_v44 = vld [vmem:[#allocation6 + $0xf0] sm:$0xff]  ;;  %v451_v45 = vld [vmem:[#allocation6 + $0x108] sm:$0xff]  ;;  %v413_v46 = vld [vmem:[#allocation3 + $0x160] sm:$0xff] }
  0x47   :  { %3468 = vmatmul.mubr.msk.f32.gmra.mrb[10].mxu0 %vm119_vm0, %v5727_v51  ;;  %4450 = vmatprep.subr.bf16.mxu1 %v5796_v41  ;;  %v5816_v51 = vpack.c.bf16 %v427_v53, %v424_v52  ;;  %v416_v47 = vld [vmem:[#allocation3 + $0x178] sm:$0xff]  ;;  %v455_v52 = vld [vmem:[#allocation6 + $0x128] sm:$0xff]  ;;  %v458_v53 = vld [vmem:[#allocation6 + $0x140] sm:$0xff]  ;;  %v5857_v54 = vpack.c.bf16 %v451_v45, %v448_v44 }
  0x48   :  { %4430 = vmatpush3.bf16.msra.mxu0 %v5794_v39  ;;  %3841 = vmatprep.mubr.msk.f32.mxu0 %vm5568_vm1, %v6681_v0  ;;  %6728 = vst [vmem:[#allocation22_spill] sm:$0xff] %v5851_v42  ;;  %v5861_v56 = vpack.c.bf16 %v416_v47, %v413_v46  ;;  %v5863_v57 = vpack.c.bf16 %v458_v53, %v455_v52  ;;  %v454_v58 = vld [vmem:[#allocation6 + $0x120] sm:$0xff]  ;;  %v457_v61 = vld [vmem:[#allocation6 + $0x138] sm:$0xff]  ;;  %v464_v63 = vld [vmem:[#allocation6 + $0x170] sm:$0xff] }
  0x49   :  { %4431 = vmatprep.subr.bf16.mxu0 %v6683_v33  ;;  %554 = vmatmul.mubr.f32.vlgmr.msra.gmra.mrb[0].mxu1 %v6681_v0  ;;  %v461_v62 = vld [vmem:[#allocation6 + $0x158] sm:$0xff]  ;;  %v420_v1 = vld [vmem:[#allocation6 + $0x10] sm:$0xff]  ;;  %v423_v3 = vld [vmem:[#allocation6 + $0x28] sm:$0xff]  ;;  %v5867_v6 = vpack.c.bf16 %v457_v61, %v454_v58 }
  0x4a   :  { %4452 = vmatpush1.bf16.msra.mxu1 %v5801_v32  ;;  %731 = vmatprep.mubr.f32.mxu1 %v6681_v0  ;;  %6729 = vst [vmem:[#allocation23_spill] sm:$0xff] %v5861_v56  ;;  %v5871_v11 = vpack.c.bf16 %v464_v63, %v461_v62  ;;  %v5873_v12 = vpack.c.bf16 %v423_v3, %v420_v1  ;;  %v460_v13 = vld [vmem:[#allocation6 + $0x150] sm:$0xff]  ;;  %v463_v15 = vld [vmem:[#allocation6 + $0x168] sm:$0xff]  ;;  %v426_v19 = vld [vmem:[#allocation6 + $0x40] sm:$0xff] }
  0x4b   :  { %4454 = vmatprep.subr.bf16.mxu1 %v5809_v49  ;;  %v429_v20 = vld [vmem:[#allocation6 + $0x58] sm:$0xff]  ;;  %v5878_v24 = vpack.c.bf16 %v463_v15, %v460_v13  ;;  %v432_v30 = vld [vmem:[#allocation6 + $0x70] sm:$0xff]  ;;  %v435_v31 = vld [vmem:[#allocation6 + $0x88] sm:$0xff] }
  0x4c   :  { %4433 = vmatpush3.bf16.msra.mxu0 %v5807_v48  ;;  %v5882_v29 = vpack.c.bf16 %v429_v20, %v426_v19  ;;  %v5889_v35 = vpack.c.bf16 %v435_v31, %v432_v30  ;;  %v438_v36 = vld [vmem:[#allocation6 + $0xa0] sm:$0xff]  ;;  %v441_v44 = vld [vmem:[#allocation6 + $0xb8] sm:$0xff]  ;;  %v444_v46 = vld [vmem:[#allocation6 + $0xd0] sm:$0xff]  ;;  %v89_v19 = vlaneseq }
  0x4d   :  { %4434 = vmatprep.subr.bf16.mxu0 %v6683_v33  ;;  %v5897_v45 = vpack.c.bf16 %v441_v44, %v438_v36  ;;  %v447_v47 = vld [vmem:[#allocation6 + $0xe8] sm:$0xff]  ;;  %v450_v53 = vld [vmem:[#allocation6 + $0x100] sm:$0xff]  ;;  %v453_v58 = vld [vmem:[#allocation6 + $0x118] sm:$0xff] }
  0x4e   :  { %4456 = vmatpush1.bf16.msra.mxu1 %v5816_v51  ;;  %v5903_v52 = vpack.c.bf16 %v447_v47, %v444_v46  ;;  %v5909_v61 = vpack.c.bf16 %v453_v58, %v450_v53  ;;  %v456_v62 = vld [vmem:[#allocation6 + $0x130] sm:$0xff]  ;;  %v459_v63 = vld [vmem:[#allocation6 + $0x148] sm:$0xff]  ;;  %v462_v3 = vld [vmem:[#allocation6 + $0x160] sm:$0xff]  ;;  %v5952_v20 = vshrl.u32 %v89_v19, 7 }
  0x4f   :  { %4458 = vmatprep.subr.bf16.mxu1 %v5823_v60  ;;  %v5915_v1 = vpack.c.bf16 %v459_v63, %v456_v62  ;;  %v465_v13 = vld [vmem:[#allocation6 + $0x178] sm:$0xff]  ;;  %v87_v31 = vld [vmem:[%s6673_s2] sm:$0x3f]  ;;  %vm3443_vm4 = vmor %vm3442_vm3, %vm3441_vm2 }
  0x50   :  { %4436 = vmatpush3.bf16.msra.mxu0 %v5821_v59  ;;  %v5921_v15 = vpack.c.bf16 %v465_v13, %v462_v3  ;;  %6730 = vst [vmem:[#allocation24_spill] sm:$0xff] %v5952_v20  ;;  %v5955_v30 = vsub.s32 0, %v5952_v20  ;;  %v5961_v36 = vsub.s32 1, %v5952_v20  ;;  %v5966_v62 = vsub.s32 2, %v5952_v20  ;;  %vm3445_vm6 = vmor %vm3444_vm5, %vm3443_vm4 }
  0x51   :  { %4437 = vmatprep.subr.bf16.mxu0 %v6683_v33  ;;  %v103_v3 = vsub.s32 3, %v5952_v20 }
  0x52   :  { %4460 = vmatpush1.bf16.msra.mxu1 %v5827_v7  ;;  %v92_v44 = vrot.slane %v87_v31, %v5955_v30  ;;  %v96_v46 = vrot.slane %v87_v31, %v5961_v36 }
  0x53   :  { %4462 = vmatprep.subr.bf16.mxu1 %v5833_v10 }
  0x54   :  { %4439 = vmatpush3.bf16.msra.mxu0 %v5831_v9 }
  0x55   :  { %4440 = vmatprep.subr.bf16.mxu0 %v6683_v33 }
  0x56   :  { %4464 = vmatpush1.bf16.msra.mxu1 %v5837_v21 }
  0x57   :  { %4466 = vmatprep.subr.bf16.mxu1 %v5843_v23 }
  0x58   :  { %4442 = vmatpush3.bf16.msra.mxu0 %v5841_v22 }
  0x59   :  { %4443 = vmatprep.subr.bf16.mxu0 %v6683_v33 }
  0x5a   :  { %4468 = vmatpush1.bf16.msra.mxu1 %v5847_v37 }
  0x5b   :  { %4470 = vmatprep.subr.bf16.mxu1 %v5853_v43 }
  0x5c   :  { %4445 = vmatpush3.bf16.msra.mxu0 %v5851_v42 }
  0x5d   :  { %4446 = vmatprep.subr.bf16.mxu0 %v6683_v33 }
  0x5e   :  { %4472 = vmatpush1.bf16.msra.mxu1 %v5857_v54 }
  0x5f   :  { %4474 = vmatprep.subr.bf16.mxu1 %v5863_v57 }
  0x60   :  { %4448 = vmatpush3.bf16.msra.mxu0 %v5861_v56 }
  0x61   :  { %4481 = vmatprep.subr.bf16.mxu0 %v6683_v33 }
  0x62   :  { %4476 = vmatpush1.bf16.msra.mxu1 %v5867_v6 }
  0x63   :  { %3842 = vmatmul.mubr.f32.vlgmr.msra.gmra.mrb[12].mxu0 %v6681_v0  ;;  %4478 = vmatprep.subr.bf16.mxu1 %v5871_v11 }
  0x64   :  { %4483 = vmatpush3.bf16.msra.mxu0 %v5873_v12  ;;  %3876 = vmatprep.mubr.msk.f32.mxu0 %vm5568_vm1, %v6681_v0 }
  0x65   :  { %4484 = vmatprep.subr.bf16.mxu0 %v6683_v33 }
  0x66   :  { %4480 = vmatpush1.bf16.msra.mxu1 %v5878_v24 }
  0x67   :  { %4506 = vmatprep.subr.bf16.mxu1 %v5647_v4 }
  0x68   :  { %4486 = vmatpush3.bf16.msra.mxu0 %v5882_v29 }
  0x69   :  { %4487 = vmatprep.subr.bf16.mxu0 %v6683_v33  ;;  %732 = vmatmul.mubr.f32.vlgmr.msra.gmra.mrb[2].mxu1 %v6681_v0 }
  0x6a   :  { %4508 = vmatpush1.bf16.msra.mxu1 %v5655_v8  ;;  %908 = vmatprep.mubr.f32.mxu1 %v6681_v0 }
  0x6b   :  { %4510 = vmatprep.subr.bf16.mxu1 %v5665_v17 }
  0x6c   :  { %4489 = vmatpush3.bf16.msra.mxu0 %v5889_v35 }
  0x6d   :  { %4490 = vmatprep.subr.bf16.mxu0 %v6683_v33 }
  0x6e   :  { %4512 = vmatpush1.bf16.msra.mxu1 %v5667_v18 }
  0x6f   :  { %4514 = vmatprep.subr.bf16.mxu1 %v5682_v27 }
  0x70   :  { %4492 = vmatpush3.bf16.msra.mxu0 %v5897_v45 }
  0x71   :  { %4493 = vmatprep.subr.bf16.mxu0 %v6683_v33 }
  0x72   :  { %4516 = vmatpush1.bf16.msra.mxu1 %v5699_v34 }
  0x73   :  { %4518 = vmatprep.subr.bf16.mxu1 %v5705_v40 }
  0x74   :  { %4495 = vmatpush3.bf16.msra.mxu0 %v5903_v52 }
  0x75   :  { %4496 = vmatprep.subr.bf16.mxu0 %v6683_v33 }
  0x76   :  { %4520 = vmatpush1.bf16.msra.mxu1 %v5722_v50 }
  0x77   :  { %4522 = vmatprep.subr.bf16.mxu1 %v5733_v55 }
  0x78   :  { %4498 = vmatpush3.bf16.msra.mxu0 %v5909_v61 }
  0x79   :  { %4499 = vmatprep.subr.bf16.mxu0 %v6683_v33 }
  0x7a   :  { %4524 = vmatpush1.bf16.msra.mxu1 %v5754_v2 }
  0x7b   :  { %4526 = vmatprep.subr.bf16.mxu1 %v5757_v5 }
  0x7c   :  { %4501 = vmatpush3.bf16.msra.mxu0 %v5915_v1 }
  0x7d   :  { %4502 = vmatprep.subr.bf16.mxu0 %v6683_v33 }
  0x7e   :  { %4528 = vmatpush1.bf16.msra.mxu1 %v5769_v14 }
  0x7f   :  { %4530 = vmatprep.subr.bf16.mxu1 %v5772_v16 }
  0x80   :  { %4504 = vmatpush3.bf16.msra.mxu0 %v5921_v15 }
  0x81   :  { %4537 = vmatprep.subr.bf16.mxu0 %v6683_v33 }
  0x82   :  { %4532 = vmatpush1.bf16.msra.mxu1 %v5778_v25 }
  0x83   :  { %3877 = vmatmul.mubr.f32.vlgmr.msra.gmra.mrb[14].mxu0 %v6681_v0  ;;  %4534 = vmatprep.subr.bf16.mxu1 %v5781_v26 }
  0x84   :  { %4539 = vmatpush3.bf16.msra.mxu0 %v5783_v28  ;;  %3911 = vmatprep.mubr.msk.f32.mxu0 %vm5568_vm1, %v6681_v0 }
  0x85   :  { %4540 = vmatprep.subr.bf16.mxu0 %v6683_v33 }
  0x86   :  { %4536 = vmatpush1.bf16.msra.mxu1 %v5790_v38 }
  0x87   :  { %4562 = vmatprep.subr.bf16.mxu1 %v5796_v41 }
  0x88   :  { %4542 = vmatpush3.bf16.msra.mxu0 %v5794_v39 }
  0x89   :  { %4543 = vmatprep.subr.bf16.mxu0 %v6683_v33 }
  0x8c   :  { %4545 = vmatpush3.bf16.msra.mxu0 %v5807_v48 }
  0x8d   :  { %4546 = vmatprep.subr.bf16.mxu0 %v6683_v33 }
  0x90   :  { %4548 = vmatpush3.bf16.msra.mxu0 %v5821_v59 }
  0x91   :  { %4549 = vmatprep.subr.bf16.mxu0 %v6683_v33 }
  0x94   :  { %4551 = vmatpush3.bf16.msra.mxu0 %v5831_v9 }
  0x95   :  { %4552 = vmatprep.subr.bf16.mxu0 %v6683_v33 }
  0x98   :  { %4554 = vmatpush3.bf16.msra.mxu0 %v5841_v22 }
  0x99   :  { %4555 = vmatprep.subr.bf16.mxu0 %v6683_v33 }
  0x9c   :  { %4557 = vmatpush3.bf16.msra.mxu0 %v5851_v42  ;;  %v107_v42 = vsub.s32 4, %v5952_v20 }
  0x9d   :  { %4558 = vmatprep.subr.bf16.mxu0 %v6683_v33 }
  0xa0   :  { %4560 = vmatpush3.bf16.msra.mxu0 %v5861_v56  ;;  %v104_v56 = vrot.slane %v87_v31, %v103_v3 }
  0xa1   :  { %4593 = vmatprep.subr.bf16.mxu0 %v6683_v33  ;;  %v100_v33 = vrot.slane %v87_v31, %v5966_v62 }
 0x106   :  { %v192_v47 = vpop.f32.mrb[0].mxu0 }
 0x107   :  { %v193_v53 = vadd.f32 %v192_v47, %v92_v44  ;;  %v194_v58 = vpop.f32.mrb[1].mxu0 }
 0x108   :  { %v195_v63 = vadd.f32 %v194_v58, %v96_v46  ;;  %v111_v58 = vsub.s32 5, %v5952_v20 }
 0x109   :  { %357 = vst [vmem:[#allocation2] sm:$0xff] %v193_v53 }
 0x10a   :  { %358 = vst [vmem:[#allocation2 + $0x8] sm:$0xff] %v195_v63  ;;  %v198_v13 = vpop.f32.mrb[2].mxu0  ;;  %v112_v22 = vrot.slane %v87_v31, %v111_v58 }
 0x10b   :  { %v199_v19 = vadd.f32 %v198_v13, %v92_v44  ;;  %v200_v0 = vpop.f32.mrb[3].mxu0  ;;  %v108_v13 = vrot.slane %v87_v31, %v107_v42 }
 0x10c   :  { %v201_v41 = vadd.f32 %v200_v0, %v96_v46 }
 0x10d   :  { %363 = vst [vmem:[#allocation2 + $0x30] sm:$0xff] %v199_v19 }
 0x10e   :  { %364 = vst [vmem:[#allocation2 + $0x38] sm:$0xff] %v201_v41  ;;  %v269_v38 = vpop.f32.mrb[4].mxu0 }
 0x10f   :  { %v270_v47 = vadd.f32 %v269_v38, %v100_v33  ;;  %v271_v26 = vpop.f32.mrb[5].mxu0  ;;  %v417_v38 = vld [vmem:[%s6675_s4] sm:$0x7] }
 0x110   :  { %v272_v25 = vadd.f32 %v271_v26, %v104_v56  ;;  %v5976_v3 = vrot.slane %v417_v38, %v5955_v30  ;;  %v467_v58 = vld [vmem:[#allocation2] sm:$0x3] }
 0x111   :  { %359 = vst [vmem:[#allocation2 + $0x10] sm:$0xff] %v270_v47 }
 0x112   :  { %360 = vst [vmem:[#allocation2 + $0x18] sm:$0xff] %v272_v25  ;;  %v275_v53 = vpop.f32.mrb[6].mxu0  ;;  %6731 = vst [vmem:[#allocation25_spill] sm:$0xff] %v5976_v3 }
 0x113   :  { %v276_v63 = vadd.f32 %v275_v53, %v100_v33  ;;  %v277_v44 = vpop.f32.mrb[7].mxu0  ;;  %v5979_v33 = vrot.slane %v417_v38, %v5961_v36 }
 0x114   :  { %v278_v16 = vadd.f32 %v277_v44, %v104_v56 }
 0x115   :  { %365 = vst [vmem:[#allocation2 + $0x40] sm:$0xff] %v276_v63  ;;  %6732 = vst [vmem:[#allocation26_spill] sm:$0xff] %v5979_v33 }
 0x116   :  { %366 = vst [vmem:[#allocation2 + $0x48] sm:$0xff] %v278_v16  ;;  %v346_v0 = vpop.f32.mrb[8].mxu0 }
 0x117   :  { %v347_v41 = vadd.f32 %v346_v0, %v108_v13  ;;  %v348_v46 = vpop.f32.mrb[9].mxu0  ;;  %v468_v0 = vld [vmem:[#allocation2 + $0x8] sm:$0x3] }
 0x118   :  { %v349_v26 = vadd.f32 %v348_v46, %v112_v22 }
 0x119   :  { %361 = vst [vmem:[#allocation2 + $0x20] sm:$0xff] %v347_v41 }
 0x11a   :  { %362 = vst [vmem:[#allocation2 + $0x28] sm:$0xff] %v349_v26  ;;  %v352_v25 = vpop.f32.mrb[10].mxu0 }
 0x11b   :  { %v353_v42 = vadd.f32 %v352_v25, %v108_v13  ;;  %v354_v56 = vpop.f32.mrb[11].mxu0 }
 0x11c   :  { %v355_v16 = vadd.f32 %v354_v56, %v112_v22  ;;  %v555_v31 = vpop.f32.mrb[0].mxu1  ;;  %v5984_v22 = vrot.slane %v417_v38, %v5966_v62  ;;  %v466_v56 = vld [vmem:[%s6677_s6] sm:$0x7] }
 0x11d   :  { %367 = vst [vmem:[#allocation2 + $0x50] sm:$0xff] %v353_v42  ;;  %v556_v19 = vadd.f32 %v555_v31, %v5976_v3  ;;  %v557_v47 = vpop.f32.mrb[1].mxu1 }
 0x11e   :  { %368 = vst [vmem:[#allocation2 + $0x58] sm:$0xff] %v355_v16  ;;  %v558_v53 = vadd.f32 %v557_v47, %v5979_v33  ;;  %6733 = vst [vmem:[#allocation27_spill] sm:$0xff] %v5984_v22  ;;  %v5991_v47 = vrot.slane %v466_v56, %v5955_v30 }
 0x11f   :  { %v630_v63 = vadd.f32 %v556_v19, %v467_v58 }
 0x120   :  { %v637_v41 = vadd.f32 %v558_v53, %v468_v0  ;;  %v5994_v53 = vrot.slane %v466_v56, %v5961_v36 }
 0x121   :  { %v3469_v44 = vmul.f32 -1.442695, %v630_v63  ;;  %v469_v63 = vld [vmem:[#allocation2 + $0x10] sm:$0x3] }
 0x122   :  { %v3470_v46 = vmul.f32 -1.442695, %v637_v41 }
 0x123   :  { %5330 = vpow2.f32 %v3469_v44 }
 0x124   :  { %5332 = vpow2.f32 %v3470_v46  ;;  %v471_v20 = vld [vmem:[#allocation2 + $0x50] sm:$0xc0] }
 0x12d   :  { %v5331_v26 = vpop.eup %5330 }
 0x12e   :  { %v634_v13 = vadd.f32 1.0, %v5331_v26  ;;  %v5333_v25 = vpop.eup %5332 }
 0x12f   :  { %v641_v31 = vadd.f32 1.0, %v5333_v25  ;;  %v470_v25 = vld [vmem:[#allocation2 + $0x48] sm:$0xc0] }
 0x130   :  { %5334 = vrcp.f32 %v634_v13 }
 0x131   :  { %5336 = vrcp.f32 %v641_v31 }
 0x136   :  { %v626_v42 = vpop.f32.mrb[12].mxu0 }
 0x137   :  { %v3843_v16 = vpop.f32.mrb[13].mxu0  ;;  %v627_v19 = vadd.f32 %v626_v42, %v5984_v22 }
 0x13a   :  { %v5335_v58 = vpop.eup %5334 }
 0x13b   :  { %v644_v38 = vmul.f32 %v5335_v58, %v627_v19  ;;  %v5337_v36 = vpop.eup %5336 }
 0x13c   :  { %v733_v44 = vpop.f32.mrb[2].mxu1  ;;  %v647_v19 = vsub.f32 1.0, %v5337_v36 }
 0x13d   :  { %v645_v0 = vadd.f32 %v644_v38, %v469_v63  ;;  %v734_v41 = vadd.f32 %v733_v44, %v5991_v47  ;;  %v735_v46 = vpop.f32.mrb[3].mxu1  ;;  %v649_v38 = vmul.f32 0.0, %v5337_v36 }
 0x13e   :  { %v736_v26 = vadd.f32 %v735_v46, %v5994_v53 }
 0x13f   :  { %5338 = vtanh.f32 %v645_v0  ;;  %v809_v13 = vrot.slane %v734_v41, 2  ;;  %v6735_v0 = vmov 0.0  }
 0x140   :  { %v819_v42 = vrot.slane %v736_v26, 2 }
 0x141   :  { %v811_v30 = vadd.f32 %v809_v13, %v470_v25 }
 0x142   :  { %v821_v22 = vadd.f32 %v819_v42, %v471_v20 }
 0x143   :  { %v3471_v16 = vmul.f32 -1.442695, %v811_v30  ;;  %v472_v30 = vld [vmem:[#allocation2 + $0x58] sm:$0xc0] }
 0x144   :  { %v3472_v31 = vmul.f32 -1.442695, %v821_v22  ;;  %v6734_v22 = vmov 0.0|0.0  }
 0x145   :  { %5340 = vpow2.f32 %v3471_v16 }
 0x146   :  { %5342 = vpow2.f32 %v3472_v31 }
 0x149   :  { %v5339_v58 = vpop.eup %5338 }
 0x14a   :  { %v648_v33 = vmul.f32 %v5339_v58, %v647_v19 }
 0x14c   :  { %v5998_v63 = vadd.f32 %v649_v38, %v648_v33  ;;  %v6010_v33 = vrot.slane %v466_v56, %v5966_v62 }
 0x14e   :  { %909 = vmatmul.mubr.f32.vlgmr.msra.gmra.mrb[4].mxu1 %v5998_v63  ;;  %3912 = vmatmul.mubr.f32.vlgmr.msra.gmra.mrb[16].mxu0 %v5998_v63 }
 0x14f   :  { %v5341_v44 = vpop.eup %5340  ;;  %4564 = vmatpush1.bf16.msra.mxu1 %v5801_v32  ;;  %4595 = vmatpush3.bf16.msra.mxu0 %v5873_v12 }
 0x150   :  { %v815_v20 = vadd.f32 1.0, %v5341_v44  ;;  %4566 = vmatprep.subr.bf16.mxu1 %v5809_v49  ;;  %4596 = vmatprep.subr.bf16.mxu0 %v6734_v22  ;;  %v5343_v46 = vpop.eup %5342 }
 0x151   :  { %1085 = vmatprep.mubr.f32.mxu1 %v6735_v0  ;;  %3946 = vmatprep.mubr.msk.f32.mxu0 %vm5568_vm1, %v6735_v0  ;;  %v825_v62 = vadd.f32 1.0, %v5343_v46  ;;  %v6737_v46 = vld [vmem:[#allocation15_spill] sm:$0xff] }
 0x152   :  { %5344 = vrcp.f32 %v815_v20 }
 0x153   :  { %4568 = vmatpush1.bf16.msra.mxu1 %v5816_v51  ;;  %4598 = vmatpush3.bf16.msra.mxu0 %v5882_v29  ;;  %5346 = vrcp.f32 %v825_v62  ;;  %v6740_v62 = vld [vmem:[#allocation17_spill] sm:$0xff] }
 0x154   :  { %4570 = vmatprep.subr.bf16.mxu1 %v5823_v60  ;;  %4599 = vmatprep.subr.bf16.mxu0 %v6734_v22 }
 0x156   :  { %v804_v41 = vpop.f32.mrb[14].mxu0 }
 0x157   :  { %v805_v26 = vadd.f32 %v804_v41, %v6010_v33  ;;  %v3878_v13 = vpop.f32.mrb[15].mxu0  ;;  %4572 = vmatpush1.bf16.msra.mxu1 %v5827_v7  ;;  %4601 = vmatpush3.bf16.msra.mxu0 %v5889_v35  ;;  %v6736_v41 = vld [vmem:[#allocation21_spill] sm:$0xff] }
 0x158   :  { %4574 = vmatprep.subr.bf16.mxu1 %v5833_v10  ;;  %4602 = vmatprep.subr.bf16.mxu0 %v6734_v22  ;;  %v6739_v13 = vld [vmem:[#allocation22_spill] sm:$0xff] }
 0x159   :  { %v829_v56 = vrot.slane %v805_v26, 2  ;;  %v6738_v26 = vld [vmem:[#allocation16_spill] sm:$0xff] }
 0x15b   :  { %4576 = vmatpush1.bf16.msra.mxu1 %v5837_v21  ;;  %4604 = vmatpush3.bf16.msra.mxu0 %v5897_v45 }
 0x15c   :  { %v5345_v25 = vpop.eup %5344  ;;  %4578 = vmatprep.subr.bf16.mxu1 %v5843_v23  ;;  %4605 = vmatprep.subr.bf16.mxu0 %v6734_v22 }
 0x15d   :  { %v831_v42 = vmul.f32 %v5345_v25, %v829_v56  ;;  %v5347_v36 = vpop.eup %5346  ;;  %v6741_v56 = vld [vmem:[#allocation18_spill] sm:$0xff]  ;;  %v6742_v25 = vld [vmem:[#allocation23_spill] sm:$0xff] }
 0x15e   :  { %v834_v31 = vsub.f32 1.0, %v5347_v36  ;;  %v836_v38 = vmul.f32 0.0, %v5347_v36 }
 0x15f   :  { %v832_v16 = vadd.f32 %v831_v42, %v472_v30  ;;  %4580 = vmatpush1.bf16.msra.mxu1 %v5847_v37  ;;  %4607 = vmatpush3.bf16.msra.mxu0 %v5903_v52  ;;  %v6743_v42 = vld [vmem:[#allocation19_spill] sm:$0xff] }
 0x160   :  { %4582 = vmatprep.subr.bf16.mxu1 %v5853_v43  ;;  %4608 = vmatprep.subr.bf16.mxu0 %v6734_v22 }
 0x161   :  { %5348 = vtanh.f32 %v832_v16 }
 0x163   :  { %4584 = vmatpush1.bf16.msra.mxu1 %v5857_v54  ;;  %4610 = vmatpush3.bf16.msra.mxu0 %v5909_v61 }
 0x164   :  { %4586 = vmatprep.subr.bf16.mxu1 %v5863_v57  ;;  %4611 = vmatprep.subr.bf16.mxu0 %v6734_v22 }
 0x167   :  { %4588 = vmatpush1.bf16.msra.mxu1 %v5867_v6  ;;  %4613 = vmatpush3.bf16.msra.mxu0 %v5915_v1 }
 0x168   :  { %4590 = vmatprep.subr.bf16.mxu1 %v5871_v11  ;;  %4614 = vmatprep.subr.bf16.mxu0 %v6734_v22 }
 0x16b   :  { %v5349_v19 = vpop.eup %5348  ;;  %4592 = vmatpush1.bf16.msra.mxu1 %v5878_v24  ;;  %4616 = vmatpush3.bf16.msra.mxu0 %v5921_v15 }
 0x16c   :  { %v835_v58 = vmul.f32 %v5349_v19, %v834_v31  ;;  %4618 = vmatprep.subr.bf16.mxu1 %v5647_v4  ;;  %4649 = vmatprep.subr.bf16.mxu0 %v6734_v22 }
 0x16e   :  { %v6041_v44 = vadd.f32 %v836_v38, %v835_v58  ;;  %v6744_v58 = vld [vmem:[#allocation26_spill] sm:$0xff] }
 0x170   :  { %v1019_v20 = vrot.slane %v6041_v44, 6 }
 0x172   :  { %1086 = vmatmul.mubr.f32.vlgmr.msra.gmra.mrb[6].mxu1 %v1019_v20  ;;  %3947 = vmatmul.mubr.f32.vlgmr.msra.gmra.mrb[18].mxu0 %v1019_v20 }
 0x173   :  { %4620 = vmatpush1.bf16.msra.mxu1 %v5655_v8  ;;  %4651 = vmatpush3.bf16.msra.mxu0 %v5783_v28 }
 0x174   :  { %4622 = vmatprep.subr.bf16.mxu1 %v5665_v17  ;;  %4652 = vmatprep.subr.bf16.mxu0 %v6734_v22 }
 0x175   :  { %1267 = vmatprep.mubr.f32.mxu1 %v6735_v0  ;;  %3981 = vmatprep.mubr.msk.f32.mxu0 %vm5568_vm1, %v6735_v0 }
 0x177   :  { %4624 = vmatpush1.bf16.msra.mxu1 %v5667_v18  ;;  %4654 = vmatpush3.bf16.msra.mxu0 %v5794_v39 }
 0x178   :  { %4626 = vmatprep.subr.bf16.mxu1 %v5682_v27  ;;  %4655 = vmatprep.subr.bf16.mxu0 %v6734_v22 }
 0x17b   :  { %4628 = vmatpush1.bf16.msra.mxu1 %v5699_v34  ;;  %4657 = vmatpush3.bf16.msra.mxu0 %v5807_v48 }
 0x17c   :  { %4630 = vmatprep.subr.bf16.mxu1 %v5705_v40  ;;  %4658 = vmatprep.subr.bf16.mxu0 %v6734_v22 }
 0x17f   :  { %4632 = vmatpush1.bf16.msra.mxu1 %v5722_v50  ;;  %4660 = vmatpush3.bf16.msra.mxu0 %v5821_v59 }
 0x180   :  { %4634 = vmatprep.subr.bf16.mxu1 %v5733_v55  ;;  %4661 = vmatprep.subr.bf16.mxu0 %v6734_v22 }
 0x183   :  { %4636 = vmatpush1.bf16.msra.mxu1 %v5754_v2  ;;  %4663 = vmatpush3.bf16.msra.mxu0 %v5831_v9 }
 0x184   :  { %4638 = vmatprep.subr.bf16.mxu1 %v5757_v5  ;;  %4664 = vmatprep.subr.bf16.mxu0 %v6734_v22 }
 0x187   :  { %4640 = vmatpush1.bf16.msra.mxu1 %v5769_v14  ;;  %4666 = vmatpush3.bf16.msra.mxu0 %v6736_v41 }
 0x188   :  { %4642 = vmatprep.subr.bf16.mxu1 %v6737_v46  ;;  %4667 = vmatprep.subr.bf16.mxu0 %v6734_v22  ;;  %v839_v46 = vld [vmem:[#allocation2 + $0x8] sm:$0xc] }
 0x18b   :  { %4644 = vmatpush1.bf16.msra.mxu1 %v6738_v26  ;;  %4669 = vmatpush3.bf16.msra.mxu0 %v6739_v13 }
 0x18c   :  { %4646 = vmatprep.subr.bf16.mxu1 %v6740_v62  ;;  %4670 = vmatprep.subr.bf16.mxu0 %v6734_v22  ;;  %v838_v62 = vld [vmem:[#allocation2] sm:$0xc] }
 0x18f   :  { %4648 = vmatpush1.bf16.msra.mxu1 %v6741_v56  ;;  %4672 = vmatpush3.bf16.msra.mxu0 %v6742_v25 }
 0x190   :  { %4674 = vmatprep.subr.bf16.mxu1 %v6743_v42  ;;  %4705 = vmatprep.subr.bf16.mxu0 %v6734_v22 }
 0x221   :  { %v910_v30 = vpop.f32.mrb[4].mxu1  ;;  %v981_v16 = vpop.f32.mrb[16].mxu0 }
 0x222   :  { %v911_v36 = vadd.f32 %v910_v30, %v5976_v3  ;;  %v912_v31 = vpop.f32.mrb[5].mxu1  ;;  %v3913_v19 = vpop.f32.mrb[17].mxu0  ;;  %v6745_v30 = vld [vmem:[#allocation27_spill] sm:$0xff] }
 0x223   :  { %v913_v38 = vadd.f32 %v912_v31, %v6744_v58  ;;  %v982_v19 = vadd.f32 %v981_v16, %v6745_v30  ;;  %v842_v30 = vld [vmem:[#allocation2 + $0x50] sm:$0x30] }
 0x224   :  { %v986_v20 = vrot.slane %v911_v36, 6  ;;  %v1014_v36 = vrot.slane %v5998_v63, 6 }
 0x225   :  { %v996_v13 = vrot.slane %v913_v38, 6  ;;  %v1006_v3 = vrot.slane %v982_v19, 6 }
 0x226   :  { %v988_v26 = vadd.f32 %v986_v20, %v838_v62  ;;  %v840_v20 = vld [vmem:[#allocation2 + $0x10] sm:$0xc] }
 0x227   :  { %v998_v56 = vadd.f32 %v996_v13, %v839_v46 }
 0x228   :  { %v3473_v41 = vmul.f32 -1.442695, %v988_v26 }
 0x229   :  { %v3474_v25 = vmul.f32 -1.442695, %v998_v56 }
 0x22a   :  { %5350 = vpow2.f32 %v3473_v41 }
 0x22b   :  { %5352 = vpow2.f32 %v3474_v25 }
 0x234   :  { %v5351_v42 = vpop.eup %5350 }
 0x235   :  { %v5353_v14 = vpop.eup %5352  ;;  %v992_v5 = vadd.f32 1.0, %v5351_v42  ;;  %v841_v42 = vld [vmem:[#allocation2 + $0x48] sm:$0x30] }
 0x236   :  { %v1002_v9 = vadd.f32 1.0, %v5353_v14 }
 0x237   :  { %5354 = vrcp.f32 %v992_v5 }
 0x238   :  { %5356 = vrcp.f32 %v1002_v9 }
 0x241   :  { %v5355_v31 = vpop.eup %5354 }
 0x242   :  { %v5357_v38 = vpop.eup %5356  ;;  %v1008_v62 = vmul.f32 %v5355_v31, %v1006_v3 }
 0x243   :  { %v1016_v46 = vmul.f32 %v5357_v38, %v1014_v36  ;;  %v1011_v31 = vsub.f32 1.0, %v5357_v38 }
 0x244   :  { %v1009_v26 = vadd.f32 %v1008_v62, %v840_v20 }
 0x245   :  { %v1087_v13 = vpop.f32.mrb[6].mxu1  ;;  %v1158_v41 = vpop.f32.mrb[18].mxu0 }
 0x246   :  { %5358 = vtanh.f32 %v1009_v26  ;;  %v1088_v56 = vadd.f32 %v1087_v13, %v5991_v47  ;;  %v1089_v25 = vpop.f32.mrb[7].mxu1  ;;  %v3948_v14 = vpop.f32.mrb[19].mxu0  ;;  %v1159_v38 = vadd.f32 %v1158_v41, %v6010_v33 }
 0x247   :  { %v1090_v5 = vadd.f32 %v1089_v25, %v5994_v53  ;;  %v1190_v14 = vrot.slane %v6041_v44, 2 }
 0x248   :  { %v1163_v9 = vrot.slane %v1088_v56, 4 }
 0x249   :  { %v1173_v16 = vrot.slane %v1090_v5, 4 }
 0x24a   :  { %v1165_v19 = vadd.f32 %v1163_v9, %v841_v42  ;;  %v843_v9 = vld [vmem:[#allocation2 + $0x58] sm:$0x30] }
 0x24b   :  { %v1175_v63 = vadd.f32 %v1173_v16, %v842_v30 }
 0x24c   :  { %v3475_v58 = vmul.f32 -1.442695, %v1165_v19 }
 0x24d   :  { %v3476_v3 = vmul.f32 -1.442695, %v1175_v63 }
 0x24e   :  { %5360 = vpow2.f32 %v3475_v58 }
 0x24f   :  { %5362 = vpow2.f32 %v3476_v3 }
 0x250   :  { %v5359_v36 = vpop.eup %5358 }
 0x251   :  { %v1012_v62 = vmul.f32 %v5359_v36, %v1011_v31  ;;  %v6746_v36 = vld [vmem:[#allocation20_spill] sm:$0xff] }
 0x253   :  { %v6085_v20 = vadd.f32 %v1016_v46, %v1012_v62  ;;  %v1183_v46 = vrot.slane %v1159_v38, 4  ;;  %v6747_v62 = vld [vmem:[#allocation13_spill] sm:$0xff] }
 0x254   :  { %v6753_v38 = vld [vmem:[#allocation17_spill] sm:$0xff] }
 0x255   :  { %v1201_v26 = vrot.slane %v6085_v20, 2 }
 0x257   :  { %1268 = vmatmul.mubr.f32.vlgmr.msra.gmra.mrb[8].mxu1 %v1201_v26  ;;  %3982 = vmatmul.mubr.f32.vlgmr.msra.gmra.mrb[20].mxu0 %v1201_v26  ;;  %v6748_v26 = vld [vmem:[#allocation14_spill] sm:$0xff] }
 0x258   :  { %v5361_v13 = vpop.eup %5360  ;;  %4676 = vmatpush1.bf16.msra.mxu1 %v5801_v32  ;;  %4707 = vmatpush3.bf16.msra.mxu0 %v5873_v12 }
 0x259   :  { %v5363_v56 = vpop.eup %5362  ;;  %v1169_v30 = vadd.f32 1.0, %v5361_v13  ;;  %4678 = vmatprep.subr.bf16.mxu1 %v5809_v49  ;;  %4708 = vmatprep.subr.bf16.mxu0 %v6734_v22  ;;  %v6749_v13 = vld [vmem:[#allocation21_spill] sm:$0xff] }
 0x25a   :  { %v1179_v58 = vadd.f32 1.0, %v5363_v56  ;;  %1443 = vmatprep.mubr.f32.mxu1 %v6735_v0  ;;  %4016 = vmatprep.mubr.msk.f32.mxu0 %vm5568_vm1, %v6735_v0  ;;  %v6750_v56 = vld [vmem:[#allocation15_spill] sm:$0xff] }
 0x25b   :  { %5364 = vrcp.f32 %v1169_v30  ;;  %v6751_v30 = vld [vmem:[#allocation16_spill] sm:$0xff] }
 0x25c   :  { %5366 = vrcp.f32 %v1179_v58  ;;  %4680 = vmatpush1.bf16.msra.mxu1 %v5816_v51  ;;  %4710 = vmatpush3.bf16.msra.mxu0 %v5882_v29  ;;  %v6752_v58 = vld [vmem:[#allocation22_spill] sm:$0xff] }
 0x25d   :  { %4682 = vmatprep.subr.bf16.mxu1 %v5823_v60  ;;  %4711 = vmatprep.subr.bf16.mxu0 %v6734_v22 }
 0x260   :  { %4684 = vmatpush1.bf16.msra.mxu1 %v5827_v7  ;;  %4713 = vmatpush3.bf16.msra.mxu0 %v5889_v35 }
 0x261   :  { %4686 = vmatprep.subr.bf16.mxu1 %v5833_v10  ;;  %4714 = vmatprep.subr.bf16.mxu0 %v6734_v22 }
 0x264   :  { %4688 = vmatpush1.bf16.msra.mxu1 %v5837_v21  ;;  %4716 = vmatpush3.bf16.msra.mxu0 %v5897_v45 }
 0x265   :  { %v5365_v25 = vpop.eup %5364  ;;  %4690 = vmatprep.subr.bf16.mxu1 %v5843_v23  ;;  %4717 = vmatprep.subr.bf16.mxu0 %v6734_v22 }
 0x266   :  { %v5367_v41 = vpop.eup %5366  ;;  %v1185_v5 = vmul.f32 %v5365_v25, %v1183_v46  ;;  %v6754_v46 = vld [vmem:[#allocation18_spill] sm:$0xff]  ;;  %v6755_v25 = vld [vmem:[#allocation23_spill] sm:$0xff] }
 0x267   :  { %v1192_v42 = vmul.f32 %v5367_v41, %v1190_v14  ;;  %v1188_v44 = vsub.f32 1.0, %v5367_v41  ;;  %v6756_v14 = vld [vmem:[#allocation19_spill] sm:$0xff] }
 0x268   :  { %v1186_v16 = vadd.f32 %v1185_v5, %v843_v9  ;;  %4692 = vmatpush1.bf16.msra.mxu1 %v5847_v37  ;;  %4719 = vmatpush3.bf16.msra.mxu0 %v5903_v52  ;;  %v6757_v9 = vld [vmem:[#allocation25_spill] sm:$0xff] }
 0x269   :  { %4694 = vmatprep.subr.bf16.mxu1 %v5853_v43  ;;  %4720 = vmatprep.subr.bf16.mxu0 %v6734_v22 }
 0x26a   :  { %5368 = vtanh.f32 %v1186_v16 }
 0x26c   :  { %4696 = vmatpush1.bf16.msra.mxu1 %v5857_v54  ;;  %4722 = vmatpush3.bf16.msra.mxu0 %v5909_v61 }
 0x26d   :  { %4698 = vmatprep.subr.bf16.mxu1 %v5863_v57  ;;  %4723 = vmatprep.subr.bf16.mxu0 %v6734_v22 }
 0x270   :  { %4700 = vmatpush1.bf16.msra.mxu1 %v5867_v6  ;;  %4725 = vmatpush3.bf16.msra.mxu0 %v5915_v1 }
 0x271   :  { %4702 = vmatprep.subr.bf16.mxu1 %v5871_v11  ;;  %4726 = vmatprep.subr.bf16.mxu0 %v6734_v22 }
 0x274   :  { %v5369_v19 = vpop.eup %5368  ;;  %4704 = vmatpush1.bf16.msra.mxu1 %v5878_v24  ;;  %4728 = vmatpush3.bf16.msra.mxu0 %v5921_v15 }
 0x275   :  { %v1189_v63 = vmul.f32 %v5369_v19, %v1188_v44  ;;  %4730 = vmatprep.subr.bf16.mxu1 %v5647_v4  ;;  %4761 = vmatprep.subr.bf16.mxu0 %v6734_v22  ;;  %v6758_v19 = vld [vmem:[#allocation26_spill] sm:$0xff] }
 0x277   :  { %v6125_v3 = vadd.f32 %v1192_v42, %v1189_v63 }
 0x279   :  { %v1377_v31 = vrot.slane %v6125_v3, 4 }
 0x27b   :  { %1444 = vmatmul.mubr.f32.vlgmr.msra.gmra.mrb[10].mxu1 %v1377_v31  ;;  %4017 = vmatmul.mubr.f32.vlgmr.msra.gmra.mrb[22].mxu0 %v1377_v31 }
 0x27c   :  { %4732 = vmatpush1.bf16.msra.mxu1 %v5655_v8  ;;  %4763 = vmatpush3.bf16.msra.mxu0 %v5783_v28 }
 0x27d   :  { %4734 = vmatprep.subr.bf16.mxu1 %v5665_v17  ;;  %4764 = vmatprep.subr.bf16.mxu0 %v6734_v22 }
 0x27e   :  { %1625 = vmatprep.mubr.f32.mxu1 %v6735_v0  ;;  %4051 = vmatprep.mubr.msk.f32.mxu0 %vm5568_vm1, %v6735_v0 }
 0x280   :  { %4736 = vmatpush1.bf16.msra.mxu1 %v5667_v18  ;;  %4766 = vmatpush3.bf16.msra.mxu0 %v5794_v39 }
 0x281   :  { %4738 = vmatprep.subr.bf16.mxu1 %v5682_v27  ;;  %4767 = vmatprep.subr.bf16.mxu0 %v6734_v22 }
 0x284   :  { %4740 = vmatpush1.bf16.msra.mxu1 %v5699_v34  ;;  %4769 = vmatpush3.bf16.msra.mxu0 %v5807_v48 }
 0x285   :  { %4742 = vmatprep.subr.bf16.mxu1 %v5705_v40  ;;  %4770 = vmatprep.subr.bf16.mxu0 %v6734_v22 }
 0x288   :  { %4744 = vmatpush1.bf16.msra.mxu1 %v5722_v50  ;;  %4772 = vmatpush3.bf16.msra.mxu0 %v5821_v59 }
 0x289   :  { %4746 = vmatprep.subr.bf16.mxu1 %v5733_v55  ;;  %4773 = vmatprep.subr.bf16.mxu0 %v6734_v22 }
 0x28c   :  { %4748 = vmatpush1.bf16.msra.mxu1 %v5754_v2  ;;  %4775 = vmatpush3.bf16.msra.mxu0 %v6746_v36 }
 0x28d   :  { %4750 = vmatprep.subr.bf16.mxu1 %v6747_v62  ;;  %4776 = vmatprep.subr.bf16.mxu0 %v6734_v22 }
 0x290   :  { %4752 = vmatpush1.bf16.msra.mxu1 %v6748_v26  ;;  %4778 = vmatpush3.bf16.msra.mxu0 %v6749_v13 }
 0x291   :  { %4754 = vmatprep.subr.bf16.mxu1 %v6750_v56  ;;  %4779 = vmatprep.subr.bf16.mxu0 %v6734_v22  ;;  %v1195_v56 = vld [vmem:[#allocation2 + $0x8] sm:$0x30] }
 0x294   :  { %4756 = vmatpush1.bf16.msra.mxu1 %v6751_v30  ;;  %4781 = vmatpush3.bf16.msra.mxu0 %v6752_v58 }
 0x295   :  { %4758 = vmatprep.subr.bf16.mxu1 %v6753_v38  ;;  %4782 = vmatprep.subr.bf16.mxu0 %v6734_v22  ;;  %v1194_v38 = vld [vmem:[#allocation2] sm:$0x30] }
 0x298   :  { %4760 = vmatpush1.bf16.msra.mxu1 %v6754_v46  ;;  %4784 = vmatpush3.bf16.msra.mxu0 %v6755_v25 }
 0x299   :  { %4786 = vmatprep.subr.bf16.mxu1 %v6756_v14  ;;  %4817 = vmatprep.subr.bf16.mxu0 %v6734_v22 }
 0x32a   :  { %v1269_v41 = vpop.f32.mrb[8].mxu1  ;;  %v1340_v5 = vpop.f32.mrb[20].mxu0 }
 0x32b   :  { %v1270_v42 = vadd.f32 %v1269_v41, %v6757_v9  ;;  %v1271_v16 = vpop.f32.mrb[9].mxu1  ;;  %v3983_v44 = vpop.f32.mrb[21].mxu0  ;;  %v6759_v41 = vld [vmem:[#allocation27_spill] sm:$0xff] }
 0x32c   :  { %v1272_v63 = vadd.f32 %v1271_v16, %v6758_v19  ;;  %v1341_v44 = vadd.f32 %v1340_v5, %v6759_v41  ;;  %v1198_v41 = vld [vmem:[#allocation2 + $0x50] sm:$0xc] }
 0x32d   :  { %v1345_v31 = vrot.slane %v1270_v42, 4  ;;  %v1372_v42 = vrot.slane %v6085_v20, 6 }
 0x32e   :  { %v1355_v58 = vrot.slane %v1272_v63, 4  ;;  %v1365_v9 = vrot.slane %v1341_v44, 4 }
 0x32f   :  { %v1347_v30 = vadd.f32 %v1345_v31, %v1194_v38  ;;  %v1196_v31 = vld [vmem:[#allocation2 + $0x10] sm:$0x30] }
 0x330   :  { %v1357_v46 = vadd.f32 %v1355_v58, %v1195_v56 }
 0x331   :  { %v3477_v13 = vmul.f32 -1.442695, %v1347_v30 }
 0x332   :  { %v3478_v25 = vmul.f32 -1.442695, %v1357_v46 }
 0x333   :  { %5370 = vpow2.f32 %v3477_v13 }
 0x334   :  { %5372 = vpow2.f32 %v3478_v25 }
 0x33d   :  { %v5371_v14 = vpop.eup %5370 }
 0x33e   :  { %v5373_v26 = vpop.eup %5372  ;;  %v1351_v62 = vadd.f32 1.0, %v5371_v14  ;;  %v1197_v14 = vld [vmem:[#allocation2 + $0x48] sm:$0xc] }
 0x33f   :  { %v1361_v36 = vadd.f32 1.0, %v5373_v26 }
 0x340   :  { %5374 = vrcp.f32 %v1351_v62 }
 0x341   :  { %5376 = vrcp.f32 %v1361_v36 }
 0x34a   :  { %v5375_v16 = vpop.eup %5374 }
 0x34b   :  { %v5377_v63 = vpop.eup %5376  ;;  %v1367_v38 = vmul.f32 %v5375_v16, %v1365_v9 }
 0x34c   :  { %v1374_v56 = vmul.f32 %v5377_v63, %v1372_v42  ;;  %v1370_v16 = vsub.f32 1.0, %v5377_v63 }
 0x34d   :  { %v1368_v30 = vadd.f32 %v1367_v38, %v1196_v31 }
 0x34e   :  { %v1445_v58 = vpop.f32.mrb[10].mxu1  ;;  %v1516_v13 = vpop.f32.mrb[22].mxu0 }
 0x34f   :  { %5378 = vtanh.f32 %v1368_v30  ;;  %v1446_v46 = vadd.f32 %v1445_v58, %v5991_v47  ;;  %v1447_v25 = vpop.f32.mrb[11].mxu1  ;;  %v4018_v26 = vpop.f32.mrb[23].mxu0  ;;  %v1517_v63 = vadd.f32 %v1516_v13, %v6010_v33 }
 0x350   :  { %v1448_v36 = vadd.f32 %v1447_v25, %v5994_v53  ;;  %v1548_v26 = vrot.slane %v6125_v3, 2 }
 0x351   :  { %v1521_v62 = vrot.slane %v1446_v46, 6 }
 0x352   :  { %v1531_v5 = vrot.slane %v1448_v36, 6 }
 0x353   :  { %v1523_v44 = vadd.f32 %v1521_v62, %v1197_v14  ;;  %v1199_v62 = vld [vmem:[#allocation2 + $0x58] sm:$0xc] }
 0x354   :  { %v1533_v20 = vadd.f32 %v1531_v5, %v1198_v41 }
 0x355   :  { %v3479_v19 = vmul.f32 -1.442695, %v1523_v44 }
 0x356   :  { %v3480_v9 = vmul.f32 -1.442695, %v1533_v20 }
 0x357   :  { %5380 = vpow2.f32 %v3479_v19 }
 0x358   :  { %5382 = vpow2.f32 %v3480_v9 }
 0x359   :  { %v5379_v42 = vpop.eup %5378 }
 0x35a   :  { %v1371_v38 = vmul.f32 %v5379_v42, %v1370_v16  ;;  %v6760_v42 = vld [vmem:[#allocation20_spill] sm:$0xff] }
 0x35c   :  { %v6169_v31 = vadd.f32 %v1374_v56, %v1371_v38  ;;  %v1541_v56 = vrot.slane %v1517_v63, 6  ;;  %v6761_v38 = vld [vmem:[#allocation13_spill] sm:$0xff] }
 0x35d   :  { %v6767_v63 = vld [vmem:[#allocation17_spill] sm:$0xff] }
 0x35e   :  { %v1559_v30 = vrot.slane %v6169_v31, 4 }
 0x360   :  { %1626 = vmatmul.mubr.f32.vlgmr.msra.gmra.mrb[12].mxu1 %v1559_v30  ;;  %4052 = vmatmul.mubr.f32.vlgmr.msra.gmra.mrb[24].mxu0 %v1559_v30  ;;  %v6762_v30 = vld [vmem:[#allocation14_spill] sm:$0xff] }
 0x361   :  { %v5381_v58 = vpop.eup %5380  ;;  %4788 = vmatpush1.bf16.msra.mxu1 %v5801_v32  ;;  %4819 = vmatpush3.bf16.msra.mxu0 %v5873_v12 }
 0x362   :  { %v5383_v46 = vpop.eup %5382  ;;  %v1527_v41 = vadd.f32 1.0, %v5381_v58  ;;  %4790 = vmatprep.subr.bf16.mxu1 %v5809_v49  ;;  %4820 = vmatprep.subr.bf16.mxu0 %v6734_v22  ;;  %v6763_v58 = vld [vmem:[#allocation21_spill] sm:$0xff] }
 0x363   :  { %v1537_v19 = vadd.f32 1.0, %v5383_v46  ;;  %1801 = vmatprep.mubr.f32.mxu1 %v6735_v0  ;;  %4086 = vmatprep.mubr.msk.f32.mxu0 %vm5568_vm1, %v6735_v0  ;;  %v6764_v46 = vld [vmem:[#allocation15_spill] sm:$0xff] }
 0x364   :  { %5384 = vrcp.f32 %v1527_v41  ;;  %v6765_v41 = vld [vmem:[#allocation16_spill] sm:$0xff] }
 0x365   :  { %5386 = vrcp.f32 %v1537_v19  ;;  %4792 = vmatpush1.bf16.msra.mxu1 %v5816_v51  ;;  %4822 = vmatpush3.bf16.msra.mxu0 %v5882_v29  ;;  %v6766_v19 = vld [vmem:[#allocation22_spill] sm:$0xff] }
 0x366   :  { %4794 = vmatprep.subr.bf16.mxu1 %v5823_v60  ;;  %4823 = vmatprep.subr.bf16.mxu0 %v6734_v22 }
 0x369   :  { %4796 = vmatpush1.bf16.msra.mxu1 %v5827_v7  ;;  %4825 = vmatpush3.bf16.msra.mxu0 %v5889_v35 }
 0x36a   :  { %4798 = vmatprep.subr.bf16.mxu1 %v5833_v10  ;;  %4826 = vmatprep.subr.bf16.mxu0 %v6734_v22 }
 0x36d   :  { %4800 = vmatpush1.bf16.msra.mxu1 %v5837_v21  ;;  %4828 = vmatpush3.bf16.msra.mxu0 %v5897_v45 }
 0x36e   :  { %v5385_v25 = vpop.eup %5384  ;;  %4802 = vmatprep.subr.bf16.mxu1 %v5843_v23  ;;  %4829 = vmatprep.subr.bf16.mxu0 %v6734_v22 }
 0x36f   :  { %v5387_v13 = vpop.eup %5386  ;;  %v1543_v36 = vmul.f32 %v5385_v25, %v1541_v56  ;;  %v6768_v56 = vld [vmem:[#allocation18_spill] sm:$0xff]  ;;  %v6769_v25 = vld [vmem:[#allocation23_spill] sm:$0xff] }
 0x370   :  { %v1550_v14 = vmul.f32 %v5387_v13, %v1548_v26  ;;  %v1546_v3 = vsub.f32 1.0, %v5387_v13  ;;  %v6770_v26 = vld [vmem:[#allocation19_spill] sm:$0xff] }
 0x371   :  { %v1544_v5 = vadd.f32 %v1543_v36, %v1199_v62  ;;  %4804 = vmatpush1.bf16.msra.mxu1 %v5847_v37  ;;  %4831 = vmatpush3.bf16.msra.mxu0 %v5903_v52  ;;  %v6771_v62 = vld [vmem:[#allocation25_spill] sm:$0xff] }
 0x372   :  { %4806 = vmatprep.subr.bf16.mxu1 %v5853_v43  ;;  %4832 = vmatprep.subr.bf16.mxu0 %v6734_v22 }
 0x373   :  { %5388 = vtanh.f32 %v1544_v5 }
 0x375   :  { %4808 = vmatpush1.bf16.msra.mxu1 %v5857_v54  ;;  %4834 = vmatpush3.bf16.msra.mxu0 %v5909_v61 }
 0x376   :  { %4810 = vmatprep.subr.bf16.mxu1 %v5863_v57  ;;  %4835 = vmatprep.subr.bf16.mxu0 %v6734_v22 }
 0x379   :  { %4812 = vmatpush1.bf16.msra.mxu1 %v5867_v6  ;;  %4837 = vmatpush3.bf16.msra.mxu0 %v5915_v1 }
 0x37a   :  { %4814 = vmatprep.subr.bf16.mxu1 %v5871_v11  ;;  %4838 = vmatprep.subr.bf16.mxu0 %v6734_v22 }
 0x37d   :  { %v5389_v44 = vpop.eup %5388  ;;  %4816 = vmatpush1.bf16.msra.mxu1 %v5878_v24  ;;  %4840 = vmatpush3.bf16.msra.mxu0 %v5921_v15 }
 0x37e   :  { %v1547_v20 = vmul.f32 %v5389_v44, %v1546_v3  ;;  %4842 = vmatprep.subr.bf16.mxu1 %v5647_v4  ;;  %4873 = vmatprep.subr.bf16.mxu0 %v6734_v22  ;;  %v6772_v44 = vld [vmem:[#allocation26_spill] sm:$0xff] }
 0x380   :  { %v1551_v9 = vadd.f32 %v1550_v14, %v1547_v20 }
 0x382   :  { %v6209_v16 = vrot.slane %v1551_v9, 2 }
 0x384   :  { %1802 = vmatmul.mubr.f32.vlgmr.msra.gmra.mrb[14].mxu1 %v6209_v16  ;;  %4087 = vmatmul.mubr.f32.vlgmr.msra.gmra.mrb[26].mxu0 %v6209_v16 }
 0x385   :  { %4844 = vmatpush1.bf16.msra.mxu1 %v5655_v8  ;;  %4875 = vmatpush3.bf16.msra.mxu0 %v5783_v28 }
 0x386   :  { %4846 = vmatprep.subr.bf16.mxu1 %v5665_v17  ;;  %4876 = vmatprep.subr.bf16.mxu0 %v6734_v22 }
 0x387   :  { %1972 = vmatprep.mubr.f32.mxu1 %v6735_v0  ;;  %4121 = vmatprep.mubr.msk.f32.mxu0 %vm5568_vm1, %v6735_v0 }
 0x389   :  { %4848 = vmatpush1.bf16.msra.mxu1 %v5667_v18  ;;  %4878 = vmatpush3.bf16.msra.mxu0 %v5794_v39 }
 0x38a   :  { %4850 = vmatprep.subr.bf16.mxu1 %v5682_v27  ;;  %4879 = vmatprep.subr.bf16.mxu0 %v6734_v22 }
 0x38d   :  { %4852 = vmatpush1.bf16.msra.mxu1 %v5699_v34  ;;  %4881 = vmatpush3.bf16.msra.mxu0 %v5807_v48 }
 0x38e   :  { %4854 = vmatprep.subr.bf16.mxu1 %v5705_v40  ;;  %4882 = vmatprep.subr.bf16.mxu0 %v6734_v22 }
 0x391   :  { %4856 = vmatpush1.bf16.msra.mxu1 %v5722_v50  ;;  %4884 = vmatpush3.bf16.msra.mxu0 %v5821_v59 }
 0x392   :  { %4858 = vmatprep.subr.bf16.mxu1 %v5733_v55  ;;  %4885 = vmatprep.subr.bf16.mxu0 %v6734_v22 }
 0x395   :  { %4860 = vmatpush1.bf16.msra.mxu1 %v5754_v2  ;;  %4887 = vmatpush3.bf16.msra.mxu0 %v6760_v42 }
 0x396   :  { %4862 = vmatprep.subr.bf16.mxu1 %v6761_v38  ;;  %4888 = vmatprep.subr.bf16.mxu0 %v6734_v22 }
 0x399   :  { %4864 = vmatpush1.bf16.msra.mxu1 %v6762_v30  ;;  %4890 = vmatpush3.bf16.msra.mxu0 %v6763_v58 }
 0x39a   :  { %4866 = vmatprep.subr.bf16.mxu1 %v6764_v46  ;;  %4891 = vmatprep.subr.bf16.mxu0 %v6734_v22  ;;  %v1553_v46 = vld [vmem:[#allocation2 + $0x8] sm:$0xc0] }
 0x39d   :  { %4868 = vmatpush1.bf16.msra.mxu1 %v6765_v41  ;;  %4893 = vmatpush3.bf16.msra.mxu0 %v6766_v19 }
 0x39e   :  { %4870 = vmatprep.subr.bf16.mxu1 %v6767_v63  ;;  %4894 = vmatprep.subr.bf16.mxu0 %v6734_v22  ;;  %v1552_v63 = vld [vmem:[#allocation2] sm:$0xc0] }
 0x3a1   :  { %4872 = vmatpush1.bf16.msra.mxu1 %v6768_v56  ;;  %4896 = vmatpush3.bf16.msra.mxu0 %v6769_v25 }
 0x3a2   :  { %4898 = vmatprep.subr.bf16.mxu1 %v6770_v26  ;;  %4929 = vmatprep.subr.bf16.mxu0 %v6734_v22 }
 0x433   :  { %v1627_v13 = vpop.f32.mrb[12].mxu1  ;;  %v1698_v36 = vpop.f32.mrb[24].mxu0 }
 0x434   :  { %v1628_v14 = vadd.f32 %v1627_v13, %v6771_v62  ;;  %v1629_v5 = vpop.f32.mrb[13].mxu1  ;;  %v4053_v3 = vpop.f32.mrb[25].mxu0  ;;  %v6773_v13 = vld [vmem:[#allocation27_spill] sm:$0xff] }
 0x435   :  { %v1630_v20 = vadd.f32 %v1629_v5, %v6772_v44  ;;  %v1699_v3 = vadd.f32 %v1698_v36, %v6773_v13 }
 0x436   :  { %v1703_v9 = vrot.slane %v1628_v14, 2  ;;  %v1730_v14 = vrot.slane %v6169_v31, 6 }
 0x437   :  { %v1713_v19 = vrot.slane %v1630_v20, 2  ;;  %v1723_v62 = vrot.slane %v1699_v3, 2  ;;  %v1556_v3 = vld [vmem:[#allocation2 + $0x50] sm:$0x3] }
 0x438   :  { %v1705_v41 = vadd.f32 %v1703_v9, %v1552_v63  ;;  %v1554_v9 = vld [vmem:[#allocation2 + $0x10] sm:$0xc0] }
 0x439   :  { %v1715_v56 = vadd.f32 %v1713_v19, %v1553_v46 }
 0x43a   :  { %v3481_v58 = vmul.f32 -1.442695, %v1705_v41 }
 0x43b   :  { %v3482_v25 = vmul.f32 -1.442695, %v1715_v56 }
 0x43c   :  { %5390 = vpow2.f32 %v3481_v58 }
 0x43d   :  { %5392 = vpow2.f32 %v3482_v25 }
 0x446   :  { %v5391_v26 = vpop.eup %5390 }
 0x447   :  { %v5393_v30 = vpop.eup %5392  ;;  %v1709_v38 = vadd.f32 1.0, %v5391_v26 }
 0x448   :  { %v1719_v42 = vadd.f32 1.0, %v5393_v30 }
 0x449   :  { %5394 = vrcp.f32 %v1709_v38  ;;  %v1555_v38 = vld [vmem:[#allocation2 + $0x48] sm:$0x3] }
 0x44a   :  { %5396 = vrcp.f32 %v1719_v42 }
 0x453   :  { %v5395_v5 = vpop.eup %5394 }
 0x454   :  { %v5397_v20 = vpop.eup %5396  ;;  %v1725_v63 = vmul.f32 %v5395_v5, %v1723_v62 }
 0x455   :  { %v1732_v46 = vmul.f32 %v5397_v20, %v1730_v14  ;;  %v1728_v62 = vsub.f32 1.0, %v5397_v20 }
 0x456   :  { %v1726_v41 = vadd.f32 %v1725_v63, %v1554_v9 }
 0x457   :  { %v1803_v19 = vpop.f32.mrb[14].mxu1  ;;  %v1874_v58 = vpop.f32.mrb[26].mxu0 }
 0x458   :  { %5398 = vtanh.f32 %v1726_v41  ;;  %v1804_v56 = vadd.f32 %v1803_v19, %v5991_v47  ;;  %v1805_v25 = vpop.f32.mrb[15].mxu1  ;;  %v4088_v30 = vpop.f32.mrb[27].mxu0 }
 0x459   :  { %v1806_v42 = vadd.f32 %v1805_v25, %v5994_v53  ;;  %v1557_v30 = vld [vmem:[#allocation2 + $0x58] sm:$0x3] }
 0x45a   :  { %v1878_v26 = vadd.f32 %v1804_v56, %v1555_v38 }
 0x45b   :  { %v1885_v13 = vadd.f32 %v1806_v42, %v1556_v3 }
 0x45c   :  { %v3483_v36 = vmul.f32 -1.442695, %v1878_v26 }
 0x45d   :  { %v3484_v31 = vmul.f32 -1.442695, %v1885_v13 }
 0x45e   :  { %5400 = vpow2.f32 %v3483_v36 }
 0x45f   :  { %5402 = vpow2.f32 %v3484_v31 }
 0x462   :  { %v5399_v5 = vpop.eup %5398 }
 0x463   :  { %v1729_v14 = vmul.f32 %v5399_v5, %v1728_v62  ;;  %v6775_v62 = vld [vmem:[#allocation13_spill] sm:$0xff]  ;;  %v6776_v5 = vld [vmem:[#allocation14_spill] sm:$0xff] }
 0x465   :  { %v1733_v63 = vadd.f32 %v1732_v46, %v1729_v14  ;;  %v1875_v46 = vadd.f32 %v1874_v58, %v6010_v33  ;;  %v6777_v14 = vld [vmem:[#allocation21_spill] sm:$0xff] }
 0x467   :  { %v6254_v9 = vrot.slane %v1733_v63, 6  ;;  %v6778_v63 = vld [vmem:[#allocation15_spill] sm:$0xff] }
 0x468   :  { %v5401_v41 = vpop.eup %5400 }
 0x469   :  { %v1882_v19 = vadd.f32 1.0, %v5401_v41  ;;  %1973 = vmatmul.mubr.f32.vlgmr.msra.gmra.mrb[16].mxu1 %v6254_v9  ;;  %4122 = vmatmul.mubr.f32.vlgmr.msra.gmra.mrb[28].mxu0 %v6254_v9  ;;  %v5403_v13 = vpop.eup %5402  ;;  %v6779_v41 = vld [vmem:[#allocation16_spill] sm:$0xff] }
 0x46a   :  { %4900 = vmatpush1.bf16.msra.mxu1 %v5801_v32  ;;  %4931 = vmatpush3.bf16.msra.mxu0 %v5873_v12  ;;  %v1889_v20 = vadd.f32 1.0, %v5403_v13  ;;  %v6781_v13 = vld [vmem:[#allocation17_spill] sm:$0xff] }
 0x46b   :  { %5404 = vrcp.f32 %v1882_v19  ;;  %4902 = vmatprep.subr.bf16.mxu1 %v5809_v49  ;;  %4932 = vmatprep.subr.bf16.mxu0 %v6734_v22  ;;  %v6780_v19 = vld [vmem:[#allocation22_spill] sm:$0xff] }
 0x46c   :  { %2134 = vmatprep.mubr.f32.mxu1 %v6735_v0  ;;  %4156 = vmatprep.mubr.msk.f32.mxu0 %vm5568_vm1, %v6735_v0  ;;  %5406 = vrcp.f32 %v1889_v20  ;;  %v6782_v20 = vld [vmem:[#allocation18_spill] sm:$0xff] }
 0x46e   :  { %4904 = vmatpush1.bf16.msra.mxu1 %v5816_v51  ;;  %4934 = vmatpush3.bf16.msra.mxu0 %v5882_v29 }
 0x46f   :  { %4906 = vmatprep.subr.bf16.mxu1 %v5823_v60  ;;  %4935 = vmatprep.subr.bf16.mxu0 %v6734_v22 }
 0x472   :  { %4908 = vmatpush1.bf16.msra.mxu1 %v5827_v7  ;;  %4937 = vmatpush3.bf16.msra.mxu0 %v5889_v35 }
 0x473   :  { %4910 = vmatprep.subr.bf16.mxu1 %v5833_v10  ;;  %4938 = vmatprep.subr.bf16.mxu0 %v6734_v22 }
 0x475   :  { %v5405_v56 = vpop.eup %5404 }
 0x476   :  { %v1892_v25 = vmul.f32 %v5405_v56, %v1875_v46  ;;  %4912 = vmatpush1.bf16.msra.mxu1 %v5837_v21  ;;  %4940 = vmatpush3.bf16.msra.mxu0 %v5897_v45  ;;  %v5407_v58 = vpop.eup %5406  ;;  %v6783_v46 = vld [vmem:[#allocation23_spill] sm:$0xff] }
 0x477   :  { %4914 = vmatprep.subr.bf16.mxu1 %v5843_v23  ;;  %4941 = vmatprep.subr.bf16.mxu0 %v6734_v22  ;;  %v1895_v42 = vsub.f32 1.0, %v5407_v58  ;;  %v1897_v3 = vmul.f32 %v5407_v58, %v6209_v16  ;;  %v6774_v16 = vld [vmem:[#allocation20_spill] sm:$0xff]  ;;  %v6784_v56 = vld [vmem:[#allocation19_spill] sm:$0xff] }
 0x478   :  { %v1893_v38 = vadd.f32 %v1892_v25, %v1557_v30 }
 0x47a   :  { %5408 = vtanh.f32 %v1893_v38  ;;  %4916 = vmatpush1.bf16.msra.mxu1 %v5847_v37  ;;  %4943 = vmatpush3.bf16.msra.mxu0 %v5903_v52  ;;  %v6785_v38 = vld [vmem:[#allocation25_spill] sm:$0xff] }
 0x47b   :  { %4918 = vmatprep.subr.bf16.mxu1 %v5853_v43  ;;  %4944 = vmatprep.subr.bf16.mxu0 %v6734_v22 }
 0x47e   :  { %4920 = vmatpush1.bf16.msra.mxu1 %v5857_v54  ;;  %4946 = vmatpush3.bf16.msra.mxu0 %v5909_v61 }
 0x47f   :  { %4922 = vmatprep.subr.bf16.mxu1 %v5863_v57  ;;  %4947 = vmatprep.subr.bf16.mxu0 %v6734_v22 }
 0x482   :  { %4924 = vmatpush1.bf16.msra.mxu1 %v5867_v6  ;;  %4949 = vmatpush3.bf16.msra.mxu0 %v5915_v1 }
 0x483   :  { %4926 = vmatprep.subr.bf16.mxu1 %v5871_v11  ;;  %4950 = vmatprep.subr.bf16.mxu0 %v6734_v22 }
 0x484   :  { %v5409_v26 = vpop.eup %5408 }
 0x485   :  { %v1896_v36 = vmul.f32 %v5409_v26, %v1895_v42 }
 0x486   :  { %4928 = vmatpush1.bf16.msra.mxu1 %v5878_v24  ;;  %4952 = vmatpush3.bf16.msra.mxu0 %v5921_v15 }
 0x487   :  { %v6293_v31 = vadd.f32 %v1897_v3, %v1896_v36  ;;  %4954 = vmatprep.subr.bf16.mxu1 %v5647_v4  ;;  %4985 = vmatprep.subr.bf16.mxu0 %v6734_v22  ;;  %v1899_v36 = vld [vmem:[#allocation2 + $0x30] sm:$0x3] }
 0x489   :  { %2135 = vmatmul.mubr.f32.vlgmr.msra.gmra.mrb[18].mxu1 %v6293_v31  ;;  %4157 = vmatmul.mubr.f32.vlgmr.msra.gmra.mrb[30].mxu0 %v6293_v31 }
 0x48a   :  { %4956 = vmatpush1.bf16.msra.mxu1 %v5655_v8  ;;  %4987 = vmatpush3.bf16.msra.mxu0 %v5783_v28 }
 0x48b   :  { %4958 = vmatprep.subr.bf16.mxu1 %v5665_v17  ;;  %4988 = vmatprep.subr.bf16.mxu0 %v6734_v22 }
 0x48c   :  { %2314 = vmatprep.mubr.f32.mxu1 %v6735_v0  ;;  %4191 = vmatprep.mubr.msk.f32.mxu0 %vm5568_vm1, %v6735_v0 }
 0x48e   :  { %4960 = vmatpush1.bf16.msra.mxu1 %v5667_v18  ;;  %4990 = vmatpush3.bf16.msra.mxu0 %v5794_v39 }
 0x48f   :  { %4962 = vmatprep.subr.bf16.mxu1 %v5682_v27  ;;  %4991 = vmatprep.subr.bf16.mxu0 %v6734_v22 }
 0x492   :  { %4964 = vmatpush1.bf16.msra.mxu1 %v5699_v34  ;;  %4993 = vmatpush3.bf16.msra.mxu0 %v5807_v48 }
 0x493   :  { %4966 = vmatprep.subr.bf16.mxu1 %v5705_v40  ;;  %4994 = vmatprep.subr.bf16.mxu0 %v6734_v22 }
 0x496   :  { %4968 = vmatpush1.bf16.msra.mxu1 %v5722_v50  ;;  %4996 = vmatpush3.bf16.msra.mxu0 %v5821_v59 }
 0x497   :  { %4970 = vmatprep.subr.bf16.mxu1 %v5733_v55  ;;  %4997 = vmatprep.subr.bf16.mxu0 %v6734_v22 }
 0x49a   :  { %4972 = vmatpush1.bf16.msra.mxu1 %v5754_v2  ;;  %4999 = vmatpush3.bf16.msra.mxu0 %v6774_v16 }
 0x49b   :  { %4974 = vmatprep.subr.bf16.mxu1 %v6775_v62  ;;  %5000 = vmatprep.subr.bf16.mxu0 %v6734_v22  ;;  %v6786_v62 = vld [vmem:[#allocation27_spill] sm:$0xff] }
 0x49e   :  { %4976 = vmatpush1.bf16.msra.mxu1 %v6776_v5  ;;  %5002 = vmatpush3.bf16.msra.mxu0 %v6777_v14 }
 0x49f   :  { %4978 = vmatprep.subr.bf16.mxu1 %v6778_v63  ;;  %5003 = vmatprep.subr.bf16.mxu0 %v6734_v22 }
 0x4a2   :  { %4980 = vmatpush1.bf16.msra.mxu1 %v6779_v41  ;;  %5005 = vmatpush3.bf16.msra.mxu0 %v6780_v19  ;;  %v1900_v41 = vld [vmem:[#allocation2 + $0x38] sm:$0x3] }
 0x4a3   :  { %4982 = vmatprep.subr.bf16.mxu1 %v6781_v13  ;;  %5006 = vmatprep.subr.bf16.mxu0 %v6734_v22 }
 0x4a6   :  { %4984 = vmatpush1.bf16.msra.mxu1 %v6782_v20  ;;  %5008 = vmatpush3.bf16.msra.mxu0 %v6783_v46 }
 0x4a7   :  { %5010 = vmatprep.subr.bf16.mxu1 %v6784_v56  ;;  %5041 = vmatprep.subr.bf16.mxu0 %v6734_v22 }
 0x53c   :  { %v1974_v25 = vpop.f32.mrb[16].mxu1  ;;  %v2045_v30 = vpop.f32.mrb[28].mxu0 }
 0x53d   :  { %v1975_v58 = vadd.f32 %v1974_v25, %v6785_v38  ;;  %v1976_v42 = vpop.f32.mrb[17].mxu1  ;;  %v4123_v26 = vpop.f32.mrb[29].mxu0  ;;  %v2046_v16 = vadd.f32 %v2045_v30, %v6786_v62 }
 0x53e   :  { %v1977_v3 = vadd.f32 %v1976_v42, %v6772_v44  ;;  %v1901_v26 = vld [vmem:[#allocation2 + $0x40] sm:$0x3] }
 0x53f   :  { %v2049_v13 = vadd.f32 %v1975_v58, %v1899_v36  ;;  %v1903_v36 = vld [vmem:[#allocation2 + $0x20] sm:$0xc0] }
 0x540   :  { %v2056_v63 = vadd.f32 %v1977_v3, %v1900_v41 }
 0x541   :  { %v3485_v19 = vmul.f32 -1.442695, %v2049_v13 }
 0x542   :  { %v3486_v20 = vmul.f32 -1.442695, %v2056_v63 }
 0x543   :  { %5410 = vpow2.f32 %v3485_v19 }
 0x544   :  { %5412 = vpow2.f32 %v3486_v20 }
 0x54d   :  { %v5411_v46 = vpop.eup %5410 }
 0x54e   :  { %v2053_v56 = vadd.f32 1.0, %v5411_v46  ;;  %v5413_v14 = vpop.eup %5412  ;;  %v1902_v46 = vld [vmem:[#allocation2 + $0x18] sm:$0xc0] }
 0x54f   :  { %v2060_v5 = vadd.f32 1.0, %v5413_v14 }
 0x550   :  { %5414 = vrcp.f32 %v2053_v56 }
 0x551   :  { %5416 = vrcp.f32 %v2060_v5 }
 0x55a   :  { %v5415_v25 = vpop.eup %5414 }
 0x55b   :  { %v2063_v38 = vmul.f32 %v5415_v25, %v2046_v16  ;;  %v5417_v5 = vpop.eup %5416 }
 0x55c   :  { %v2136_v2 = vpop.f32.mrb[18].mxu1  ;;  %v2207_v42 = vpop.f32.mrb[30].mxu0  ;;  %v2066_v25 = vsub.f32 1.0, %v5417_v5 }
 0x55d   :  { %v2064_v58 = vadd.f32 %v2063_v38, %v1901_v26  ;;  %v2137_v13 = vadd.f32 %v2136_v2, %v5991_v47  ;;  %v2138_v41 = vpop.f32.mrb[19].mxu1  ;;  %v4158_v19 = vpop.f32.mrb[31].mxu0  ;;  %v2068_v2 = vmul.f32 %v5417_v5, %v6254_v9  ;;  %v2208_v9 = vadd.f32 %v2207_v42, %v6010_v33 }
 0x55e   :  { %v2139_v63 = vadd.f32 %v2138_v41, %v5994_v53 }
 0x55f   :  { %5418 = vtanh.f32 %v2064_v58  ;;  %v2212_v20 = vrot.slane %v2137_v13, 2 }
 0x560   :  { %v2222_v56 = vrot.slane %v2139_v63, 2 }
 0x561   :  { %v2214_v14 = vadd.f32 %v2212_v20, %v1902_v46  ;;  %v2232_v20 = vrot.slane %v2208_v9, 2  ;;  %v6793_v9 = vld [vmem:[#allocation16_spill] sm:$0xff] }
 0x562   :  { %v2224_v30 = vadd.f32 %v2222_v56, %v1903_v36  ;;  %v2240_v56 = vrot.slane %v6293_v31, 2  ;;  %v1904_v36 = vld [vmem:[#allocation2 + $0x28] sm:$0xc0] }
 0x563   :  { %v3487_v3 = vmul.f32 -1.442695, %v2214_v14 }
 0x564   :  { %v3488_v16 = vmul.f32 -1.442695, %v2224_v30 }
 0x565   :  { %5420 = vpow2.f32 %v3487_v3 }
 0x566   :  { %5422 = vpow2.f32 %v3488_v16 }
 0x569   :  { %v5419_v38 = vpop.eup %5418 }
 0x56a   :  { %v2067_v26 = vmul.f32 %v5419_v38, %v2066_v25 }
 0x56c   :  { %v6340_v19 = vadd.f32 %v2068_v2, %v2067_v26  ;;  %v6787_v26 = vld [vmem:[#allocation12_spill] sm:$0xff] }
 0x56d   :  { %v6788_v2 = vld [vmem:[#allocation20_spill] sm:$0xff] }
 0x56e   :  { %2315 = vmatmul.mubr.f32.vlgmr.msra.gmra.mrb[20].mxu1 %v6340_v19  ;;  %4192 = vmatmul.mubr.f32.vlgmr.msra.gmra.mrb[32].mxu0 %v6340_v19 }
 0x56f   :  { %v5421_v58 = vpop.eup %5420  ;;  %5012 = vmatpush1.bf16.msra.mxu1 %v5801_v32  ;;  %5043 = vmatpush3.bf16.msra.mxu0 %v5873_v12 }
 0x570   :  { %v5423_v13 = vpop.eup %5422  ;;  %v2218_v41 = vadd.f32 1.0, %v5421_v58  ;;  %5014 = vmatprep.subr.bf16.mxu1 %v5809_v49  ;;  %5044 = vmatprep.subr.bf16.mxu0 %v6734_v22  ;;  %v6789_v58 = vld [vmem:[#allocation13_spill] sm:$0xff] }
 0x571   :  { %v2228_v63 = vadd.f32 1.0, %v5423_v13  ;;  %2491 = vmatprep.mubr.f32.mxu1 %v6735_v0  ;;  %4226 = vmatprep.mubr.msk.f32.mxu0 %vm5568_vm1, %v6735_v0  ;;  %v6790_v13 = vld [vmem:[#allocation14_spill] sm:$0xff] }
 0x572   :  { %5424 = vrcp.f32 %v2218_v41  ;;  %v6791_v41 = vld [vmem:[#allocation21_spill] sm:$0xff] }
 0x573   :  { %5426 = vrcp.f32 %v2228_v63  ;;  %5016 = vmatpush1.bf16.msra.mxu1 %v5816_v51  ;;  %5046 = vmatpush3.bf16.msra.mxu0 %v5882_v29  ;;  %v6792_v63 = vld [vmem:[#allocation15_spill] sm:$0xff] }
 0x574   :  { %5018 = vmatprep.subr.bf16.mxu1 %v5823_v60  ;;  %5047 = vmatprep.subr.bf16.mxu0 %v6734_v22 }
 0x577   :  { %5020 = vmatpush1.bf16.msra.mxu1 %v5827_v7  ;;  %5049 = vmatpush3.bf16.msra.mxu0 %v5889_v35 }
 0x578   :  { %5022 = vmatprep.subr.bf16.mxu1 %v5833_v10  ;;  %5050 = vmatprep.subr.bf16.mxu0 %v6734_v22 }
 0x57b   :  { %5024 = vmatpush1.bf16.msra.mxu1 %v5837_v21  ;;  %5052 = vmatpush3.bf16.msra.mxu0 %v5897_v45 }
 0x57c   :  { %v5425_v46 = vpop.eup %5424  ;;  %5026 = vmatprep.subr.bf16.mxu1 %v5843_v23  ;;  %5053 = vmatprep.subr.bf16.mxu0 %v6734_v22 }
 0x57d   :  { %v5427_v42 = vpop.eup %5426  ;;  %v2234_v14 = vmul.f32 %v5425_v46, %v2232_v20  ;;  %v6794_v20 = vld [vmem:[#allocation22_spill] sm:$0xff]  ;;  %v6795_v46 = vld [vmem:[#allocation17_spill] sm:$0xff] }
 0x57e   :  { %v2242_v30 = vmul.f32 %v5427_v42, %v2240_v56  ;;  %v2237_v31 = vsub.f32 1.0, %v5427_v42  ;;  %v6796_v56 = vld [vmem:[#allocation18_spill] sm:$0xff]  ;;  %v6797_v42 = vld [vmem:[#allocation23_spill] sm:$0xff] }
 0x57f   :  { %v2235_v3 = vadd.f32 %v2234_v14, %v1904_v36  ;;  %5028 = vmatpush1.bf16.msra.mxu1 %v5847_v37  ;;  %5055 = vmatpush3.bf16.msra.mxu0 %v5903_v52  ;;  %v6798_v14 = vld [vmem:[#allocation19_spill] sm:$0xff] }
 0x580   :  { %5030 = vmatprep.subr.bf16.mxu1 %v5853_v43  ;;  %5056 = vmatprep.subr.bf16.mxu0 %v6734_v22 }
 0x581   :  { %5428 = vtanh.f32 %v2235_v3  ;;  %v6799_v3 = vld [vmem:[#allocation25_spill] sm:$0xff] }
 0x583   :  { %5032 = vmatpush1.bf16.msra.mxu1 %v5857_v54  ;;  %5058 = vmatpush3.bf16.msra.mxu0 %v5909_v61 }
 0x584   :  { %5034 = vmatprep.subr.bf16.mxu1 %v5863_v57  ;;  %5059 = vmatprep.subr.bf16.mxu0 %v6734_v22 }
 0x587   :  { %5036 = vmatpush1.bf16.msra.mxu1 %v5867_v6  ;;  %5061 = vmatpush3.bf16.msra.mxu0 %v5915_v1 }
 0x588   :  { %5038 = vmatprep.subr.bf16.mxu1 %v5871_v11  ;;  %5062 = vmatprep.subr.bf16.mxu0 %v6734_v22 }
 0x58b   :  { %v5429_v16 = vpop.eup %5428  ;;  %5040 = vmatpush1.bf16.msra.mxu1 %v5878_v24  ;;  %5064 = vmatpush3.bf16.msra.mxu0 %v5921_v15 }
 0x58c   :  { %v2238_v5 = vmul.f32 %v5429_v16, %v2237_v31  ;;  %5066 = vmatprep.subr.bf16.mxu1 %v5647_v4  ;;  %5097 = vmatprep.subr.bf16.mxu0 %v6734_v22 }
 0x58e   :  { %v6381_v25 = vadd.f32 %v2242_v30, %v2238_v5 }
 0x590   :  { %v2425_v38 = vrot.slane %v6381_v25, 6 }
 0x592   :  { %2492 = vmatmul.mubr.f32.vlgmr.msra.gmra.mrb[22].mxu1 %v2425_v38  ;;  %4227 = vmatmul.mubr.f32.vlgmr.msra.gmra.mrb[34].mxu0 %v2425_v38 }
 0x593   :  { %5068 = vmatpush1.bf16.msra.mxu1 %v5655_v8  ;;  %5099 = vmatpush3.bf16.msra.mxu0 %v5783_v28 }
 0x594   :  { %5070 = vmatprep.subr.bf16.mxu1 %v5665_v17  ;;  %5100 = vmatprep.subr.bf16.mxu0 %v6734_v22 }
 0x595   :  { %2673 = vmatprep.mubr.f32.mxu1 %v6735_v0  ;;  %4261 = vmatprep.mubr.msk.f32.mxu0 %vm5568_vm1, %v6735_v0 }
 0x597   :  { %5072 = vmatpush1.bf16.msra.mxu1 %v5667_v18  ;;  %5102 = vmatpush3.bf16.msra.mxu0 %v5794_v39 }
 0x598   :  { %5074 = vmatprep.subr.bf16.mxu1 %v5682_v27  ;;  %5103 = vmatprep.subr.bf16.mxu0 %v6734_v22 }
 0x59b   :  { %5076 = vmatpush1.bf16.msra.mxu1 %v5699_v34  ;;  %5105 = vmatpush3.bf16.msra.mxu0 %v5807_v48 }
 0x59c   :  { %5078 = vmatprep.subr.bf16.mxu1 %v5705_v40  ;;  %5106 = vmatprep.subr.bf16.mxu0 %v6734_v22 }
 0x59f   :  { %5080 = vmatpush1.bf16.msra.mxu1 %v5722_v50  ;;  %5108 = vmatpush3.bf16.msra.mxu0 %v5821_v59 }
 0x5a0   :  { %5082 = vmatprep.subr.bf16.mxu1 %v5733_v55  ;;  %5109 = vmatprep.subr.bf16.mxu0 %v6734_v22 }
 0x5a3   :  { %5084 = vmatpush1.bf16.msra.mxu1 %v6787_v26  ;;  %5111 = vmatpush3.bf16.msra.mxu0 %v6788_v2 }
 0x5a4   :  { %5086 = vmatprep.subr.bf16.mxu1 %v6789_v58  ;;  %5112 = vmatprep.subr.bf16.mxu0 %v6734_v22 }
 0x5a7   :  { %5088 = vmatpush1.bf16.msra.mxu1 %v6790_v13  ;;  %5114 = vmatpush3.bf16.msra.mxu0 %v6791_v41  ;;  %v2245_v41 = vld [vmem:[#allocation2 + $0x38] sm:$0xc] }
 0x5a8   :  { %5090 = vmatprep.subr.bf16.mxu1 %v6792_v63  ;;  %5115 = vmatprep.subr.bf16.mxu0 %v6734_v22 }
 0x5ab   :  { %5092 = vmatpush1.bf16.msra.mxu1 %v6793_v9  ;;  %5117 = vmatpush3.bf16.msra.mxu0 %v6794_v20 }
 0x5ac   :  { %5094 = vmatprep.subr.bf16.mxu1 %v6795_v46  ;;  %5118 = vmatprep.subr.bf16.mxu0 %v6734_v22  ;;  %v2244_v46 = vld [vmem:[#allocation2 + $0x30] sm:$0xc] }
 0x5af   :  { %5096 = vmatpush1.bf16.msra.mxu1 %v6796_v56  ;;  %5120 = vmatpush3.bf16.msra.mxu0 %v6797_v42 }
 0x5b0   :  { %5122 = vmatprep.subr.bf16.mxu1 %v6798_v14  ;;  %5153 = vmatprep.subr.bf16.mxu0 %v6734_v22 }
 0x641   :  { %v2316_v36 = vpop.f32.mrb[20].mxu1  ;;  %v2387_v30 = vpop.f32.mrb[32].mxu0 }
 0x642   :  { %v2317_v31 = vadd.f32 %v2316_v36, %v6799_v3  ;;  %v2318_v16 = vpop.f32.mrb[21].mxu1  ;;  %v4193_v5 = vpop.f32.mrb[33].mxu0  ;;  %v2388_v36 = vadd.f32 %v2387_v30, %v6786_v62  ;;  %v2248_v62 = vld [vmem:[#allocation2 + $0x20] sm:$0x30] }
 0x643   :  { %v2319_v38 = vadd.f32 %v2318_v16, %v6772_v44 }
 0x644   :  { %v2392_v20 = vrot.slane %v2317_v31, 6  ;;  %v2412_v5 = vrot.slane %v2388_v36, 6  ;;  %v2420_v31 = vrot.slane %v6340_v19, 6 }
 0x645   :  { %v2402_v9 = vrot.slane %v2319_v38, 6 }
 0x646   :  { %v2394_v63 = vadd.f32 %v2392_v20, %v2244_v46  ;;  %v2246_v46 = vld [vmem:[#allocation2 + $0x40] sm:$0xc] }
 0x647   :  { %v2404_v56 = vadd.f32 %v2402_v9, %v2245_v41 }
 0x648   :  { %v3489_v13 = vmul.f32 -1.442695, %v2394_v63 }
 0x649   :  { %v3490_v42 = vmul.f32 -1.442695, %v2404_v56 }
 0x64a   :  { %5430 = vpow2.f32 %v3489_v13 }
 0x64b   :  { %5432 = vpow2.f32 %v3490_v42 }
 0x654   :  { %v5431_v14 = vpop.eup %5430 }
 0x655   :  { %v5433_v58 = vpop.eup %5432  ;;  %v2398_v2 = vadd.f32 1.0, %v5431_v14  ;;  %v2247_v14 = vld [vmem:[#allocation2 + $0x18] sm:$0x30] }
 0x656   :  { %v2408_v26 = vadd.f32 1.0, %v5433_v58 }
 0x657   :  { %5434 = vrcp.f32 %v2398_v2 }
 0x658   :  { %5436 = vrcp.f32 %v2408_v26 }
 0x661   :  { %v5435_v16 = vpop.eup %5434 }
 0x662   :  { %v5437_v38 = vpop.eup %5436  ;;  %v2414_v20 = vmul.f32 %v5435_v16, %v2412_v5 }
 0x663   :  { %v2422_v41 = vmul.f32 %v5437_v38, %v2420_v31  ;;  %v2417_v16 = vsub.f32 1.0, %v5437_v38 }
 0x664   :  { %v2415_v63 = vadd.f32 %v2414_v20, %v2246_v46 }
 0x665   :  { %v2493_v9 = vpop.f32.mrb[22].mxu1  ;;  %v2564_v13 = vpop.f32.mrb[34].mxu0 }
 0x666   :  { %5438 = vtanh.f32 %v2415_v63  ;;  %v2494_v56 = vadd.f32 %v2493_v9, %v5991_v47  ;;  %v2495_v42 = vpop.f32.mrb[23].mxu1  ;;  %v4228_v58 = vpop.f32.mrb[35].mxu0  ;;  %v2565_v38 = vadd.f32 %v2564_v13, %v6010_v33 }
 0x667   :  { %v2496_v26 = vadd.f32 %v2495_v42, %v5994_v53  ;;  %v2596_v58 = vrot.slane %v6381_v25, 2 }
 0x668   :  { %v2569_v2 = vrot.slane %v2494_v56, 4 }
 0x669   :  { %v2579_v30 = vrot.slane %v2496_v26, 4 }
 0x66a   :  { %v2571_v36 = vadd.f32 %v2569_v2, %v2247_v14  ;;  %v2249_v2 = vld [vmem:[#allocation2 + $0x28] sm:$0x30] }
 0x66b   :  { %v2581_v19 = vadd.f32 %v2579_v30, %v2248_v62 }
 0x66c   :  { %v3491_v44 = vmul.f32 -1.442695, %v2571_v36 }
 0x66d   :  { %v3492_v5 = vmul.f32 -1.442695, %v2581_v19 }
 0x66e   :  { %5440 = vpow2.f32 %v3491_v44 }
 0x66f   :  { %5442 = vpow2.f32 %v3492_v5 }
 0x670   :  { %v5439_v31 = vpop.eup %5438 }
 0x671   :  { %v2418_v20 = vmul.f32 %v5439_v31, %v2417_v16 }
 0x673   :  { %v6425_v46 = vadd.f32 %v2422_v41, %v2418_v20  ;;  %v2589_v41 = vrot.slane %v2565_v38, 4  ;;  %v2600_v38 = vld [vmem:[#allocation2 + $0x30] sm:$0x30] }
 0x675   :  { %v2607_v63 = vrot.slane %v6425_v46, 2 }
 0x677   :  { %2674 = vmatmul.mubr.f32.vlgmr.msra.gmra.mrb[24].mxu1 %v2607_v63  ;;  %4262 = vmatmul.mubr.f32.vlgmr.msra.gmra.mrb[36].mxu0 %v2607_v63 }
 0x678   :  { %v5441_v9 = vpop.eup %5440  ;;  %5124 = vmatpush1.bf16.msra.mxu1 %v5801_v32  ;;  %5155 = vmatpush3.bf16.msra.mxu0 %v5873_v12 }
 0x679   :  { %v5443_v56 = vpop.eup %5442  ;;  %v2575_v62 = vadd.f32 1.0, %v5441_v9  ;;  %5126 = vmatprep.subr.bf16.mxu1 %v5809_v49  ;;  %5156 = vmatprep.subr.bf16.mxu0 %v6734_v22 }
 0x67a   :  { %v2585_v44 = vadd.f32 1.0, %v5443_v56  ;;  %2849 = vmatprep.mubr.f32.mxu1 %v6735_v0  ;;  %4296 = vmatprep.mubr.msk.f32.mxu0 %vm5568_vm1, %v6735_v0  ;;  %v6812_v56 = vld [vmem:[#allocation26_spill] sm:$0xff] }
 0x67b   :  { %5444 = vrcp.f32 %v2575_v62 }
 0x67c   :  { %5446 = vrcp.f32 %v2585_v44  ;;  %5128 = vmatpush1.bf16.msra.mxu1 %v5816_v51  ;;  %5158 = vmatpush3.bf16.msra.mxu0 %v5882_v29 }
 0x67d   :  { %5130 = vmatprep.subr.bf16.mxu1 %v5823_v60  ;;  %5159 = vmatprep.subr.bf16.mxu0 %v6734_v22 }
 0x680   :  { %5132 = vmatpush1.bf16.msra.mxu1 %v5827_v7  ;;  %5161 = vmatpush3.bf16.msra.mxu0 %v5889_v35 }
 0x681   :  { %5134 = vmatprep.subr.bf16.mxu1 %v5833_v10  ;;  %5162 = vmatprep.subr.bf16.mxu0 %v6734_v22 }
 0x684   :  { %5136 = vmatpush1.bf16.msra.mxu1 %v5837_v21  ;;  %5164 = vmatpush3.bf16.msra.mxu0 %v5897_v45 }
 0x685   :  { %v5445_v42 = vpop.eup %5444  ;;  %5138 = vmatprep.subr.bf16.mxu1 %v5843_v23  ;;  %5165 = vmatprep.subr.bf16.mxu0 %v6734_v22 }
 0x686   :  { %v5447_v13 = vpop.eup %5446  ;;  %v2591_v26 = vmul.f32 %v5445_v42, %v2589_v41 }
 0x687   :  { %v2598_v14 = vmul.f32 %v5447_v13, %v2596_v58  ;;  %v2594_v25 = vsub.f32 1.0, %v5447_v13  ;;  %v2601_v58 = vld [vmem:[#allocation2 + $0x38] sm:$0x30] }
 0x688   :  { %v2592_v30 = vadd.f32 %v2591_v26, %v2249_v2  ;;  %5140 = vmatpush1.bf16.msra.mxu1 %v5847_v37  ;;  %5167 = vmatpush3.bf16.msra.mxu0 %v5903_v52 }
 0x689   :  { %5142 = vmatprep.subr.bf16.mxu1 %v5853_v43  ;;  %5168 = vmatprep.subr.bf16.mxu0 %v6734_v22 }
 0x68a   :  { %5448 = vtanh.f32 %v2592_v30 }
 0x68c   :  { %5144 = vmatpush1.bf16.msra.mxu1 %v5857_v54  ;;  %5170 = vmatpush3.bf16.msra.mxu0 %v5909_v61 }
 0x68d   :  { %5146 = vmatprep.subr.bf16.mxu1 %v5863_v57  ;;  %5171 = vmatprep.subr.bf16.mxu0 %v6734_v22 }
 0x690   :  { %5148 = vmatpush1.bf16.msra.mxu1 %v5867_v6  ;;  %5173 = vmatpush3.bf16.msra.mxu0 %v5915_v1 }
 0x691   :  { %5150 = vmatprep.subr.bf16.mxu1 %v5871_v11  ;;  %5174 = vmatprep.subr.bf16.mxu0 %v6734_v22 }
 0x694   :  { %v5449_v36 = vpop.eup %5448  ;;  %5152 = vmatpush1.bf16.msra.mxu1 %v5878_v24  ;;  %5176 = vmatpush3.bf16.msra.mxu0 %v5921_v15 }
 0x695   :  { %v2595_v19 = vmul.f32 %v5449_v36, %v2594_v25  ;;  %5178 = vmatprep.subr.bf16.mxu1 %v5647_v4  ;;  %5209 = vmatprep.subr.bf16.mxu0 %v6734_v22  ;;  %v6800_v4 = vld [vmem:[#allocation12_spill] sm:$0xff] }
 0x697   :  { %v6465_v5 = vadd.f32 %v2598_v14, %v2595_v19  ;;  %v6813_v19 = vld [vmem:[#allocation27_spill] sm:$0xff] }
 0x699   :  { %v2783_v16 = vrot.slane %v6465_v5, 4 }
 0x69b   :  { %2850 = vmatmul.mubr.f32.vlgmr.msra.gmra.mrb[26].mxu1 %v2783_v16  ;;  %4297 = vmatmul.mubr.f32.vlgmr.msra.gmra.mrb[38].mxu0 %v2783_v16 }
 0x69c   :  { %5180 = vmatpush1.bf16.msra.mxu1 %v5655_v8  ;;  %5211 = vmatpush3.bf16.msra.mxu0 %v5783_v28  ;;  %v6801_v8 = vld [vmem:[#allocation20_spill] sm:$0xff]  ;;  %v6809_v28 = vld [vmem:[#allocation18_spill] sm:$0xff] }
 0x69d   :  { %5182 = vmatprep.subr.bf16.mxu1 %v5665_v17  ;;  %5212 = vmatprep.subr.bf16.mxu0 %v6734_v22  ;;  %v6802_v17 = vld [vmem:[#allocation13_spill] sm:$0xff] }
 0x69e   :  { %3031 = vmatprep.mubr.f32.mxu1 %v6735_v0  ;;  %4331 = vmatprep.mubr.msk.f32.mxu0 %vm5568_vm1, %v6735_v0 }
 0x6a0   :  { %5184 = vmatpush1.bf16.msra.mxu1 %v5667_v18  ;;  %5214 = vmatpush3.bf16.msra.mxu0 %v5794_v39  ;;  %v6803_v18 = vld [vmem:[#allocation14_spill] sm:$0xff]  ;;  %v6810_v39 = vld [vmem:[#allocation23_spill] sm:$0xff] }
 0x6a1   :  { %5186 = vmatprep.subr.bf16.mxu1 %v5682_v27  ;;  %5215 = vmatprep.subr.bf16.mxu0 %v6734_v22  ;;  %v6804_v27 = vld [vmem:[#allocation21_spill] sm:$0xff] }
 0x6a4   :  { %5188 = vmatpush1.bf16.msra.mxu1 %v5699_v34  ;;  %5217 = vmatpush3.bf16.msra.mxu0 %v5807_v48  ;;  %v6805_v34 = vld [vmem:[#allocation15_spill] sm:$0xff] }
 0x6a5   :  { %5190 = vmatprep.subr.bf16.mxu1 %v5705_v40  ;;  %5218 = vmatprep.subr.bf16.mxu0 %v6734_v22  ;;  %v6806_v40 = vld [vmem:[#allocation16_spill] sm:$0xff]  ;;  %v6811_v48 = vld [vmem:[#allocation19_spill] sm:$0xff] }
 0x6a8   :  { %5192 = vmatpush1.bf16.msra.mxu1 %v5722_v50  ;;  %5220 = vmatpush3.bf16.msra.mxu0 %v5821_v59  ;;  %v6807_v50 = vld [vmem:[#allocation22_spill] sm:$0xff] }
 0x6a9   :  { %5194 = vmatprep.subr.bf16.mxu1 %v5733_v55  ;;  %5221 = vmatprep.subr.bf16.mxu0 %v6734_v22  ;;  %v6808_v55 = vld [vmem:[#allocation17_spill] sm:$0xff] }
 0x6ac   :  { %5196 = vmatpush1.bf16.msra.mxu1 %v6800_v4  ;;  %5223 = vmatpush3.bf16.msra.mxu0 %v6801_v8 }
 0x6ad   :  { %5198 = vmatprep.subr.bf16.mxu1 %v6802_v17  ;;  %5224 = vmatprep.subr.bf16.mxu0 %v6734_v22  ;;  %v2778_v17 = vrot.slane %v6425_v46, 6 }
 0x6b0   :  { %5200 = vmatpush1.bf16.msra.mxu1 %v6803_v18  ;;  %5226 = vmatpush3.bf16.msra.mxu0 %v6804_v27 }
 0x6b1   :  { %5202 = vmatprep.subr.bf16.mxu1 %v6805_v34  ;;  %5227 = vmatprep.subr.bf16.mxu0 %v6734_v22  ;;  %v2602_v34 = vld [vmem:[#allocation2 + $0x40] sm:$0x30] }
 0x6b4   :  { %5204 = vmatpush1.bf16.msra.mxu1 %v6806_v40  ;;  %5229 = vmatpush3.bf16.msra.mxu0 %v6807_v50 }
 0x6b5   :  { %5206 = vmatprep.subr.bf16.mxu1 %v6808_v55  ;;  %5230 = vmatprep.subr.bf16.mxu0 %v6734_v22 }
 0x6b8   :  { %5208 = vmatpush1.bf16.msra.mxu1 %v6809_v28  ;;  %5232 = vmatpush3.bf16.msra.mxu0 %v6810_v39 }
 0x6b9   :  { %5234 = vmatprep.subr.bf16.mxu1 %v6811_v48  ;;  %5265 = vmatprep.subr.bf16.mxu0 %v6734_v22 }
 0x74a   :  { %v2675_v59 = vpop.f32.mrb[24].mxu1  ;;  %v2746_v31 = vpop.f32.mrb[36].mxu0 }
 0x74b   :  { %v2676_v20 = vadd.f32 %v2675_v59, %v6799_v3  ;;  %v2677_v63 = vpop.f32.mrb[25].mxu1  ;;  %v4263_v9 = vpop.f32.mrb[37].mxu0  ;;  %v2747_v16 = vadd.f32 %v2746_v31, %v6813_v19  ;;  %v2603_v31 = vld [vmem:[#allocation2 + $0x18] sm:$0xc] }
 0x74c   :  { %v2678_v62 = vadd.f32 %v2677_v63, %v6812_v56 }
 0x74d   :  { %v2751_v44 = vrot.slane %v2676_v20, 4  ;;  %v2771_v4 = vrot.slane %v2747_v16, 4  ;;  %v3327_v16 = vld [vmem:[%s6678_s7 + $0xa0] sm:$0xff] }
 0x74e   :  { %v2761_v41 = vrot.slane %v2678_v62, 4 }
 0x74f   :  { %v2753_v42 = vadd.f32 %v2751_v44, %v2600_v38  ;;  %v2604_v44 = vld [vmem:[#allocation2 + $0x20] sm:$0xc] }
 0x750   :  { %v2763_v13 = vadd.f32 %v2761_v41, %v2601_v58 }
 0x751   :  { %v3493_v26 = vmul.f32 -1.442695, %v2753_v42 }
 0x752   :  { %v3494_v2 = vmul.f32 -1.442695, %v2763_v13 }
 0x753   :  { %5450 = vpow2.f32 %v3493_v26 }
 0x754   :  { %5452 = vpow2.f32 %v3494_v2 }
 0x75d   :  { %v5451_v14 = vpop.eup %5450 }
 0x75e   :  { %v5453_v30 = vpop.eup %5452  ;;  %v2757_v25 = vadd.f32 1.0, %v5451_v14 }
 0x75f   :  { %v2767_v36 = vadd.f32 1.0, %v5453_v30 }
 0x760   :  { %5454 = vrcp.f32 %v2757_v25 }
 0x761   :  { %5456 = vrcp.f32 %v2767_v36 }
 0x76a   :  { %v5455_v8 = vpop.eup %5454 }
 0x76b   :  { %v5457_v18 = vpop.eup %5456  ;;  %v2773_v27 = vmul.f32 %v5455_v8, %v2771_v4  ;;  %v3328_v4 = vld [vmem:[%s6678_s7 + $0xa8] sm:$0xff] }
 0x76c   :  { %v2780_v40 = vmul.f32 %v5457_v18, %v2778_v17  ;;  %v2776_v42 = vsub.f32 1.0, %v5457_v18  ;;  %v5297_v8 = vpack.c.bf16 %v3328_v4, %v3327_v16  ;;  %v3311_v17 = vld [vmem:[%s6678_s7 + $0x20] sm:$0xff]  ;;  %v3312_v18 = vld [vmem:[%s6678_s7 + $0x28] sm:$0xff] }
 0x76d   :  { %v2774_v50 = vadd.f32 %v2773_v27, %v2602_v34  ;;  %v5299_v27 = vpack.c.bf16 %v3312_v18, %v3311_v17  ;;  %v3329_v34 = vld [vmem:[%s6678_s7 + $0xb0] sm:$0xff] }
 0x76e   :  { %v2851_v55 = vpop.f32.mrb[26].mxu1  ;;  %v2922_v28 = vpop.f32.mrb[38].mxu0 }
 0x76f   :  { %5458 = vtanh.f32 %v2774_v50  ;;  %v2852_v39 = vadd.f32 %v2851_v55, %v5991_v47  ;;  %v2853_v48 = vpop.f32.mrb[27].mxu1  ;;  %v4298_v59 = vpop.f32.mrb[39].mxu0  ;;  %v3313_v55 = vld [vmem:[%s6678_s7 + $0x30] sm:$0xff] }
 0x770   :  { %v2854_v20 = vadd.f32 %v2853_v48, %v5994_v53  ;;  %v3331_v48 = vld [vmem:[%s6678_s7 + $0xc0] sm:$0xff]  ;;  %v3332_v59 = vld [vmem:[%s6678_s7 + $0xc8] sm:$0xff] }
 0x771   :  { %v2927_v63 = vrot.slane %v2852_v39, 6 }
 0x772   :  { %v2937_v9 = vrot.slane %v2854_v20, 6  ;;  %v3315_v20 = vld [vmem:[%s6678_s7 + $0x40] sm:$0xff] }
 0x773   :  { %v2929_v62 = vadd.f32 %v2927_v63, %v2603_v31  ;;  %v5305_v63 = vpack.c.bf16 %v3332_v59, %v3331_v48  ;;  %v3316_v31 = vld [vmem:[%s6678_s7 + $0x48] sm:$0xff]  ;;  %v2962_v59 = vld [vmem:[#allocation2 + $0x20] sm:$0x3] }
 0x774   :  { %v2939_v46 = vadd.f32 %v2937_v9, %v2604_v44  ;;  %v3333_v9 = vld [vmem:[%s6678_s7 + $0xd0] sm:$0xff]  ;;  %v5307_v44 = vpack.c.bf16 %v3316_v31, %v3315_v20 }
 0x775   :  { %v3495_v38 = vmul.f32 -1.442695, %v2929_v62  ;;  %v3334_v62 = vld [vmem:[%s6678_s7 + $0xd8] sm:$0xff] }
 0x776   :  { %v3496_v41 = vmul.f32 -1.442695, %v2939_v46  ;;  %v5309_v46 = vpack.c.bf16 %v3334_v62, %v3333_v9 }
 0x777   :  { %5460 = vpow2.f32 %v3495_v38  ;;  %v3317_v38 = vld [vmem:[%s6678_s7 + $0x50] sm:$0xff] }
 0x778   :  { %5462 = vpow2.f32 %v3496_v41  ;;  %v3318_v41 = vld [vmem:[%s6678_s7 + $0x58] sm:$0xff] }
 0x779   :  { %v5459_v58 = vpop.eup %5458 }
 0x77a   :  { %v2777_v13 = vmul.f32 %v5459_v58, %v2776_v42  ;;  %v3335_v42 = vld [vmem:[%s6678_s7 + $0xe0] sm:$0xff]  ;;  %v3336_v58 = vld [vmem:[%s6678_s7 + $0xe8] sm:$0xff] }
 0x77c   :  { %v6509_v26 = vadd.f32 %v2780_v40, %v2777_v13  ;;  %v3330_v40 = vld [vmem:[%s6678_s7 + $0xb8] sm:$0xff]  ;;  %v5311_v13 = vpack.c.bf16 %v3318_v41, %v3317_v38 }
 0x77d   :  { %v5301_v50 = vpack.c.bf16 %v3330_v40, %v3329_v34 }
 0x77e   :  { %v2965_v2 = vrot.slane %v6509_v26, 4 }
 0x780   :  { %3032 = vmatmul.mubr.f32.vlgmr.msra.gmra.mrb[28].mxu1 %v2965_v2  ;;  %4332 = vmatmul.mubr.f32.vlgmr.msra.gmra.mrb[40].mxu0 %v2965_v2  ;;  %v5313_v2 = vpack.c.bf16 %v3336_v58, %v3335_v42  ;;  %v2963_v58 = vld [vmem:[#allocation2 + $0x28] sm:$0x3] }
 0x781   :  { %v5461_v14 = vpop.eup %5460  ;;  %5236 = vmatpush1.bf16.msra.mxu1 %v5801_v32  ;;  %5267 = vmatpush3.bf16.msra.mxu0 %v5873_v12  ;;  %v2923_v32 = vadd.f32 %v2922_v28, %v6010_v33  ;;  %v3314_v28 = vld [vmem:[%s6678_s7 + $0x38] sm:$0xff] }
 0x782   :  { %v5463_v30 = vpop.eup %5462  ;;  %v2933_v25 = vadd.f32 1.0, %v5461_v14  ;;  %5238 = vmatprep.subr.bf16.mxu1 %v5809_v49  ;;  %5268 = vmatprep.subr.bf16.mxu0 %v6734_v22  ;;  %v5303_v39 = vpack.c.bf16 %v3314_v28, %v3313_v55  ;;  %v3319_v14 = vld [vmem:[%s6678_s7 + $0x60] sm:$0xff]  ;;  %v2961_v28 = vld [vmem:[#allocation2 + $0x18] sm:$0x3] }
 0x783   :  { %v2943_v36 = vadd.f32 1.0, %v5463_v30  ;;  %3207 = vmatprep.mubr.f32.mxu1 %v6735_v0  ;;  %4366 = vmatprep.mubr.msk.f32.mxu0 %vm5568_vm1, %v6735_v0  ;;  %v2947_v49 = vrot.slane %v2923_v32, 6  ;;  %v3320_v30 = vld [vmem:[%s6678_s7 + $0x68] sm:$0xff] }
 0x784   :  { %5464 = vrcp.f32 %v2933_v25  ;;  %v3337_v25 = vld [vmem:[%s6678_s7 + $0xf0] sm:$0xff]  ;;  %v5315_v32 = vpack.c.bf16 %v3320_v30, %v3319_v14 }
 0x785   :  { %5466 = vrcp.f32 %v2943_v36  ;;  %5240 = vmatpush1.bf16.msra.mxu1 %v5816_v51  ;;  %5270 = vmatpush3.bf16.msra.mxu0 %v5882_v29  ;;  %v2605_v29 = vld [vmem:[#allocation2 + $0x28] sm:$0xc]  ;;  %v3338_v36 = vld [vmem:[%s6678_s7 + $0xf8] sm:$0xff] }
 0x786   :  { %5242 = vmatprep.subr.bf16.mxu1 %v5823_v60  ;;  %5271 = vmatprep.subr.bf16.mxu0 %v6734_v22  ;;  %v2954_v60 = vrot.slane %v6465_v5, 2 }
 0x789   :  { %5244 = vmatpush1.bf16.msra.mxu1 %v5827_v7  ;;  %5273 = vmatpush3.bf16.msra.mxu0 %v5889_v35 }
 0x78a   :  { %5246 = vmatprep.subr.bf16.mxu1 %v5833_v10  ;;  %5274 = vmatprep.subr.bf16.mxu0 %v6734_v22 }
 0x78d   :  { %5248 = vmatpush1.bf16.msra.mxu1 %v5837_v21  ;;  %5276 = vmatpush3.bf16.msra.mxu0 %v5897_v45 }
 0x78e   :  { %v5465_v51 = vpop.eup %5464  ;;  %5250 = vmatprep.subr.bf16.mxu1 %v5843_v23  ;;  %5277 = vmatprep.subr.bf16.mxu0 %v6734_v22 }
 0x78f   :  { %v5467_v12 = vpop.eup %5466  ;;  %v2949_v7 = vmul.f32 %v5465_v51, %v2947_v49  ;;  %v5317_v49 = vpack.c.bf16 %v3338_v36, %v3337_v25  ;;  %v3321_v51 = vld [vmem:[%s6678_s7 + $0x70] sm:$0xff] }
 0x790   :  { %v2956_v35 = vmul.f32 %v5467_v12, %v2954_v60  ;;  %v2952_v10 = vsub.f32 1.0, %v5467_v12  ;;  %v3322_v60 = vld [vmem:[%s6678_s7 + $0x78] sm:$0xff] }
 0x791   :  { %v2950_v0 = vadd.f32 %v2949_v7, %v2605_v29  ;;  %5252 = vmatpush1.bf16.msra.mxu1 %v5847_v37  ;;  %5279 = vmatpush3.bf16.msra.mxu0 %v5903_v52  ;;  %v3325_v52 = vld [vmem:[%s6678_s7 + $0x90] sm:$0xff]  ;;  %v5319_v12 = vpack.c.bf16 %v3322_v60, %v3321_v51 }
 0x792   :  { %5254 = vmatprep.subr.bf16.mxu1 %v5853_v43  ;;  %5280 = vmatprep.subr.bf16.mxu0 %v6734_v22 }
 0x793   :  { %5468 = vtanh.f32 %v2950_v0 }
 0x795   :  { %5256 = vmatpush1.bf16.msra.mxu1 %v5857_v54  ;;  %5282 = vmatpush3.bf16.msra.mxu0 %v5909_v61  ;;  %v3323_v54 = vld [vmem:[%s6678_s7 + $0x80] sm:$0xff]  ;;  %v3326_v61 = vld [vmem:[%s6678_s7 + $0x98] sm:$0xff] }
 0x796   :  { %5258 = vmatprep.subr.bf16.mxu1 %v5863_v57  ;;  %5283 = vmatprep.subr.bf16.mxu0 %v6734_v22  ;;  %v3324_v57 = vld [vmem:[%s6678_s7 + $0x88] sm:$0xff] }
 0x799   :  { %5260 = vmatpush1.bf16.msra.mxu1 %v5867_v6  ;;  %5285 = vmatpush3.bf16.msra.mxu0 %v5915_v1  ;;  %v5289_v6 = vpack.c.bf16 %v3324_v57, %v3323_v54  ;;  %v5293_v1 = vpack.c.bf16 %v3326_v61, %v3325_v52 }
 0x79a   :  { %5262 = vmatprep.subr.bf16.mxu1 %v5871_v11  ;;  %5286 = vmatprep.subr.bf16.mxu0 %v6734_v22  ;;  %v3307_v11 = vld [vmem:[%s6678_s7] sm:$0xff]  ;;  %v3310_v22 = vld [vmem:[%s6678_s7 + $0x18] sm:$0xff] }
 0x79d   :  { %v5469_v21 = vpop.eup %5468  ;;  %5264 = vmatpush1.bf16.msra.mxu1 %v5878_v24  ;;  %5288 = vmatpush3.bf16.msra.mxu0 %v5921_v15  ;;  %v3308_v24 = vld [vmem:[%s6678_s7 + $0x8] sm:$0xff]  ;;  %v3309_v15 = vld [vmem:[%s6678_s7 + $0x10] sm:$0xff] }
 0x79e   :  { %v2953_v23 = vmul.f32 %v5469_v21, %v2952_v10  ;;  %v5291_v45 = vpack.c.bf16 %v3308_v24, %v3307_v11  ;;  %5290 = vmatprep.subr.bf16.mxu1 %v5289_v6  ;;  %v5295_v5 = vpack.c.bf16 %v3310_v22, %v3309_v15  ;;  %v2959_v6 = vld [vmem:[#allocation2 + $0x38] sm:$0xc0] }
 0x7a0   :  { %v2957_v37 = vadd.f32 %v2956_v35, %v2953_v23 }
 0x7a2   :  { %v6547_v43 = vrot.slane %v2957_v37, 2  ;;  %v2958_v37 = vld [vmem:[#allocation2 + $0x30] sm:$0xc0] }
 0x7a4   :  { %3208 = vmatmul.mubr.f32.vlgmr.msra.gmra.mrb[30].mxu1 %v6547_v43  ;;  %4367 = vmatmul.mubr.f32.vlgmr.msra.gmra.mrb[42].mxu0 %v6547_v43 }
 0x7a5   :  { %5292 = vmatpush3.bf16.msra.mxu1 %v5291_v45 }
 0x7a6   :  { %5294 = vmatprep.subr.bf16.mxu1 %v5293_v1 }
 0x7a9   :  { %5296 = vmatpush3.bf16.msra.mxu1 %v5295_v5  ;;  %v3136_v5 = vrot.slane %v6509_v26, 6 }
 0x7aa   :  { %5298 = vmatprep.subr.bf16.mxu1 %v5297_v8  ;;  %v2960_v8 = vld [vmem:[#allocation2 + $0x40] sm:$0xc0] }
 0x7ad   :  { %5300 = vmatpush3.bf16.msra.mxu1 %v5299_v27 }
 0x7ae   :  { %5302 = vmatprep.subr.bf16.mxu1 %v5301_v50 }
 0x7b1   :  { %5304 = vmatpush3.bf16.msra.mxu1 %v5303_v39 }
 0x7b2   :  { %5306 = vmatprep.subr.bf16.mxu1 %v5305_v63 }
 0x7b5   :  { %5308 = vmatpush3.bf16.msra.mxu1 %v5307_v44 }
 0x7b6   :  { %5310 = vmatprep.subr.bf16.mxu1 %v5309_v46 }
 0x7b9   :  { %5312 = vmatpush3.bf16.msra.mxu1 %v5311_v13 }
 0x7ba   :  { %5314 = vmatprep.subr.bf16.mxu1 %v5313_v2 }
 0x7bd   :  { %5316 = vmatpush3.bf16.msra.mxu1 %v5315_v32 }
 0x7be   :  { %5318 = vmatprep.subr.bf16.mxu1 %v5317_v49 }
 0x7c1   :  { %5320 = vmatpush3.bf16.msra.mxu1 %v5319_v12 }
 0x853   :  { %v3033_v7 = vpop.f32.mrb[28].mxu1  ;;  %v3104_v29 = vpop.f32.mrb[40].mxu0 }
 0x854   :  { %v3034_v35 = vadd.f32 %v3033_v7, %v6799_v3  ;;  %v3035_v0 = vpop.f32.mrb[29].mxu1  ;;  %v4333_v10 = vpop.f32.mrb[41].mxu0  ;;  %v3105_v3 = vadd.f32 %v3104_v29, %v6813_v19 }
 0x855   :  { %v3036_v21 = vadd.f32 %v3035_v0, %v6812_v56 }
 0x856   :  { %v3109_v23 = vrot.slane %v3034_v35, 2  ;;  %v3129_v22 = vrot.slane %v3105_v3, 2  ;;  %v3501_v35 = vld [vmem:[%s6679_s8] ss:$0 sm:$0xff]  ;;  %s5534_s8 = scalar_lea.vmem %s3454_s29, 96 }
 0x857   :  { %v3119_v54 = vrot.slane %v3036_v21, 2  ;;  %p5535_p2 = scmp.ne.s32.totalorder %s3454_s29, %s5534_s8  ;;  %p5540_p4 = scmp.lt.s32.totalorder %s5534_s8, %s5534_s8 }
 0x858   :  { %v3111_v57 = vadd.f32 %v3109_v23, %v2958_v37  ;;  %v6814_v37 = vld [vmem:[#allocation24_spill] sm:$0xff] }
 0x859   :  { %v3121_v11 = vadd.f32 %v3119_v54, %v2959_v6  ;;  %p5541_p5 = por %p5540_p4, %p5539_p3 }
 0x85a   :  { %v3497_v24 = vmul.f32 -1.442695, %v3111_v57 }
 0x85b   :  { %v3498_v45 = vmul.f32 -1.442695, %v3121_v11  ;;  %p5542_p6 = pnand %p5541_p5, %p5535_p2 }
 0x85c   :  { %5470 = vpow2.f32 %v3497_v24 }
 0x85d   :  { %5472 = vpow2.f32 %v3498_v45 }
 0x866   :  { %v5471_v52 = vpop.eup %5470 }
 0x867   :  { %v5473_v61 = vpop.eup %5472  ;;  %v3115_v1 = vadd.f32 1.0, %v5471_v52 }
 0x868   :  { %v3125_v15 = vadd.f32 1.0, %v5473_v61 }
 0x869   :  { %5474 = vrcp.f32 %v3115_v1 }
 0x86a   :  { %5476 = vrcp.f32 %v3125_v15 }
 0x873   :  { %v5475_v56 = vpop.eup %5474 }
 0x874   :  { %v5477_v16 = vpop.eup %5476  ;;  %v3131_v4 = vmul.f32 %v5475_v56, %v3129_v22 }
 0x875   :  { %v3138_v17 = vmul.f32 %v5477_v16, %v3136_v5  ;;  %v3134_v63 = vsub.f32 1.0, %v5477_v16 }
 0x876   :  { %v3132_v18 = vadd.f32 %v3131_v4, %v2960_v8 }
 0x877   :  { %v3209_v27 = vpop.f32.mrb[30].mxu1  ;;  %v3280_v34 = vpop.f32.mrb[42].mxu0 }
 0x878   :  { %5478 = vtanh.f32 %v3132_v18  ;;  %v3210_v40 = vadd.f32 %v3209_v27, %v5991_v47  ;;  %v3211_v50 = vpop.f32.mrb[31].mxu1  ;;  %v4368_v55 = vpop.f32.mrb[43].mxu0  ;;  %v3281_v41 = vadd.f32 %v3280_v34, %v6010_v33  ;;  %v5569_v33 = vmov 1983009808  }
 0x879   :  { %v3212_v39 = vadd.f32 %v3211_v50, %v5994_v53  ;;  %v3426_v7 = vunpack.c.l.s4 %v5569_v33 }
 0x87a   :  { %v3284_v19 = vadd.f32 %v3210_v40, %v2961_v28 }
 0x87b   :  { %v3291_v20 = vadd.f32 %v3212_v39, %v2962_v59  ;;  %v3427_v21 = vunpack.c.0.s8 %v3426_v7 }
 0x87c   :  { %v3499_v48 = vmul.f32 -1.442695, %v3284_v19 }
 0x87d   :  { %v3500_v26 = vmul.f32 -1.442695, %v3291_v20  ;;  %v3430_v54 = vsub.s32 %v3427_v21, %v6814_v37 }
 0x87e   :  { %5480 = vpow2.f32 %v3499_v48 }
 0x87f   :  { %5482 = vpow2.f32 %v3500_v26 }
 0x882   :  { %v5479_v31 = vpop.eup %5478 }
 0x883   :  { %v3135_v9 = vmul.f32 %v5479_v31, %v3134_v63 }
 0x885   :  { %v3139_v62 = vadd.f32 %v3138_v17, %v3135_v9 }
 0x887   :  { %v3347_v12 = vrot.slane %v3139_v62, 6 }
 0x888   :  { %v5481_v44 = vpop.eup %5480 }
 0x889   :  { %v3288_v46 = vadd.f32 1.0, %v5481_v44  ;;  %v5483_v47 = vpop.eup %5482 }
 0x88a   :  { %v3295_v38 = vadd.f32 1.0, %v5483_v47 }
 0x88b   :  { %5484 = vrcp.f32 %v3288_v46 }
 0x88c   :  { %5486 = vrcp.f32 %v3295_v38 }
 0x895   :  { %v5485_v42 = vpop.eup %5484 }
 0x896   :  { %v3298_v53 = vmul.f32 %v5485_v42, %v3281_v41  ;;  %v5487_v2 = vpop.eup %5486 }
 0x897   :  { %v3301_v14 = vsub.f32 1.0, %v5487_v2  ;;  %v3303_v36 = vmul.f32 %v5487_v2, %v6547_v43 }
 0x898   :  { %v3299_v13 = vadd.f32 %v3298_v53, %v2963_v58 }
 0x89a   :  { %5488 = vtanh.f32 %v3299_v13 }
 0x8a4   :  { %v5489_v30 = vpop.eup %5488 }
 0x8a5   :  { %v3302_v25 = vmul.f32 %v5489_v30, %v3301_v14 }
 0x8a7   :  { %v3304_v32 = vadd.f32 %v3303_v36, %v3302_v25 }
 0x8a9   :  { %v3306_v49 = vrot.slane %v3304_v32, 2 }
 0x8ab   :  { %v3348_v51 = vrot.slane %v3306_v49, 6  ;;  %v3423_v60 = vcombine.high %v3139_v62, %v3306_v49 }
 0x8ad   :  { %3415 = vmatprep.mubr.f32.mxu1 %v3348_v51  ;;  %v3431_v11 = vrot.slane %v3423_v60, %v3430_v54 }
 0x8ae   :  { %3416 = vmatmul.mubr.f32.vlgmr.msra.gmra.mrb[32].mxu1 %v3347_v12 }
 0x981   :  { %v3806_v29 = vpop.f32.mrb[32].mxu1 }
 0x982   :  { %v3807_v0 = vpop.f32.mrb[33].mxu1 }
 0x983   :  { %v3808_v10 = vadd.f32 %v3807_v0, %v3806_v29 }
 0x985   :  { %v3418_v23 = vadd.f32 %v3808_v10, %v3501_v35 }
 0x987   :  { %v3422_v43 = vrot.slane %v3418_v23, 2 }
 0x989   :  { %v3424_v57 = vcombine.high %v3422_v43, %v3422_v43 }
 0x98b   :  { %v3438_v6 = vrot.slane %v3424_v57, %v3430_v54 }
 0x98d   :  { %v3439_v24 = vcombine.high %v3431_v11, %v3438_v6 }
 0x98f   :  { %3446 = vst.msk [vmem:[#allocation8] sm:$0x3f] %vm3445_vm6, %v3439_v24 }
 0x990   :  { %5545 = shalt.err (!%p5542_p6)
}
 0x991   :  { %s5546_s11 = scalar_lea.hbm %s6680_s9, 96 }
 0x992   :  { %p5547_p7 = scmp.ne.s32.totalorder %s6680_s9, %s5546_s11  ;;  %p5550_p8 = scmp.lt.u32.totalorder %s5546_s11, %s6680_s9 }
 0x994   :  { %p5552_p9 = pnand %p5550_p8, %p5547_p7 }
 0x996   :  { %5555 = shalt.err (!%p5552_p9)
}
 0x997   :  { %3456 = dma.vmem_to_hbm [thread:$0]  %s3454_s29, 96, %s6680_s9, [#allocation5]  }
 0x998   :  { %5560 = dma.done.wait [#allocation5], 96  }
 0x999   :  { %5561 = vsyncadd [#allocation5], 4294967200 }
 0x99a   :  { %3460 = vsyncpa [#allocation4], 1 }
 0x99b   :  { %3461 = vsyncpa [#allocation7], 1 }
 0x99c   :  { %3462 = vsyncpa [#allocation5], 1 }

</bundles_post_ra>
